<compile_context>
chip_gen: v7x
topology: tpu7x:2x2x1
jax: 0.10.0
libtpu: 0.0.40
codegen_flags: <defaults>
</compile_context>

<pallas_src>
import jax
import jax.numpy as jnp
from jax.experimental import pallas as pl
from jax.experimental.pallas import tpu as pltpu


def _gru_bidir_kernel(gi_ref, mask_ref, h0_ref, whh_f_ref, whh_b_ref, bhhn_ref,
                      out_ref, hfin_ref, h_scr, osum_scr):
    """Whole bidirectional GRU recurrence in one grid step (all state VMEM-resident).

    gi_ref    : (T*Bp, 6*Hp) f32   precomputed input projections [fw r|z|n | bw r|z|n]
    mask_ref  : (T*Bp, Hp)   f32   1.0 where the timestep is valid (pre-broadcast on lanes)
    h0_ref    : (Bp, 2*Hp)   f32   [h0_fw | h0_bw]
    whh_f_ref : (Hp, 3*Hp)   bf16  dense forward hidden weights (gate-padded columns)
    whh_b_ref : (Hp, 3*Hp)   bf16  dense backward hidden weights
    bhhn_ref  : (1, 2*Hp)    f32   b_hh of the n gate [fw | bw] (must stay inside r*(.))
    out_ref   : (T*Bp, Hp)   f32   fw+bw summed outputs (lane-dense)
    hfin_ref  : (Bp, 2*Hp)   f32   final hidden [fw | bw]
    h_scr     : (Bp, 2*Hp)   f32   carried hidden state
    osum_scr  : (T*Bp, 2*Hp) f32   per-direction outputs [fw | bw], write-once
    """
    Bp = h0_ref.shape[0]
    Hp = out_ref.shape[-1]
    T = out_ref.shape[0] // Bp
    G3 = 3 * Hp

    h_scr[...] = h0_ref[...]
    # Hoisted: JAX does not CSE broadcast_in_dim inside the (unrolled) loop.
    bhhn_f = jnp.broadcast_to(bhhn_ref[:, 0:Hp], (Bp, Hp))
    bhhn_b = jnp.broadcast_to(bhhn_ref[:, Hp:2 * Hp], (Bp, Hp))

    def step(t, carry):
        i_f = pl.multiple_of(t * Bp, Bp)             # forward reads time t
        i_b = pl.multiple_of((T - 1 - t) * Bp, Bp)   # backward reads time T-1-t

        gi_f = gi_ref[pl.ds(i_f, Bp), pl.ds(0, G3)]    # (Bp, 3*Hp), 128-lane aligned
        gi_b = gi_ref[pl.ds(i_b, Bp), pl.ds(G3, G3)]
        m_f = mask_ref[pl.ds(i_f, Bp), :]              # (Bp, Hp)
        m_b = mask_ref[pl.ds(i_b, Bp), :]

        h = h_scr[...]                                 # (Bp, 2*Hp) = [h_fw | h_bw]
        h_f = h[:, 0:Hp]
        h_b = h[:, Hp:2 * Hp]

        # Two independent dense bf16 matmuls (half the K of the old block-diagonal f32 one);
        # f32 accumulation.  Independent -> they overlap in the VLIW schedule.
        gh_f = jnp.dot(h_f.astype(jnp.bfloat16), whh_f_ref[...],
                       preferred_element_type=jnp.float32)
        gh_b = jnp.dot(h_b.astype(jnp.bfloat16), whh_b_ref[...],
                       preferred_element_type=jnp.float32)

        # r and z fused into one sigmoid over a (Bp, 2*Hp) slab per direction.
        rz_f = jax.nn.sigmoid(gi_f[:, 0:2 * Hp] + gh_f[:, 0:2 * Hp])
        rz_b = jax.nn.sigmoid(gi_b[:, 0:2 * Hp] + gh_b[:, 0:2 * Hp])
        r_f, z_f = rz_f[:, 0:Hp], rz_f[:, Hp:2 * Hp]
        r_b, z_b = rz_b[:, 0:Hp], rz_b[:, Hp:2 * Hp]

        # n gate: b_hh(n) is added only here (it must stay inside r * (.)).
        n_f = jnp.tanh(gi_f[:, 2 * Hp:G3] + r_f * (gh_f[:, 2 * Hp:G3] + bhhn_f))
        n_b = jnp.tanh(gi_b[:, 2 * Hp:G3] + r_b * (gh_b[:, 2 * Hp:G3] + bhhn_b))

        hn_f = (1.0 - z_f) * n_f + z_f * h_f
        hn_b = (1.0 - z_b) * n_b + z_b * h_b

        valid_f = m_f > 0.0
        valid_b = m_b > 0.0

        # Packed-sequence masking: padded steps keep the old hidden, emit zero output.
        # One full-width hidden store per step (v5e has a single vst slot).
        h_scr[...] = jnp.concatenate([jnp.where(valid_f, hn_f, h_f),
                                      jnp.where(valid_b, hn_b, h_b)], axis=-1)

        # Write-once per-direction output rows (no read-modify-write).
        osum_scr[pl.ds(i_f, Bp), pl.ds(0, Hp)] = jnp.where(valid_f, hn_f, 0.0)
        osum_scr[pl.ds(i_b, Bp), pl.ds(Hp, Hp)] = jnp.where(valid_b, hn_b, 0.0)
        return carry

    # Serial dependency chain: cap unrolling (full unroll does not shorten the chain).
    jax.lax.fori_loop(0, T, step, 0, unroll=min(T, 8))

    # fw + bw summed once, lane-dense output; final hidden written exactly once.
    out_ref[...] = osum_scr[:, 0:Hp] + osum_scr[:, Hp:2 * Hp]
    hfin_ref[...] = h_scr[...]


def _pack_weights(params, E, H, Hp):
    """Pad / fuse PyTorch-layout GRU weights into the kernel's lane-aligned layout."""
    wih = jnp.zeros((E, 6 * Hp), jnp.float32)        # [fw r|z|n | bw r|z|n], gate-padded
    bih = jnp.zeros((1, 6 * Hp), jnp.float32)        # b_ih (+ b_hh for r,z) folded
    whh = {"f": jnp.zeros((Hp, 3 * Hp), jnp.float32),
           "b": jnp.zeros((Hp, 3 * Hp), jnp.float32)}
    bhhn = jnp.zeros((1, 2 * Hp), jnp.float32)       # b_hh of the n gate [fw | bw]
    for d, sfx in enumerate(("f", "b")):             # direction: forward, backward
        wi = params["wih_" + sfx]                    # (E, 3H), transposed layout
        wh = params["whh_" + sfx]                    # (H, 3H)
        bi = params["bih_" + sfx]                    # (1, 3H)
        bh = params["bhh_" + sfx]                    # (1, 3H)
        for g in range(3):                           # gate order r, z, n
            col = (3 * d + g) * Hp
            wih = wih.at[:, col:col + H].set(wi[:, g * H:(g + 1) * H])
            whh[sfx] = whh[sfx].at[:H, g * Hp:g * Hp + H].set(wh[:, g * H:(g + 1) * H])
            if g < 2:      # r, z: b_ih + b_hh both fold into the precomputed gi
                bih = bih.at[:, col:col + H].set(bi[:, g * H:(g + 1) * H]
                                                 + bh[:, g * H:(g + 1) * H])
            else:          # n: b_ih folds into gi; b_hh(n) stays inside r * (.)
                bih = bih.at[:, col:col + H].set(bi[:, g * H:(g + 1) * H])
                bhhn = bhhn.at[:, d * Hp:d * Hp + H].set(bh[:, g * H:(g + 1) * H])
    return wih, bih, whh["f"], whh["b"], bhhn


def gru_encoder_forward(seqs, lens, params, hidden=None):
    """Equivalent of GRUEncoder.forward (n_layers=1, bidirectional)."""
    T, B = seqs.shape
    emb = params["emb"]
    V, E = emb.shape
    H = params["whh_f"].shape[0]
    Hp = ((H + 127) // 128) * 128    # per-gate lane padding -> aligned slices, dense stores
    Bp = ((B + 7) // 8) * 8          # sublane padding (MXU M rows)

    wih, bih, whh_f, whh_b, bhhn = _pack_weights(params, E, H, Hp)

    # Embedding folded into the input projection: gi = table[token],
    # table = emb @ W_ih + folded biases (V*6*Hp is tiny -> lookup beats an in-kernel GEMM).
    # TODO(synk): for large V keep the gi projection as a T-chunk-pipelined in-kernel GEMM.
    table = emb.astype(jnp.float32) @ wih + bih                              # (V, 6*Hp)
    gi = jnp.zeros((T, Bp, 6 * Hp), jnp.float32).at[:, :B, :].set(table[seqs])
    gi = gi.reshape(T * Bp, 6 * Hp)

    mask = (jnp.arange(T)[:, None] < lens[None, :]).astype(jnp.float32)      # (T, B)
    mask_p = jnp.zeros((T, Bp), jnp.float32).at[:, :B].set(mask)
    mask_p = jnp.broadcast_to(mask_p.reshape(T * Bp, 1), (T * Bp, Hp))

    if hidden is None:
        hidden = jnp.zeros((2, B, H), jnp.float32)
    h0p = jnp.zeros((Bp, 2 * Hp), jnp.float32)
    h0p = h0p.at[:B, 0:H].set(hidden[0]).at[:B, Hp:Hp + H].set(hidden[1])

    const2 = lambda i: (0, 0)
    out, hfin = pl.pallas_call(
        _gru_bidir_kernel,
        grid=(1,),                                    # whole sequence in one invocation
        in_specs=[
            pl.BlockSpec((T * Bp, 6 * Hp), const2),   # gi (both directions, biases folded)
            pl.BlockSpec((T * Bp, Hp), const2),       # validity mask (lane-broadcast)
            pl.BlockSpec((Bp, 2 * Hp), const2),       # h0 [fw | bw]
            pl.BlockSpec((Hp, 3 * Hp), const2),       # W_hh forward (bf16, dense)
            pl.BlockSpec((Hp, 3 * Hp), const2),       # W_hh backward (bf16, dense)
            pl.BlockSpec((1, 2 * Hp), const2),        # b_hh n-gate [fw | bw]
        ],
        out_specs=(
            pl.BlockSpec((T * Bp, Hp), const2),       # summed outputs, lane-dense
            pl.BlockSpec((Bp, 2 * Hp), const2),       # final hidden [fw | bw]
        ),
        out_shape=(
            jax.ShapeDtypeStruct((T * Bp, Hp), jnp.float32),
            jax.ShapeDtypeStruct((Bp, 2 * Hp), jnp.float32),
        ),
        scratch_shapes=[
            pltpu.VMEM((Bp, 2 * Hp), jnp.float32),       # carried hidden state
            pltpu.VMEM((T * Bp, 2 * Hp), jnp.float32),   # per-direction outputs [fw | bw]
        ],
        compiler_params=pltpu.CompilerParams(dimension_semantics=("arbitrary",)),
    )(gi, mask_p, h0p,
      whh_f.astype(jnp.bfloat16), whh_b.astype(jnp.bfloat16), bhhn)

    outputs = out.reshape(T, Bp, Hp)[:, :B, :H]                 # strip pad (cheap glue slice)
    hidden_out = jnp.stack([hfin[:B, 0:H], hfin[:B, Hp:Hp + H]], axis=0)
    # NOTE: pad_packed_sequence pads only up to max(lens); here max(lens) == T so shapes
    # match exactly.  For max(lens) < T, slice outputs[: int(lens.max())].
    return outputs, hidden_out


# ------------------------- pure-JAX reference (for verification) -------------------------
def _cell_ref(x, h, wih, whh, bih, bhh):
    H = h.shape[-1]
    gi = x @ wih + bih
    gh = h @ whh + bhh
    r = jax.nn.sigmoid(gi[:, :H] + gh[:, :H])
    z = jax.nn.sigmoid(gi[:, H:2 * H] + gh[:, H:2 * H])
    n = jnp.tanh(gi[:, 2 * H:] + r * gh[:, 2 * H:])
    return (1.0 - z) * n + z * h


def gru_encoder_reference(seqs, lens, params):
    T, B = seqs.shape
    H = params["whh_f"].shape[0]
    x = params["emb"][seqs].astype(jnp.float32)
    mask = (jnp.arange(T)[:, None] < lens[None, :]).astype(jnp.float32)[:, :, None]

    def fw_step(h, inp):
        xt, mt = inp
        hn = _cell_ref(xt, h, params["wih_f"], params["whh_f"],
                       params["bih_f"], params["bhh_f"])
        h = jnp.where(mt > 0, hn, h)
        return h, jnp.where(mt > 0, hn, 0.0)

    def bw_step(h, inp):
        xt, mt = inp
        hn = _cell_ref(xt, h, params["wih_b"], params["whh_b"],
                       params["bih_b"], params["bhh_b"])
        h = jnp.where(mt > 0, hn, h)
        return h, jnp.where(mt > 0, hn, 0.0)

    h0 = jnp.zeros((B, H), jnp.float32)
    hf, out_f = jax.lax.scan(fw_step, h0, (x, mask))
    hb, out_b_rev = jax.lax.scan(bw_step, h0, (x[::-1], mask[::-1]))
    out_b = out_b_rev[::-1]
    return out_f + out_b, jnp.stack([hf, hb], axis=0)


# --------------------------------------- main ---------------------------------------
if __name__ == "__main__":
    T, B, V, E, H = 8, 4, 32, 16, 32  # max_seq_len, batch, vocab, embedding_dim, hidden_dim

    key = jax.random.PRNGKey(0)
    keys = jax.random.split(key, 12)
    scale = 0.1
    params = {
        "emb":   jax.random.normal(keys[0], (V, E), jnp.float32) * scale,
        "wih_f": jax.random.normal(keys[1], (E, 3 * H), jnp.float32) * scale,
        "whh_f": jax.random.normal(keys[2], (H, 3 * H), jnp.float32) * scale,
        "bih_f": jax.random.normal(keys[3], (1, 3 * H), jnp.float32) * scale,
        "bhh_f": jax.random.normal(keys[4], (1, 3 * H), jnp.float32) * scale,
        "wih_b": jax.random.normal(keys[5], (E, 3 * H), jnp.float32) * scale,
        "whh_b": jax.random.normal(keys[6], (H, 3 * H), jnp.float32) * scale,
        "bih_b": jax.random.normal(keys[7], (1, 3 * H), jnp.float32) * scale,
        "bhh_b": jax.random.normal(keys[8], (1, 3 * H), jnp.float32) * scale,
    }

    seqs = jax.random.randint(keys[9], (T, B), 0, V, dtype=jnp.int32)
    lens = jnp.array([T, 5, 7, 3], dtype=jnp.int32)  # max(lens) == T

    outputs, hidden = gru_encoder_forward(seqs, lens, params, hidden=None)
    outputs = jax.block_until_ready(outputs)
    hidden = jax.block_until_ready(hidden)

    ref_out, ref_hid = gru_encoder_reference(seqs, lens, params)
    assert outputs.shape == (T, B, H), outputs.shape
    assert hidden.shape == (2, B, H), hidden.shape
    # Tolerance reflects bf16 MXU operands in the hidden-state matmul (f32 accumulation).
    assert jnp.allclose(outputs, ref_out, atol=2e-2, rtol=2e-2)
    assert jnp.allclose(hidden, ref_hid, atol=2e-2, rtol=2e-2)

    print("KERNEL_OK")
</pallas_src>

<mosaic_0001>
module attributes {stable_mosaic.version = 11 : i64} {
  func.func @_gru_bidir_kernel(%arg0: i32, %arg1: memref<64x768xf32, #tpu.memory_space<vmem>>, %arg2: memref<64x128xf32, #tpu.memory_space<vmem>>, %arg3: memref<8x256xf32, #tpu.memory_space<vmem>>, %arg4: memref<128x384xbf16, #tpu.memory_space<vmem>>, %arg5: memref<128x384xbf16, #tpu.memory_space<vmem>>, %arg6: memref<1x256xf32, #tpu.memory_space<vmem>>, %arg7: memref<64x128xf32, #tpu.memory_space<vmem>>, %arg8: memref<8x256xf32, #tpu.memory_space<vmem>>, %arg9: memref<8x256xf32, #tpu.memory_space<vmem>>, %arg10: memref<64x256xf32, #tpu.memory_space<vmem>>) attributes {dimension_semantics = [#tpu.dimension_semantics<arbitrary>], iteration_bounds = array<i64: 1>, scalar_prefetch = 0 : i64, scratch_operands = 2 : i64, tpu.core_type = #tpu.core_type<tc>, window_params = [{pipeline_mode = #tpu.pipeline_mode<synchronous>, transform_indices = @transform_0, window_bounds = array<i64: 64, 768>}, {pipeline_mode = #tpu.pipeline_mode<synchronous>, transform_indices = @transform_1, window_bounds = array<i64: 64, 128>}, {pipeline_mode = #tpu.pipeline_mode<synchronous>, transform_indices = @transform_2, window_bounds = array<i64: 8, 256>}, {pipeline_mode = #tpu.pipeline_mode<synchronous>, transform_indices = @transform_3, window_bounds = array<i64: 128, 384>}, {pipeline_mode = #tpu.pipeline_mode<synchronous>, transform_indices = @transform_4, window_bounds = array<i64: 128, 384>}, {pipeline_mode = #tpu.pipeline_mode<synchronous>, transform_indices = @transform_5, window_bounds = array<i64: 1, 256>}, {pipeline_mode = #tpu.pipeline_mode<synchronous>, transform_indices = @transform_6, window_bounds = array<i64: 64, 128>}, {pipeline_mode = #tpu.pipeline_mode<synchronous>, transform_indices = @transform_7, window_bounds = array<i64: 8, 256>}]} {
    %c0 = arith.constant 0 : index
    %c0_0 = arith.constant 0 : index
    %0 = vector.load %arg3[%c0, %c0_0] : memref<8x256xf32, #tpu.memory_space<vmem>>, vector<8x256xf32>
    %c0_1 = arith.constant 0 : index
    %c0_2 = arith.constant 0 : index
    %1 = vector.load %arg9[%c0_1, %c0_2] : memref<8x256xf32, #tpu.memory_space<vmem>>, vector<8x256xf32>
    tpu.vector_store %arg9[%c0_1, %c0_2], %0 {strides = array<i32>} : memref<8x256xf32, #tpu.memory_space<vmem>>, vector<8x256xf32>,
    %c0_3 = arith.constant 0 : index
    %c0_4 = arith.constant 0 : index
    %2 = vector.load %arg6[%c0_3, %c0_4] : memref<1x256xf32, #tpu.memory_space<vmem>>, vector<1x128xf32>
    %3 = vector.shape_cast %2 : vector<1x128xf32> to vector<1x128xf32>
    %4 = vector.broadcast %3 : vector<1x128xf32> to vector<8x128xf32>
    %c0_5 = arith.constant 0 : index
    %c128 = arith.constant 128 : index
    %5 = vector.load %arg6[%c0_5, %c128] : memref<1x256xf32, #tpu.memory_space<vmem>>, vector<1x128xf32>
    %6 = vector.shape_cast %5 : vector<1x128xf32> to vector<1x128xf32>
    %7 = vector.broadcast %6 : vector<1x128xf32> to vector<8x128xf32>
    %c0_i32 = arith.constant 0 : i32
    %c8_i32 = arith.constant 8 : i32
    %8 = arith.muli %c0_i32, %c8_i32 : i32
    %9 = tpu.assume_multiple %8, 8 : i32
    %c7_i32 = arith.constant 7 : i32
    %10 = arith.subi %c7_i32, %c0_i32 : i32
    %c8_i32_6 = arith.constant 8 : i32
    %11 = arith.muli %10, %c8_i32_6 : i32
    %12 = tpu.assume_multiple %11, 8 : i32
    %13 = arith.index_cast %9 : i32 to index
    %c0_7 = arith.constant 0 : index
    %14 = vector.load %arg1[%13, %c0_7] : memref<64x768xf32, #tpu.memory_space<vmem>>, vector<8x384xf32>
    %15 = arith.index_cast %12 : i32 to index
    %c384 = arith.constant 384 : index
    %16 = vector.load %arg1[%15, %c384] : memref<64x768xf32, #tpu.memory_space<vmem>>, vector<8x384xf32>
    %17 = arith.index_cast %9 : i32 to index
    %c0_8 = arith.constant 0 : index
    %18 = vector.load %arg2[%17, %c0_8] : memref<64x128xf32, #tpu.memory_space<vmem>>, vector<8x128xf32>
    %19 = arith.index_cast %12 : i32 to index
    %c0_9 = arith.constant 0 : index
    %20 = vector.load %arg2[%19, %c0_9] : memref<64x128xf32, #tpu.memory_space<vmem>>, vector<8x128xf32>
    %c0_10 = arith.constant 0 : index
    %c0_11 = arith.constant 0 : index
    %21 = vector.load %arg9[%c0_10, %c0_11] : memref<8x256xf32, #tpu.memory_space<vmem>>, vector<8x256xf32>
    %22 = vector.extract_strided_slice %21 {offsets = [0, 0], sizes = [8, 128], strides = [1, 1]} : vector<8x256xf32> to vector<8x128xf32>
    %23 = vector.extract_strided_slice %21 {offsets = [0, 128], sizes = [8, 128], strides = [1, 1]} : vector<8x256xf32> to vector<8x128xf32>
    %24 = arith.truncf %22 : vector<8x128xf32> to vector<8x128xbf16>
    %c0_12 = arith.constant 0 : index
    %c0_13 = arith.constant 0 : index
    %25 = vector.load %arg4[%c0_12, %c0_13] : memref<128x384xbf16, #tpu.memory_space<vmem>>, vector<128x384xbf16>
    %cst = arith.constant dense<0.000000e+00> : vector<8x384xf32>
    %26 = tpu.matmul %24, %25, %cst {dimension_numbers = #tpu.dot_dimension_numbers<[1], [0], [0], [1], [0, 0, 1, 1], [], []>} : vector<8x128xbf16>, vector<128x384xbf16>, vector<8x384xf32> -> vector<8x384xf32>
    %27 = arith.truncf %23 : vector<8x128xf32> to vector<8x128xbf16>
    %c0_14 = arith.constant 0 : index
    %c0_15 = arith.constant 0 : index
    %28 = vector.load %arg5[%c0_14, %c0_15] : memref<128x384xbf16, #tpu.memory_space<vmem>>, vector<128x384xbf16>
    %cst_16 = arith.constant dense<0.000000e+00> : vector<8x384xf32>
    %29 = tpu.matmul %27, %28, %cst_16 {dimension_numbers = #tpu.dot_dimension_numbers<[1], [0], [0], [1], [0, 0, 1, 1], [], []>} : vector<8x128xbf16>, vector<128x384xbf16>, vector<8x384xf32> -> vector<8x384xf32>
    %30 = vector.extract_strided_slice %14 {offsets = [0, 0], sizes = [8, 256], strides = [1, 1]} : vector<8x384xf32> to vector<8x256xf32>
    %31 = vector.extract_strided_slice %26 {offsets = [0, 0], sizes = [8, 256], strides = [1, 1]} : vector<8x384xf32> to vector<8x256xf32>
    %32 = arith.addf %30, %31 : vector<8x256xf32>
    %33 = arith.negf %32 : vector<8x256xf32>
    %34 = math.exp %33 : vector<8x256xf32>
    %cst_17 = arith.constant 1.000000e+00 : f32
    %35 = vector.broadcast %cst_17 : f32 to vector<8x256xf32>
    %36 = arith.addf %35, %34 : vector<8x256xf32>
    %37 = arith.divf %35, %36 : vector<8x256xf32>
    %38 = vector.extract_strided_slice %16 {offsets = [0, 0], sizes = [8, 256], strides = [1, 1]} : vector<8x384xf32> to vector<8x256xf32>
    %39 = vector.extract_strided_slice %29 {offsets = [0, 0], sizes = [8, 256], strides = [1, 1]} : vector<8x384xf32> to vector<8x256xf32>
    %40 = arith.addf %38, %39 : vector<8x256xf32>
    %41 = arith.negf %40 : vector<8x256xf32>
    %42 = math.exp %41 : vector<8x256xf32>
    %cst_18 = arith.constant 1.000000e+00 : f32
    %43 = vector.broadcast %cst_18 : f32 to vector<8x256xf32>
    %44 = arith.addf %43, %42 : vector<8x256xf32>
    %45 = arith.divf %43, %44 : vector<8x256xf32>
    %46 = vector.extract_strided_slice %37 {offsets = [0, 0], sizes = [8, 128], strides = [1, 1]} : vector<8x256xf32> to vector<8x128xf32>
    %47 = vector.extract_strided_slice %37 {offsets = [0, 128], sizes = [8, 128], strides = [1, 1]} : vector<8x256xf32> to vector<8x128xf32>
    %48 = vector.extract_strided_slice %45 {offsets = [0, 0], sizes = [8, 128], strides = [1, 1]} : vector<8x256xf32> to vector<8x128xf32>
    %49 = vector.extract_strided_slice %45 {offsets = [0, 128], sizes = [8, 128], strides = [1, 1]} : vector<8x256xf32> to vector<8x128xf32>
    %50 = vector.extract_strided_slice %14 {offsets = [0, 256], sizes = [8, 128], strides = [1, 1]} : vector<8x384xf32> to vector<8x128xf32>
    %51 = vector.extract_strided_slice %26 {offsets = [0, 256], sizes = [8, 128], strides = [1, 1]} : vector<8x384xf32> to vector<8x128xf32>
    %52 = arith.addf %51, %4 : vector<8x128xf32>
    %53 = arith.mulf %46, %52 : vector<8x128xf32>
    %54 = arith.addf %50, %53 : vector<8x128xf32>
    %55 = math.tanh %54 : vector<8x128xf32>
    %56 = vector.extract_strided_slice %16 {offsets = [0, 256], sizes = [8, 128], strides = [1, 1]} : vector<8x384xf32> to vector<8x128xf32>
    %57 = vector.extract_strided_slice %29 {offsets = [0, 256], sizes = [8, 128], strides = [1, 1]} : vector<8x384xf32> to vector<8x128xf32>
    %58 = arith.addf %57, %7 : vector<8x128xf32>
    %59 = arith.mulf %48, %58 : vector<8x128xf32>
    %60 = arith.addf %56, %59 : vector<8x128xf32>
    %61 = math.tanh %60 : vector<8x128xf32>
    %cst_19 = arith.constant 1.000000e+00 : f32
    %62 = vector.broadcast %cst_19 : f32 to vector<8x128xf32>
    %63 = arith.subf %62, %47 : vector<8x128xf32>
    %64 = arith.mulf %63, %55 : vector<8x128xf32>
    %65 = arith.mulf %47, %22 : vector<8x128xf32>
    %66 = arith.addf %64, %65 : vector<8x128xf32>
    %cst_20 = arith.constant 1.000000e+00 : f32
    %67 = vector.broadcast %cst_20 : f32 to vector<8x128xf32>
    %68 = arith.subf %67, %49 : vector<8x128xf32>
    %69 = arith.mulf %68, %61 : vector<8x128xf32>
    %70 = arith.mulf %49, %23 : vector<8x128xf32>
    %71 = arith.addf %69, %70 : vector<8x128xf32>
    %cst_21 = arith.constant 0.000000e+00 : f32
    %72 = vector.broadcast %cst_21 : f32 to vector<8x128xf32>
    %73 = arith.cmpf ogt, %18, %72 : vector<8x128xf32>
    %cst_22 = arith.constant 0.000000e+00 : f32
    %74 = vector.broadcast %cst_22 : f32 to vector<8x128xf32>
    %75 = arith.cmpf ogt, %20, %74 : vector<8x128xf32>
    %76 = arith.select %73, %66, %22 : vector<8x128xi1>, vector<8x128xf32>
    %77 = arith.select %75, %71, %23 : vector<8x128xi1>, vector<8x128xf32>
    %78 = tpu.concatenate %76, %77 in 1 : vector<8x128xf32>, vector<8x128xf32> -> vector<8x256xf32>
    %c0_23 = arith.constant 0 : index
    %c0_24 = arith.constant 0 : index
    %79 = vector.load %arg9[%c0_23, %c0_24] : memref<8x256xf32, #tpu.memory_space<vmem>>, vector<8x256xf32>
    tpu.vector_store %arg9[%c0_23, %c0_24], %78 {strides = array<i32>} : memref<8x256xf32, #tpu.memory_space<vmem>>, vector<8x256xf32>,
    %cst_25 = arith.constant 0.000000e+00 : f32
    %80 = vector.broadcast %cst_25 : f32 to vector<8x128xf32>
    %81 = arith.select %73, %66, %80 : vector<8x128xi1>, vector<8x128xf32>
    %82 = arith.index_cast %9 : i32 to index
    %c0_26 = arith.constant 0 : index
    %83 = vector.load %arg10[%82, %c0_26] : memref<64x256xf32, #tpu.memory_space<vmem>>, vector<8x128xf32>
    tpu.vector_store %arg10[%82, %c0_26], %81 {strides = array<i32>} : memref<64x256xf32, #tpu.memory_space<vmem>>, vector<8x128xf32>,
    %cst_27 = arith.constant 0.000000e+00 : f32
    %84 = vector.broadcast %cst_27 : f32 to vector<8x128xf32>
    %85 = arith.select %75, %71, %84 : vector<8x128xi1>, vector<8x128xf32>
    %86 = arith.index_cast %12 : i32 to index
    %c128_28 = arith.constant 128 : index
    %87 = vector.load %arg10[%86, %c128_28] : memref<64x256xf32, #tpu.memory_space<vmem>>, vector<8x128xf32>
    tpu.vector_store %arg10[%86, %c128_28], %85 {strides = array<i32>} : memref<64x256xf32, #tpu.memory_space<vmem>>, vector<8x128xf32>,
    %c1_i32 = arith.constant 1 : i32
    %c8_i32_29 = arith.constant 8 : i32
    %88 = arith.muli %c1_i32, %c8_i32_29 : i32
    %89 = tpu.assume_multiple %88, 8 : i32
    %c7_i32_30 = arith.constant 7 : i32
    %90 = arith.subi %c7_i32_30, %c1_i32 : i32
    %c8_i32_31 = arith.constant 8 : i32
    %91 = arith.muli %90, %c8_i32_31 : i32
    %92 = tpu.assume_multiple %91, 8 : i32
    %93 = arith.index_cast %89 : i32 to index
    %c0_32 = arith.constant 0 : index
    %94 = vector.load %arg1[%93, %c0_32] : memref<64x768xf32, #tpu.memory_space<vmem>>, vector<8x384xf32>
    %95 = arith.index_cast %92 : i32 to index
    %c384_33 = arith.constant 384 : index
    %96 = vector.load %arg1[%95, %c384_33] : memref<64x768xf32, #tpu.memory_space<vmem>>, vector<8x384xf32>
    %97 = arith.index_cast %89 : i32 to index
    %c0_34 = arith.constant 0 : index
    %98 = vector.load %arg2[%97, %c0_34] : memref<64x128xf32, #tpu.memory_space<vmem>>, vector<8x128xf32>
    %99 = arith.index_cast %92 : i32 to index
    %c0_35 = arith.constant 0 : index
    %100 = vector.load %arg2[%99, %c0_35] : memref<64x128xf32, #tpu.memory_space<vmem>>, vector<8x128xf32>
    %c0_36 = arith.constant 0 : index
    %c0_37 = arith.constant 0 : index
    %101 = vector.load %arg9[%c0_36, %c0_37] : memref<8x256xf32, #tpu.memory_space<vmem>>, vector<8x256xf32>
    %102 = vector.extract_strided_slice %101 {offsets = [0, 0], sizes = [8, 128], strides = [1, 1]} : vector<8x256xf32> to vector<8x128xf32>
    %103 = vector.extract_strided_slice %101 {offsets = [0, 128], sizes = [8, 128], strides = [1, 1]} : vector<8x256xf32> to vector<8x128xf32>
    %104 = arith.truncf %102 : vector<8x128xf32> to vector<8x128xbf16>
    %c0_38 = arith.constant 0 : index
    %c0_39 = arith.constant 0 : index
    %105 = vector.load %arg4[%c0_38, %c0_39] : memref<128x384xbf16, #tpu.memory_space<vmem>>, vector<128x384xbf16>
    %cst_40 = arith.constant dense<0.000000e+00> : vector<8x384xf32>
    %106 = tpu.matmul %104, %105, %cst_40 {dimension_numbers = #tpu.dot_dimension_numbers<[1], [0], [0], [1], [0, 0, 1, 1], [], []>} : vector<8x128xbf16>, vector<128x384xbf16>, vector<8x384xf32> -> vector<8x384xf32>
    %107 = arith.truncf %103 : vector<8x128xf32> to vector<8x128xbf16>
    %c0_41 = arith.constant 0 : index
    %c0_42 = arith.constant 0 : index
    %108 = vector.load %arg5[%c0_41, %c0_42] : memref<128x384xbf16, #tpu.memory_space<vmem>>, vector<128x384xbf16>
    %cst_43 = arith.constant dense<0.000000e+00> : vector<8x384xf32>
    %109 = tpu.matmul %107, %108, %cst_43 {dimension_numbers = #tpu.dot_dimension_numbers<[1], [0], [0], [1], [0, 0, 1, 1], [], []>} : vector<8x128xbf16>, vector<128x384xbf16>, vector<8x384xf32> -> vector<8x384xf32>
    %110 = vector.extract_strided_slice %94 {offsets = [0, 0], sizes = [8, 256], strides = [1, 1]} : vector<8x384xf32> to vector<8x256xf32>
    %111 = vector.extract_strided_slice %106 {offsets = [0, 0], sizes = [8, 256], strides = [1, 1]} : vector<8x384xf32> to vector<8x256xf32>
    %112 = arith.addf %110, %111 : vector<8x256xf32>
    %113 = arith.negf %112 : vector<8x256xf32>
    %114 = math.exp %113 : vector<8x256xf32>
    %cst_44 = arith.constant 1.000000e+00 : f32
    %115 = vector.broadcast %cst_44 : f32 to vector<8x256xf32>
    %116 = arith.addf %115, %114 : vector<8x256xf32>
    %117 = arith.divf %115, %116 : vector<8x256xf32>
    %118 = vector.extract_strided_slice %96 {offsets = [0, 0], sizes = [8, 256], strides = [1, 1]} : vector<8x384xf32> to vector<8x256xf32>
    %119 = vector.extract_strided_slice %109 {offsets = [0, 0], sizes = [8, 256], strides = [1, 1]} : vector<8x384xf32> to vector<8x256xf32>
    %120 = arith.addf %118, %119 : vector<8x256xf32>
    %121 = arith.negf %120 : vector<8x256xf32>
    %122 = math.exp %121 : vector<8x256xf32>
    %cst_45 = arith.constant 1.000000e+00 : f32
    %123 = vector.broadcast %cst_45 : f32 to vector<8x256xf32>
    %124 = arith.addf %123, %122 : vector<8x256xf32>
    %125 = arith.divf %123, %124 : vector<8x256xf32>
    %126 = vector.extract_strided_slice %117 {offsets = [0, 0], sizes = [8, 128], strides = [1, 1]} : vector<8x256xf32> to vector<8x128xf32>
    %127 = vector.extract_strided_slice %117 {offsets = [0, 128], sizes = [8, 128], strides = [1, 1]} : vector<8x256xf32> to vector<8x128xf32>
    %128 = vector.extract_strided_slice %125 {offsets = [0, 0], sizes = [8, 128], strides = [1, 1]} : vector<8x256xf32> to vector<8x128xf32>
    %129 = vector.extract_strided_slice %125 {offsets = [0, 128], sizes = [8, 128], strides = [1, 1]} : vector<8x256xf32> to vector<8x128xf32>
    %130 = vector.extract_strided_slice %94 {offsets = [0, 256], sizes = [8, 128], strides = [1, 1]} : vector<8x384xf32> to vector<8x128xf32>
    %131 = vector.extract_strided_slice %106 {offsets = [0, 256], sizes = [8, 128], strides = [1, 1]} : vector<8x384xf32> to vector<8x128xf32>
    %132 = arith.addf %131, %4 : vector<8x128xf32>
    %133 = arith.mulf %126, %132 : vector<8x128xf32>
    %134 = arith.addf %130, %133 : vector<8x128xf32>
    %135 = math.tanh %134 : vector<8x128xf32>
    %136 = vector.extract_strided_slice %96 {offsets = [0, 256], sizes = [8, 128], strides = [1, 1]} : vector<8x384xf32> to vector<8x128xf32>
    %137 = vector.extract_strided_slice %109 {offsets = [0, 256], sizes = [8, 128], strides = [1, 1]} : vector<8x384xf32> to vector<8x128xf32>
    %138 = arith.addf %137, %7 : vector<8x128xf32>
    %139 = arith.mulf %128, %138 : vector<8x128xf32>
    %140 = arith.addf %136, %139 : vector<8x128xf32>
    %141 = math.tanh %140 : vector<8x128xf32>
    %cst_46 = arith.constant 1.000000e+00 : f32
    %142 = vector.broadcast %cst_46 : f32 to vector<8x128xf32>
    %143 = arith.subf %142, %127 : vector<8x128xf32>
    %144 = arith.mulf %143, %135 : vector<8x128xf32>
    %145 = arith.mulf %127, %102 : vector<8x128xf32>
    %146 = arith.addf %144, %145 : vector<8x128xf32>
    %cst_47 = arith.constant 1.000000e+00 : f32
    %147 = vector.broadcast %cst_47 : f32 to vector<8x128xf32>
    %148 = arith.subf %147, %129 : vector<8x128xf32>
    %149 = arith.mulf %148, %141 : vector<8x128xf32>
    %150 = arith.mulf %129, %103 : vector<8x128xf32>
    %151 = arith.addf %149, %150 : vector<8x128xf32>
    %cst_48 = arith.constant 0.000000e+00 : f32
    %152 = vector.broadcast %cst_48 : f32 to vector<8x128xf32>
    %153 = arith.cmpf ogt, %98, %152 : vector<8x128xf32>
    %cst_49 = arith.constant 0.000000e+00 : f32
    %154 = vector.broadcast %cst_49 : f32 to vector<8x128xf32>
    %155 = arith.cmpf ogt, %100, %154 : vector<8x128xf32>
    %156 = arith.select %153, %146, %102 : vector<8x128xi1>, vector<8x128xf32>
    %157 = arith.select %155, %151, %103 : vector<8x128xi1>, vector<8x128xf32>
    %158 = tpu.concatenate %156, %157 in 1 : vector<8x128xf32>, vector<8x128xf32> -> vector<8x256xf32>
    %c0_50 = arith.constant 0 : index
    %c0_51 = arith.constant 0 : index
    %159 = vector.load %arg9[%c0_50, %c0_51] : memref<8x256xf32, #tpu.memory_space<vmem>>, vector<8x256xf32>
    tpu.vector_store %arg9[%c0_50, %c0_51], %158 {strides = array<i32>} : memref<8x256xf32, #tpu.memory_space<vmem>>, vector<8x256xf32>,
    %cst_52 = arith.constant 0.000000e+00 : f32
    %160 = vector.broadcast %cst_52 : f32 to vector<8x128xf32>
    %161 = arith.select %153, %146, %160 : vector<8x128xi1>, vector<8x128xf32>
    %162 = arith.index_cast %89 : i32 to index
    %c0_53 = arith.constant 0 : index
    %163 = vector.load %arg10[%162, %c0_53] : memref<64x256xf32, #tpu.memory_space<vmem>>, vector<8x128xf32>
    tpu.vector_store %arg10[%162, %c0_53], %161 {strides = array<i32>} : memref<64x256xf32, #tpu.memory_space<vmem>>, vector<8x128xf32>,
    %cst_54 = arith.constant 0.000000e+00 : f32
    %164 = vector.broadcast %cst_54 : f32 to vector<8x128xf32>
    %165 = arith.select %155, %151, %164 : vector<8x128xi1>, vector<8x128xf32>
    %166 = arith.index_cast %92 : i32 to index
    %c128_55 = arith.constant 128 : index
    %167 = vector.load %arg10[%166, %c128_55] : memref<64x256xf32, #tpu.memory_space<vmem>>, vector<8x128xf32>
    tpu.vector_store %arg10[%166, %c128_55], %165 {strides = array<i32>} : memref<64x256xf32, #tpu.memory_space<vmem>>, vector<8x128xf32>,
    %c2_i32 = arith.constant 2 : i32
    %c8_i32_56 = arith.constant 8 : i32
    %168 = arith.muli %c2_i32, %c8_i32_56 : i32
    %169 = tpu.assume_multiple %168, 8 : i32
    %c7_i32_57 = arith.constant 7 : i32
    %170 = arith.subi %c7_i32_57, %c2_i32 : i32
    %c8_i32_58 = arith.constant 8 : i32
    %171 = arith.muli %170, %c8_i32_58 : i32
    %172 = tpu.assume_multiple %171, 8 : i32
    %173 = arith.index_cast %169 : i32 to index
    %c0_59 = arith.constant 0 : index
    %174 = vector.load %arg1[%173, %c0_59] : memref<64x768xf32, #tpu.memory_space<vmem>>, vector<8x384xf32>
    %175 = arith.index_cast %172 : i32 to index
    %c384_60 = arith.constant 384 : index
    %176 = vector.load %arg1[%175, %c384_60] : memref<64x768xf32, #tpu.memory_space<vmem>>, vector<8x384xf32>
    %177 = arith.index_cast %169 : i32 to index
    %c0_61 = arith.constant 0 : index
    %178 = vector.load %arg2[%177, %c0_61] : memref<64x128xf32, #tpu.memory_space<vmem>>, vector<8x128xf32>
    %179 = arith.index_cast %172 : i32 to index
    %c0_62 = arith.constant 0 : index
    %180 = vector.load %arg2[%179, %c0_62] : memref<64x128xf32, #tpu.memory_space<vmem>>, vector<8x128xf32>
    %c0_63 = arith.constant 0 : index
    %c0_64 = arith.constant 0 : index
    %181 = vector.load %arg9[%c0_63, %c0_64] : memref<8x256xf32, #tpu.memory_space<vmem>>, vector<8x256xf32>
    %182 = vector.extract_strided_slice %181 {offsets = [0, 0], sizes = [8, 128], strides = [1, 1]} : vector<8x256xf32> to vector<8x128xf32>
    %183 = vector.extract_strided_slice %181 {offsets = [0, 128], sizes = [8, 128], strides = [1, 1]} : vector<8x256xf32> to vector<8x128xf32>
    %184 = arith.truncf %182 : vector<8x128xf32> to vector<8x128xbf16>
    %c0_65 = arith.constant 0 : index
    %c0_66 = arith.constant 0 : index
    %185 = vector.load %arg4[%c0_65, %c0_66] : memref<128x384xbf16, #tpu.memory_space<vmem>>, vector<128x384xbf16>
    %cst_67 = arith.constant dense<0.000000e+00> : vector<8x384xf32>
    %186 = tpu.matmul %184, %185, %cst_67 {dimension_numbers = #tpu.dot_dimension_numbers<[1], [0], [0], [1], [0, 0, 1, 1], [], []>} : vector<8x128xbf16>, vector<128x384xbf16>, vector<8x384xf32> -> vector<8x384xf32>
    %187 = arith.truncf %183 : vector<8x128xf32> to vector<8x128xbf16>
    %c0_68 = arith.constant 0 : index
    %c0_69 = arith.constant 0 : index
    %188 = vector.load %arg5[%c0_68, %c0_69] : memref<128x384xbf16, #tpu.memory_space<vmem>>, vector<128x384xbf16>
    %cst_70 = arith.constant dense<0.000000e+00> : vector<8x384xf32>
    %189 = tpu.matmul %187, %188, %cst_70 {dimension_numbers = #tpu.dot_dimension_numbers<[1], [0], [0], [1], [0, 0, 1, 1], [], []>} : vector<8x128xbf16>, vector<128x384xbf16>, vector<8x384xf32> -> vector<8x384xf32>
    %190 = vector.extract_strided_slice %174 {offsets = [0, 0], sizes = [8, 256], strides = [1, 1]} : vector<8x384xf32> to vector<8x256xf32>
    %191 = vector.extract_strided_slice %186 {offsets = [0, 0], sizes = [8, 256], strides = [1, 1]} : vector<8x384xf32> to vector<8x256xf32>
    %192 = arith.addf %190, %191 : vector<8x256xf32>
    %193 = arith.negf %192 : vector<8x256xf32>
    %194 = math.exp %193 : vector<8x256xf32>
    %cst_71 = arith.constant 1.000000e+00 : f32
    %195 = vector.broadcast %cst_71 : f32 to vector<8x256xf32>
    %196 = arith.addf %195, %194 : vector<8x256xf32>
    %197 = arith.divf %195, %196 : vector<8x256xf32>
    %198 = vector.extract_strided_slice %176 {offsets = [0, 0], sizes = [8, 256], strides = [1, 1]} : vector<8x384xf32> to vector<8x256xf32>
    %199 = vector.extract_strided_slice %189 {offsets = [0, 0], sizes = [8, 256], strides = [1, 1]} : vector<8x384xf32> to vector<8x256xf32>
    %200 = arith.addf %198, %199 : vector<8x256xf32>
    %201 = arith.negf %200 : vector<8x256xf32>
    %202 = math.exp %201 : vector<8x256xf32>
    %cst_72 = arith.constant 1.000000e+00 : f32
    %203 = vector.broadcast %cst_72 : f32 to vector<8x256xf32>
    %204 = arith.addf %203, %202 : vector<8x256xf32>
    %205 = arith.divf %203, %204 : vector<8x256xf32>
    %206 = vector.extract_strided_slice %197 {offsets = [0, 0], sizes = [8, 128], strides = [1, 1]} : vector<8x256xf32> to vector<8x128xf32>
    %207 = vector.extract_strided_slice %197 {offsets = [0, 128], sizes = [8, 128], strides = [1, 1]} : vector<8x256xf32> to vector<8x128xf32>
    %208 = vector.extract_strided_slice %205 {offsets = [0, 0], sizes = [8, 128], strides = [1, 1]} : vector<8x256xf32> to vector<8x128xf32>
    %209 = vector.extract_strided_slice %205 {offsets = [0, 128], sizes = [8, 128], strides = [1, 1]} : vector<8x256xf32> to vector<8x128xf32>
    %210 = vector.extract_strided_slice %174 {offsets = [0, 256], sizes = [8, 128], strides = [1, 1]} : vector<8x384xf32> to vector<8x128xf32>
    %211 = vector.extract_strided_slice %186 {offsets = [0, 256], sizes = [8, 128], strides = [1, 1]} : vector<8x384xf32> to vector<8x128xf32>
    %212 = arith.addf %211, %4 : vector<8x128xf32>
    %213 = arith.mulf %206, %212 : vector<8x128xf32>
    %214 = arith.addf %210, %213 : vector<8x128xf32>
    %215 = math.tanh %214 : vector<8x128xf32>
    %216 = vector.extract_strided_slice %176 {offsets = [0, 256], sizes = [8, 128], strides = [1, 1]} : vector<8x384xf32> to vector<8x128xf32>
    %217 = vector.extract_strided_slice %189 {offsets = [0, 256], sizes = [8, 128], strides = [1, 1]} : vector<8x384xf32> to vector<8x128xf32>
    %218 = arith.addf %217, %7 : vector<8x128xf32>
    %219 = arith.mulf %208, %218 : vector<8x128xf32>
    %220 = arith.addf %216, %219 : vector<8x128xf32>
    %221 = math.tanh %220 : vector<8x128xf32>
    %cst_73 = arith.constant 1.000000e+00 : f32
    %222 = vector.broadcast %cst_73 : f32 to vector<8x128xf32>
    %223 = arith.subf %222, %207 : vector<8x128xf32>
    %224 = arith.mulf %223, %215 : vector<8x128xf32>
    %225 = arith.mulf %207, %182 : vector<8x128xf32>
    %226 = arith.addf %224, %225 : vector<8x128xf32>
    %cst_74 = arith.constant 1.000000e+00 : f32
    %227 = vector.broadcast %cst_74 : f32 to vector<8x128xf32>
    %228 = arith.subf %227, %209 : vector<8x128xf32>
    %229 = arith.mulf %228, %221 : vector<8x128xf32>
    %230 = arith.mulf %209, %183 : vector<8x128xf32>
    %231 = arith.addf %229, %230 : vector<8x128xf32>
    %cst_75 = arith.constant 0.000000e+00 : f32
    %232 = vector.broadcast %cst_75 : f32 to vector<8x128xf32>
    %233 = arith.cmpf ogt, %178, %232 : vector<8x128xf32>
    %cst_76 = arith.constant 0.000000e+00 : f32
    %234 = vector.broadcast %cst_76 : f32 to vector<8x128xf32>
    %235 = arith.cmpf ogt, %180, %234 : vector<8x128xf32>
    %236 = arith.select %233, %226, %182 : vector<8x128xi1>, vector<8x128xf32>
    %237 = arith.select %235, %231, %183 : vector<8x128xi1>, vector<8x128xf32>
    %238 = tpu.concatenate %236, %237 in 1 : vector<8x128xf32>, vector<8x128xf32> -> vector<8x256xf32>
    %c0_77 = arith.constant 0 : index
    %c0_78 = arith.constant 0 : index
    %239 = vector.load %arg9[%c0_77, %c0_78] : memref<8x256xf32, #tpu.memory_space<vmem>>, vector<8x256xf32>
    tpu.vector_store %arg9[%c0_77, %c0_78], %238 {strides = array<i32>} : memref<8x256xf32, #tpu.memory_space<vmem>>, vector<8x256xf32>,
    %cst_79 = arith.constant 0.000000e+00 : f32
    %240 = vector.broadcast %cst_79 : f32 to vector<8x128xf32>
    %241 = arith.select %233, %226, %240 : vector<8x128xi1>, vector<8x128xf32>
    %242 = arith.index_cast %169 : i32 to index
    %c0_80 = arith.constant 0 : index
    %243 = vector.load %arg10[%242, %c0_80] : memref<64x256xf32, #tpu.memory_space<vmem>>, vector<8x128xf32>
    tpu.vector_store %arg10[%242, %c0_80], %241 {strides = array<i32>} : memref<64x256xf32, #tpu.memory_space<vmem>>, vector<8x128xf32>,
    %cst_81 = arith.constant 0.000000e+00 : f32
    %244 = vector.broadcast %cst_81 : f32 to vector<8x128xf32>
    %245 = arith.select %235, %231, %244 : vector<8x128xi1>, vector<8x128xf32>
    %246 = arith.index_cast %172 : i32 to index
    %c128_82 = arith.constant 128 : index
    %247 = vector.load %arg10[%246, %c128_82] : memref<64x256xf32, #tpu.memory_space<vmem>>, vector<8x128xf32>
    tpu.vector_store %arg10[%246, %c128_82], %245 {strides = array<i32>} : memref<64x256xf32, #tpu.memory_space<vmem>>, vector<8x128xf32>,
    %c3_i32 = arith.constant 3 : i32
    %c8_i32_83 = arith.constant 8 : i32
    %248 = arith.muli %c3_i32, %c8_i32_83 : i32
    %249 = tpu.assume_multiple %248, 8 : i32
    %c7_i32_84 = arith.constant 7 : i32
    %250 = arith.subi %c7_i32_84, %c3_i32 : i32
    %c8_i32_85 = arith.constant 8 : i32
    %251 = arith.muli %250, %c8_i32_85 : i32
    %252 = tpu.assume_multiple %251, 8 : i32
    %253 = arith.index_cast %249 : i32 to index
    %c0_86 = arith.constant 0 : index
    %254 = vector.load %arg1[%253, %c0_86] : memref<64x768xf32, #tpu.memory_space<vmem>>, vector<8x384xf32>
    %255 = arith.index_cast %252 : i32 to index
    %c384_87 = arith.constant 384 : index
    %256 = vector.load %arg1[%255, %c384_87] : memref<64x768xf32, #tpu.memory_space<vmem>>, vector<8x384xf32>
    %257 = arith.index_cast %249 : i32 to index
    %c0_88 = arith.constant 0 : index
    %258 = vector.load %arg2[%257, %c0_88] : memref<64x128xf32, #tpu.memory_space<vmem>>, vector<8x128xf32>
    %259 = arith.index_cast %252 : i32 to index
    %c0_89 = arith.constant 0 : index
    %260 = vector.load %arg2[%259, %c0_89] : memref<64x128xf32, #tpu.memory_space<vmem>>, vector<8x128xf32>
    %c0_90 = arith.constant 0 : index
    %c0_91 = arith.constant 0 : index
    %261 = vector.load %arg9[%c0_90, %c0_91] : memref<8x256xf32, #tpu.memory_space<vmem>>, vector<8x256xf32>
    %262 = vector.extract_strided_slice %261 {offsets = [0, 0], sizes = [8, 128], strides = [1, 1]} : vector<8x256xf32> to vector<8x128xf32>
    %263 = vector.extract_strided_slice %261 {offsets = [0, 128], sizes = [8, 128], strides = [1, 1]} : vector<8x256xf32> to vector<8x128xf32>
    %264 = arith.truncf %262 : vector<8x128xf32> to vector<8x128xbf16>
    %c0_92 = arith.constant 0 : index
    %c0_93 = arith.constant 0 : index
    %265 = vector.load %arg4[%c0_92, %c0_93] : memref<128x384xbf16, #tpu.memory_space<vmem>>, vector<128x384xbf16>
    %cst_94 = arith.constant dense<0.000000e+00> : vector<8x384xf32>
    %266 = tpu.matmul %264, %265, %cst_94 {dimension_numbers = #tpu.dot_dimension_numbers<[1], [0], [0], [1], [0, 0, 1, 1], [], []>} : vector<8x128xbf16>, vector<128x384xbf16>, vector<8x384xf32> -> vector<8x384xf32>
    %267 = arith.truncf %263 : vector<8x128xf32> to vector<8x128xbf16>
    %c0_95 = arith.constant 0 : index
    %c0_96 = arith.constant 0 : index
    %268 = vector.load %arg5[%c0_95, %c0_96] : memref<128x384xbf16, #tpu.memory_space<vmem>>, vector<128x384xbf16>
    %cst_97 = arith.constant dense<0.000000e+00> : vector<8x384xf32>
    %269 = tpu.matmul %267, %268, %cst_97 {dimension_numbers = #tpu.dot_dimension_numbers<[1], [0], [0], [1], [0, 0, 1, 1], [], []>} : vector<8x128xbf16>, vector<128x384xbf16>, vector<8x384xf32> -> vector<8x384xf32>
    %270 = vector.extract_strided_slice %254 {offsets = [0, 0], sizes = [8, 256], strides = [1, 1]} : vector<8x384xf32> to vector<8x256xf32>
    %271 = vector.extract_strided_slice %266 {offsets = [0, 0], sizes = [8, 256], strides = [1, 1]} : vector<8x384xf32> to vector<8x256xf32>
    %272 = arith.addf %270, %271 : vector<8x256xf32>
    %273 = arith.negf %272 : vector<8x256xf32>
    %274 = math.exp %273 : vector<8x256xf32>
    %cst_98 = arith.constant 1.000000e+00 : f32
    %275 = vector.broadcast %cst_98 : f32 to vector<8x256xf32>
    %276 = arith.addf %275, %274 : vector<8x256xf32>
    %277 = arith.divf %275, %276 : vector<8x256xf32>
    %278 = vector.extract_strided_slice %256 {offsets = [0, 0], sizes = [8, 256], strides = [1, 1]} : vector<8x384xf32> to vector<8x256xf32>
    %279 = vector.extract_strided_slice %269 {offsets = [0, 0], sizes = [8, 256], strides = [1, 1]} : vector<8x384xf32> to vector<8x256xf32>
    %280 = arith.addf %278, %279 : vector<8x256xf32>
    %281 = arith.negf %280 : vector<8x256xf32>
    %282 = math.exp %281 : vector<8x256xf32>
    %cst_99 = arith.constant 1.000000e+00 : f32
    %283 = vector.broadcast %cst_99 : f32 to vector<8x256xf32>
    %284 = arith.addf %283, %282 : vector<8x256xf32>
    %285 = arith.divf %283, %284 : vector<8x256xf32>
    %286 = vector.extract_strided_slice %277 {offsets = [0, 0], sizes = [8, 128], strides = [1, 1]} : vector<8x256xf32> to vector<8x128xf32>
    %287 = vector.extract_strided_slice %277 {offsets = [0, 128], sizes = [8, 128], strides = [1, 1]} : vector<8x256xf32> to vector<8x128xf32>
    %288 = vector.extract_strided_slice %285 {offsets = [0, 0], sizes = [8, 128], strides = [1, 1]} : vector<8x256xf32> to vector<8x128xf32>
    %289 = vector.extract_strided_slice %285 {offsets = [0, 128], sizes = [8, 128], strides = [1, 1]} : vector<8x256xf32> to vector<8x128xf32>
    %290 = vector.extract_strided_slice %254 {offsets = [0, 256], sizes = [8, 128], strides = [1, 1]} : vector<8x384xf32> to vector<8x128xf32>
    %291 = vector.extract_strided_slice %266 {offsets = [0, 256], sizes = [8, 128], strides = [1, 1]} : vector<8x384xf32> to vector<8x128xf32>
    %292 = arith.addf %291, %4 : vector<8x128xf32>
    %293 = arith.mulf %286, %292 : vector<8x128xf32>
    %294 = arith.addf %290, %293 : vector<8x128xf32>
    %295 = math.tanh %294 : vector<8x128xf32>
    %296 = vector.extract_strided_slice %256 {offsets = [0, 256], sizes = [8, 128], strides = [1, 1]} : vector<8x384xf32> to vector<8x128xf32>
    %297 = vector.extract_strided_slice %269 {offsets = [0, 256], sizes = [8, 128], strides = [1, 1]} : vector<8x384xf32> to vector<8x128xf32>
    %298 = arith.addf %297, %7 : vector<8x128xf32>
    %299 = arith.mulf %288, %298 : vector<8x128xf32>
    %300 = arith.addf %296, %299 : vector<8x128xf32>
    %301 = math.tanh %300 : vector<8x128xf32>
    %cst_100 = arith.constant 1.000000e+00 : f32
    %302 = vector.broadcast %cst_100 : f32 to vector<8x128xf32>
    %303 = arith.subf %302, %287 : vector<8x128xf32>
    %304 = arith.mulf %303, %295 : vector<8x128xf32>
    %305 = arith.mulf %287, %262 : vector<8x128xf32>
    %306 = arith.addf %304, %305 : vector<8x128xf32>
    %cst_101 = arith.constant 1.000000e+00 : f32
    %307 = vector.broadcast %cst_101 : f32 to vector<8x128xf32>
    %308 = arith.subf %307, %289 : vector<8x128xf32>
    %309 = arith.mulf %308, %301 : vector<8x128xf32>
    %310 = arith.mulf %289, %263 : vector<8x128xf32>
    %311 = arith.addf %309, %310 : vector<8x128xf32>
    %cst_102 = arith.constant 0.000000e+00 : f32
    %312 = vector.broadcast %cst_102 : f32 to vector<8x128xf32>
    %313 = arith.cmpf ogt, %258, %312 : vector<8x128xf32>
    %cst_103 = arith.constant 0.000000e+00 : f32
    %314 = vector.broadcast %cst_103 : f32 to vector<8x128xf32>
    %315 = arith.cmpf ogt, %260, %314 : vector<8x128xf32>
    %316 = arith.select %313, %306, %262 : vector<8x128xi1>, vector<8x128xf32>
    %317 = arith.select %315, %311, %263 : vector<8x128xi1>, vector<8x128xf32>
    %318 = tpu.concatenate %316, %317 in 1 : vector<8x128xf32>, vector<8x128xf32> -> vector<8x256xf32>
    %c0_104 = arith.constant 0 : index
    %c0_105 = arith.constant 0 : index
    %319 = vector.load %arg9[%c0_104, %c0_105] : memref<8x256xf32, #tpu.memory_space<vmem>>, vector<8x256xf32>
    tpu.vector_store %arg9[%c0_104, %c0_105], %318 {strides = array<i32>} : memref<8x256xf32, #tpu.memory_space<vmem>>, vector<8x256xf32>,
    %cst_106 = arith.constant 0.000000e+00 : f32
    %320 = vector.broadcast %cst_106 : f32 to vector<8x128xf32>
    %321 = arith.select %313, %306, %320 : vector<8x128xi1>, vector<8x128xf32>
    %322 = arith.index_cast %249 : i32 to index
    %c0_107 = arith.constant 0 : index
    %323 = vector.load %arg10[%322, %c0_107] : memref<64x256xf32, #tpu.memory_space<vmem>>, vector<8x128xf32>
    tpu.vector_store %arg10[%322, %c0_107], %321 {strides = array<i32>} : memref<64x256xf32, #tpu.memory_space<vmem>>, vector<8x128xf32>,
    %cst_108 = arith.constant 0.000000e+00 : f32
    %324 = vector.broadcast %cst_108 : f32 to vector<8x128xf32>
    %325 = arith.select %315, %311, %324 : vector<8x128xi1>, vector<8x128xf32>
    %326 = arith.index_cast %252 : i32 to index
    %c128_109 = arith.constant 128 : index
    %327 = vector.load %arg10[%326, %c128_109] : memref<64x256xf32, #tpu.memory_space<vmem>>, vector<8x128xf32>
    tpu.vector_store %arg10[%326, %c128_109], %325 {strides = array<i32>} : memref<64x256xf32, #tpu.memory_space<vmem>>, vector<8x128xf32>,
    %c4_i32 = arith.constant 4 : i32
    %c8_i32_110 = arith.constant 8 : i32
    %328 = arith.muli %c4_i32, %c8_i32_110 : i32
    %329 = tpu.assume_multiple %328, 8 : i32
    %c7_i32_111 = arith.constant 7 : i32
    %330 = arith.subi %c7_i32_111, %c4_i32 : i32
    %c8_i32_112 = arith.constant 8 : i32
    %331 = arith.muli %330, %c8_i32_112 : i32
    %332 = tpu.assume_multiple %331, 8 : i32
    %333 = arith.index_cast %329 : i32 to index
    %c0_113 = arith.constant 0 : index
    %334 = vector.load %arg1[%333, %c0_113] : memref<64x768xf32, #tpu.memory_space<vmem>>, vector<8x384xf32>
    %335 = arith.index_cast %332 : i32 to index
    %c384_114 = arith.constant 384 : index
    %336 = vector.load %arg1[%335, %c384_114] : memref<64x768xf32, #tpu.memory_space<vmem>>, vector<8x384xf32>
    %337 = arith.index_cast %329 : i32 to index
    %c0_115 = arith.constant 0 : index
    %338 = vector.load %arg2[%337, %c0_115] : memref<64x128xf32, #tpu.memory_space<vmem>>, vector<8x128xf32>
    %339 = arith.index_cast %332 : i32 to index
    %c0_116 = arith.constant 0 : index
    %340 = vector.load %arg2[%339, %c0_116] : memref<64x128xf32, #tpu.memory_space<vmem>>, vector<8x128xf32>
    %c0_117 = arith.constant 0 : index
    %c0_118 = arith.constant 0 : index
    %341 = vector.load %arg9[%c0_117, %c0_118] : memref<8x256xf32, #tpu.memory_space<vmem>>, vector<8x256xf32>
    %342 = vector.extract_strided_slice %341 {offsets = [0, 0], sizes = [8, 128], strides = [1, 1]} : vector<8x256xf32> to vector<8x128xf32>
    %343 = vector.extract_strided_slice %341 {offsets = [0, 128], sizes = [8, 128], strides = [1, 1]} : vector<8x256xf32> to vector<8x128xf32>
    %344 = arith.truncf %342 : vector<8x128xf32> to vector<8x128xbf16>
    %c0_119 = arith.constant 0 : index
    %c0_120 = arith.constant 0 : index
    %345 = vector.load %arg4[%c0_119, %c0_120] : memref<128x384xbf16, #tpu.memory_space<vmem>>, vector<128x384xbf16>
    %cst_121 = arith.constant dense<0.000000e+00> : vector<8x384xf32>
    %346 = tpu.matmul %344, %345, %cst_121 {dimension_numbers = #tpu.dot_dimension_numbers<[1], [0], [0], [1], [0, 0, 1, 1], [], []>} : vector<8x128xbf16>, vector<128x384xbf16>, vector<8x384xf32> -> vector<8x384xf32>
    %347 = arith.truncf %343 : vector<8x128xf32> to vector<8x128xbf16>
    %c0_122 = arith.constant 0 : index
    %c0_123 = arith.constant 0 : index
    %348 = vector.load %arg5[%c0_122, %c0_123] : memref<128x384xbf16, #tpu.memory_space<vmem>>, vector<128x384xbf16>
    %cst_124 = arith.constant dense<0.000000e+00> : vector<8x384xf32>
    %349 = tpu.matmul %347, %348, %cst_124 {dimension_numbers = #tpu.dot_dimension_numbers<[1], [0], [0], [1], [0, 0, 1, 1], [], []>} : vector<8x128xbf16>, vector<128x384xbf16>, vector<8x384xf32> -> vector<8x384xf32>
    %350 = vector.extract_strided_slice %334 {offsets = [0, 0], sizes = [8, 256], strides = [1, 1]} : vector<8x384xf32> to vector<8x256xf32>
    %351 = vector.extract_strided_slice %346 {offsets = [0, 0], sizes = [8, 256], strides = [1, 1]} : vector<8x384xf32> to vector<8x256xf32>
    %352 = arith.addf %350, %351 : vector<8x256xf32>
    %353 = arith.negf %352 : vector<8x256xf32>
    %354 = math.exp %353 : vector<8x256xf32>
    %cst_125 = arith.constant 1.000000e+00 : f32
    %355 = vector.broadcast %cst_125 : f32 to vector<8x256xf32>
    %356 = arith.addf %355, %354 : vector<8x256xf32>
    %357 = arith.divf %355, %356 : vector<8x256xf32>
    %358 = vector.extract_strided_slice %336 {offsets = [0, 0], sizes = [8, 256], strides = [1, 1]} : vector<8x384xf32> to vector<8x256xf32>
    %359 = vector.extract_strided_slice %349 {offsets = [0, 0], sizes = [8, 256], strides = [1, 1]} : vector<8x384xf32> to vector<8x256xf32>
    %360 = arith.addf %358, %359 : vector<8x256xf32>
    %361 = arith.negf %360 : vector<8x256xf32>
    %362 = math.exp %361 : vector<8x256xf32>
    %cst_126 = arith.constant 1.000000e+00 : f32
    %363 = vector.broadcast %cst_126 : f32 to vector<8x256xf32>
    %364 = arith.addf %363, %362 : vector<8x256xf32>
    %365 = arith.divf %363, %364 : vector<8x256xf32>
    %366 = vector.extract_strided_slice %357 {offsets = [0, 0], sizes = [8, 128], strides = [1, 1]} : vector<8x256xf32> to vector<8x128xf32>
    %367 = vector.extract_strided_slice %357 {offsets = [0, 128], sizes = [8, 128], strides = [1, 1]} : vector<8x256xf32> to vector<8x128xf32>
    %368 = vector.extract_strided_slice %365 {offsets = [0, 0], sizes = [8, 128], strides = [1, 1]} : vector<8x256xf32> to vector<8x128xf32>
    %369 = vector.extract_strided_slice %365 {offsets = [0, 128], sizes = [8, 128], strides = [1, 1]} : vector<8x256xf32> to vector<8x128xf32>
    %370 = vector.extract_strided_slice %334 {offsets = [0, 256], sizes = [8, 128], strides = [1, 1]} : vector<8x384xf32> to vector<8x128xf32>
    %371 = vector.extract_strided_slice %346 {offsets = [0, 256], sizes = [8, 128], strides = [1, 1]} : vector<8x384xf32> to vector<8x128xf32>
    %372 = arith.addf %371, %4 : vector<8x128xf32>
    %373 = arith.mulf %366, %372 : vector<8x128xf32>
    %374 = arith.addf %370, %373 : vector<8x128xf32>
    %375 = math.tanh %374 : vector<8x128xf32>
    %376 = vector.extract_strided_slice %336 {offsets = [0, 256], sizes = [8, 128], strides = [1, 1]} : vector<8x384xf32> to vector<8x128xf32>
    %377 = vector.extract_strided_slice %349 {offsets = [0, 256], sizes = [8, 128], strides = [1, 1]} : vector<8x384xf32> to vector<8x128xf32>
    %378 = arith.addf %377, %7 : vector<8x128xf32>
    %379 = arith.mulf %368, %378 : vector<8x128xf32>
    %380 = arith.addf %376, %379 : vector<8x128xf32>
    %381 = math.tanh %380 : vector<8x128xf32>
    %cst_127 = arith.constant 1.000000e+00 : f32
    %382 = vector.broadcast %cst_127 : f32 to vector<8x128xf32>
    %383 = arith.subf %382, %367 : vector<8x128xf32>
    %384 = arith.mulf %383, %375 : vector<8x128xf32>
    %385 = arith.mulf %367, %342 : vector<8x128xf32>
    %386 = arith.addf %384, %385 : vector<8x128xf32>
    %cst_128 = arith.constant 1.000000e+00 : f32
    %387 = vector.broadcast %cst_128 : f32 to vector<8x128xf32>
    %388 = arith.subf %387, %369 : vector<8x128xf32>
    %389 = arith.mulf %388, %381 : vector<8x128xf32>
    %390 = arith.mulf %369, %343 : vector<8x128xf32>
    %391 = arith.addf %389, %390 : vector<8x128xf32>
    %cst_129 = arith.constant 0.000000e+00 : f32
    %392 = vector.broadcast %cst_129 : f32 to vector<8x128xf32>
    %393 = arith.cmpf ogt, %338, %392 : vector<8x128xf32>
    %cst_130 = arith.constant 0.000000e+00 : f32
    %394 = vector.broadcast %cst_130 : f32 to vector<8x128xf32>
    %395 = arith.cmpf ogt, %340, %394 : vector<8x128xf32>
    %396 = arith.select %393, %386, %342 : vector<8x128xi1>, vector<8x128xf32>
    %397 = arith.select %395, %391, %343 : vector<8x128xi1>, vector<8x128xf32>
    %398 = tpu.concatenate %396, %397 in 1 : vector<8x128xf32>, vector<8x128xf32> -> vector<8x256xf32>
    %c0_131 = arith.constant 0 : index
    %c0_132 = arith.constant 0 : index
    %399 = vector.load %arg9[%c0_131, %c0_132] : memref<8x256xf32, #tpu.memory_space<vmem>>, vector<8x256xf32>
    tpu.vector_store %arg9[%c0_131, %c0_132], %398 {strides = array<i32>} : memref<8x256xf32, #tpu.memory_space<vmem>>, vector<8x256xf32>,
    %cst_133 = arith.constant 0.000000e+00 : f32
    %400 = vector.broadcast %cst_133 : f32 to vector<8x128xf32>
    %401 = arith.select %393, %386, %400 : vector<8x128xi1>, vector<8x128xf32>
    %402 = arith.index_cast %329 : i32 to index
    %c0_134 = arith.constant 0 : index
    %403 = vector.load %arg10[%402, %c0_134] : memref<64x256xf32, #tpu.memory_space<vmem>>, vector<8x128xf32>
    tpu.vector_store %arg10[%402, %c0_134], %401 {strides = array<i32>} : memref<64x256xf32, #tpu.memory_space<vmem>>, vector<8x128xf32>,
    %cst_135 = arith.constant 0.000000e+00 : f32
    %404 = vector.broadcast %cst_135 : f32 to vector<8x128xf32>
    %405 = arith.select %395, %391, %404 : vector<8x128xi1>, vector<8x128xf32>
    %406 = arith.index_cast %332 : i32 to index
    %c128_136 = arith.constant 128 : index
    %407 = vector.load %arg10[%406, %c128_136] : memref<64x256xf32, #tpu.memory_space<vmem>>, vector<8x128xf32>
    tpu.vector_store %arg10[%406, %c128_136], %405 {strides = array<i32>} : memref<64x256xf32, #tpu.memory_space<vmem>>, vector<8x128xf32>,
    %c5_i32 = arith.constant 5 : i32
    %c8_i32_137 = arith.constant 8 : i32
    %408 = arith.muli %c5_i32, %c8_i32_137 : i32
    %409 = tpu.assume_multiple %408, 8 : i32
    %c7_i32_138 = arith.constant 7 : i32
    %410 = arith.subi %c7_i32_138, %c5_i32 : i32
    %c8_i32_139 = arith.constant 8 : i32
    %411 = arith.muli %410, %c8_i32_139 : i32
    %412 = tpu.assume_multiple %411, 8 : i32
    %413 = arith.index_cast %409 : i32 to index
    %c0_140 = arith.constant 0 : index
    %414 = vector.load %arg1[%413, %c0_140] : memref<64x768xf32, #tpu.memory_space<vmem>>, vector<8x384xf32>
    %415 = arith.index_cast %412 : i32 to index
    %c384_141 = arith.constant 384 : index
    %416 = vector.load %arg1[%415, %c384_141] : memref<64x768xf32, #tpu.memory_space<vmem>>, vector<8x384xf32>
    %417 = arith.index_cast %409 : i32 to index
    %c0_142 = arith.constant 0 : index
    %418 = vector.load %arg2[%417, %c0_142] : memref<64x128xf32, #tpu.memory_space<vmem>>, vector<8x128xf32>
    %419 = arith.index_cast %412 : i32 to index
    %c0_143 = arith.constant 0 : index
    %420 = vector.load %arg2[%419, %c0_143] : memref<64x128xf32, #tpu.memory_space<vmem>>, vector<8x128xf32>
    %c0_144 = arith.constant 0 : index
    %c0_145 = arith.constant 0 : index
    %421 = vector.load %arg9[%c0_144, %c0_145] : memref<8x256xf32, #tpu.memory_space<vmem>>, vector<8x256xf32>
    %422 = vector.extract_strided_slice %421 {offsets = [0, 0], sizes = [8, 128], strides = [1, 1]} : vector<8x256xf32> to vector<8x128xf32>
    %423 = vector.extract_strided_slice %421 {offsets = [0, 128], sizes = [8, 128], strides = [1, 1]} : vector<8x256xf32> to vector<8x128xf32>
    %424 = arith.truncf %422 : vector<8x128xf32> to vector<8x128xbf16>
    %c0_146 = arith.constant 0 : index
    %c0_147 = arith.constant 0 : index
    %425 = vector.load %arg4[%c0_146, %c0_147] : memref<128x384xbf16, #tpu.memory_space<vmem>>, vector<128x384xbf16>
    %cst_148 = arith.constant dense<0.000000e+00> : vector<8x384xf32>
    %426 = tpu.matmul %424, %425, %cst_148 {dimension_numbers = #tpu.dot_dimension_numbers<[1], [0], [0], [1], [0, 0, 1, 1], [], []>} : vector<8x128xbf16>, vector<128x384xbf16>, vector<8x384xf32> -> vector<8x384xf32>
    %427 = arith.truncf %423 : vector<8x128xf32> to vector<8x128xbf16>
    %c0_149 = arith.constant 0 : index
    %c0_150 = arith.constant 0 : index
    %428 = vector.load %arg5[%c0_149, %c0_150] : memref<128x384xbf16, #tpu.memory_space<vmem>>, vector<128x384xbf16>
    %cst_151 = arith.constant dense<0.000000e+00> : vector<8x384xf32>
    %429 = tpu.matmul %427, %428, %cst_151 {dimension_numbers = #tpu.dot_dimension_numbers<[1], [0], [0], [1], [0, 0, 1, 1], [], []>} : vector<8x128xbf16>, vector<128x384xbf16>, vector<8x384xf32> -> vector<8x384xf32>
    %430 = vector.extract_strided_slice %414 {offsets = [0, 0], sizes = [8, 256], strides = [1, 1]} : vector<8x384xf32> to vector<8x256xf32>
    %431 = vector.extract_strided_slice %426 {offsets = [0, 0], sizes = [8, 256], strides = [1, 1]} : vector<8x384xf32> to vector<8x256xf32>
    %432 = arith.addf %430, %431 : vector<8x256xf32>
    %433 = arith.negf %432 : vector<8x256xf32>
    %434 = math.exp %433 : vector<8x256xf32>
    %cst_152 = arith.constant 1.000000e+00 : f32
    %435 = vector.broadcast %cst_152 : f32 to vector<8x256xf32>
    %436 = arith.addf %435, %434 : vector<8x256xf32>
    %437 = arith.divf %435, %436 : vector<8x256xf32>
    %438 = vector.extract_strided_slice %416 {offsets = [0, 0], sizes = [8, 256], strides = [1, 1]} : vector<8x384xf32> to vector<8x256xf32>
    %439 = vector.extract_strided_slice %429 {offsets = [0, 0], sizes = [8, 256], strides = [1, 1]} : vector<8x384xf32> to vector<8x256xf32>
    %440 = arith.addf %438, %439 : vector<8x256xf32>
    %441 = arith.negf %440 : vector<8x256xf32>
    %442 = math.exp %441 : vector<8x256xf32>
    %cst_153 = arith.constant 1.000000e+00 : f32
    %443 = vector.broadcast %cst_153 : f32 to vector<8x256xf32>
    %444 = arith.addf %443, %442 : vector<8x256xf32>
    %445 = arith.divf %443, %444 : vector<8x256xf32>
    %446 = vector.extract_strided_slice %437 {offsets = [0, 0], sizes = [8, 128], strides = [1, 1]} : vector<8x256xf32> to vector<8x128xf32>
    %447 = vector.extract_strided_slice %437 {offsets = [0, 128], sizes = [8, 128], strides = [1, 1]} : vector<8x256xf32> to vector<8x128xf32>
    %448 = vector.extract_strided_slice %445 {offsets = [0, 0], sizes = [8, 128], strides = [1, 1]} : vector<8x256xf32> to vector<8x128xf32>
    %449 = vector.extract_strided_slice %445 {offsets = [0, 128], sizes = [8, 128], strides = [1, 1]} : vector<8x256xf32> to vector<8x128xf32>
    %450 = vector.extract_strided_slice %414 {offsets = [0, 256], sizes = [8, 128], strides = [1, 1]} : vector<8x384xf32> to vector<8x128xf32>
    %451 = vector.extract_strided_slice %426 {offsets = [0, 256], sizes = [8, 128], strides = [1, 1]} : vector<8x384xf32> to vector<8x128xf32>
    %452 = arith.addf %451, %4 : vector<8x128xf32>
    %453 = arith.mulf %446, %452 : vector<8x128xf32>
    %454 = arith.addf %450, %453 : vector<8x128xf32>
    %455 = math.tanh %454 : vector<8x128xf32>
    %456 = vector.extract_strided_slice %416 {offsets = [0, 256], sizes = [8, 128], strides = [1, 1]} : vector<8x384xf32> to vector<8x128xf32>
    %457 = vector.extract_strided_slice %429 {offsets = [0, 256], sizes = [8, 128], strides = [1, 1]} : vector<8x384xf32> to vector<8x128xf32>
    %458 = arith.addf %457, %7 : vector<8x128xf32>
    %459 = arith.mulf %448, %458 : vector<8x128xf32>
    %460 = arith.addf %456, %459 : vector<8x128xf32>
    %461 = math.tanh %460 : vector<8x128xf32>
    %cst_154 = arith.constant 1.000000e+00 : f32
    %462 = vector.broadcast %cst_154 : f32 to vector<8x128xf32>
    %463 = arith.subf %462, %447 : vector<8x128xf32>
    %464 = arith.mulf %463, %455 : vector<8x128xf32>
    %465 = arith.mulf %447, %422 : vector<8x128xf32>
    %466 = arith.addf %464, %465 : vector<8x128xf32>
    %cst_155 = arith.constant 1.000000e+00 : f32
    %467 = vector.broadcast %cst_155 : f32 to vector<8x128xf32>
    %468 = arith.subf %467, %449 : vector<8x128xf32>
    %469 = arith.mulf %468, %461 : vector<8x128xf32>
    %470 = arith.mulf %449, %423 : vector<8x128xf32>
    %471 = arith.addf %469, %470 : vector<8x128xf32>
    %cst_156 = arith.constant 0.000000e+00 : f32
    %472 = vector.broadcast %cst_156 : f32 to vector<8x128xf32>
    %473 = arith.cmpf ogt, %418, %472 : vector<8x128xf32>
    %cst_157 = arith.constant 0.000000e+00 : f32
    %474 = vector.broadcast %cst_157 : f32 to vector<8x128xf32>
    %475 = arith.cmpf ogt, %420, %474 : vector<8x128xf32>
    %476 = arith.select %473, %466, %422 : vector<8x128xi1>, vector<8x128xf32>
    %477 = arith.select %475, %471, %423 : vector<8x128xi1>, vector<8x128xf32>
    %478 = tpu.concatenate %476, %477 in 1 : vector<8x128xf32>, vector<8x128xf32> -> vector<8x256xf32>
    %c0_158 = arith.constant 0 : index
    %c0_159 = arith.constant 0 : index
    %479 = vector.load %arg9[%c0_158, %c0_159] : memref<8x256xf32, #tpu.memory_space<vmem>>, vector<8x256xf32>
    tpu.vector_store %arg9[%c0_158, %c0_159], %478 {strides = array<i32>} : memref<8x256xf32, #tpu.memory_space<vmem>>, vector<8x256xf32>,
    %cst_160 = arith.constant 0.000000e+00 : f32
    %480 = vector.broadcast %cst_160 : f32 to vector<8x128xf32>
    %481 = arith.select %473, %466, %480 : vector<8x128xi1>, vector<8x128xf32>
    %482 = arith.index_cast %409 : i32 to index
    %c0_161 = arith.constant 0 : index
    %483 = vector.load %arg10[%482, %c0_161] : memref<64x256xf32, #tpu.memory_space<vmem>>, vector<8x128xf32>
    tpu.vector_store %arg10[%482, %c0_161], %481 {strides = array<i32>} : memref<64x256xf32, #tpu.memory_space<vmem>>, vector<8x128xf32>,
    %cst_162 = arith.constant 0.000000e+00 : f32
    %484 = vector.broadcast %cst_162 : f32 to vector<8x128xf32>
    %485 = arith.select %475, %471, %484 : vector<8x128xi1>, vector<8x128xf32>
    %486 = arith.index_cast %412 : i32 to index
    %c128_163 = arith.constant 128 : index
    %487 = vector.load %arg10[%486, %c128_163] : memref<64x256xf32, #tpu.memory_space<vmem>>, vector<8x128xf32>
    tpu.vector_store %arg10[%486, %c128_163], %485 {strides = array<i32>} : memref<64x256xf32, #tpu.memory_space<vmem>>, vector<8x128xf32>,
    %c6_i32 = arith.constant 6 : i32
    %c8_i32_164 = arith.constant 8 : i32
    %488 = arith.muli %c6_i32, %c8_i32_164 : i32
    %489 = tpu.assume_multiple %488, 8 : i32
    %c7_i32_165 = arith.constant 7 : i32
    %490 = arith.subi %c7_i32_165, %c6_i32 : i32
    %c8_i32_166 = arith.constant 8 : i32
    %491 = arith.muli %490, %c8_i32_166 : i32
    %492 = tpu.assume_multiple %491, 8 : i32
    %493 = arith.index_cast %489 : i32 to index
    %c0_167 = arith.constant 0 : index
    %494 = vector.load %arg1[%493, %c0_167] : memref<64x768xf32, #tpu.memory_space<vmem>>, vector<8x384xf32>
    %495 = arith.index_cast %492 : i32 to index
    %c384_168 = arith.constant 384 : index
    %496 = vector.load %arg1[%495, %c384_168] : memref<64x768xf32, #tpu.memory_space<vmem>>, vector<8x384xf32>
    %497 = arith.index_cast %489 : i32 to index
    %c0_169 = arith.constant 0 : index
    %498 = vector.load %arg2[%497, %c0_169] : memref<64x128xf32, #tpu.memory_space<vmem>>, vector<8x128xf32>
    %499 = arith.index_cast %492 : i32 to index
    %c0_170 = arith.constant 0 : index
    %500 = vector.load %arg2[%499, %c0_170] : memref<64x128xf32, #tpu.memory_space<vmem>>, vector<8x128xf32>
    %c0_171 = arith.constant 0 : index
    %c0_172 = arith.constant 0 : index
    %501 = vector.load %arg9[%c0_171, %c0_172] : memref<8x256xf32, #tpu.memory_space<vmem>>, vector<8x256xf32>
    %502 = vector.extract_strided_slice %501 {offsets = [0, 0], sizes = [8, 128], strides = [1, 1]} : vector<8x256xf32> to vector<8x128xf32>
    %503 = vector.extract_strided_slice %501 {offsets = [0, 128], sizes = [8, 128], strides = [1, 1]} : vector<8x256xf32> to vector<8x128xf32>
    %504 = arith.truncf %502 : vector<8x128xf32> to vector<8x128xbf16>
    %c0_173 = arith.constant 0 : index
    %c0_174 = arith.constant 0 : index
    %505 = vector.load %arg4[%c0_173, %c0_174] : memref<128x384xbf16, #tpu.memory_space<vmem>>, vector<128x384xbf16>
    %cst_175 = arith.constant dense<0.000000e+00> : vector<8x384xf32>
    %506 = tpu.matmul %504, %505, %cst_175 {dimension_numbers = #tpu.dot_dimension_numbers<[1], [0], [0], [1], [0, 0, 1, 1], [], []>} : vector<8x128xbf16>, vector<128x384xbf16>, vector<8x384xf32> -> vector<8x384xf32>
    %507 = arith.truncf %503 : vector<8x128xf32> to vector<8x128xbf16>
    %c0_176 = arith.constant 0 : index
    %c0_177 = arith.constant 0 : index
    %508 = vector.load %arg5[%c0_176, %c0_177] : memref<128x384xbf16, #tpu.memory_space<vmem>>, vector<128x384xbf16>
    %cst_178 = arith.constant dense<0.000000e+00> : vector<8x384xf32>
    %509 = tpu.matmul %507, %508, %cst_178 {dimension_numbers = #tpu.dot_dimension_numbers<[1], [0], [0], [1], [0, 0, 1, 1], [], []>} : vector<8x128xbf16>, vector<128x384xbf16>, vector<8x384xf32> -> vector<8x384xf32>
    %510 = vector.extract_strided_slice %494 {offsets = [0, 0], sizes = [8, 256], strides = [1, 1]} : vector<8x384xf32> to vector<8x256xf32>
    %511 = vector.extract_strided_slice %506 {offsets = [0, 0], sizes = [8, 256], strides = [1, 1]} : vector<8x384xf32> to vector<8x256xf32>
    %512 = arith.addf %510, %511 : vector<8x256xf32>
    %513 = arith.negf %512 : vector<8x256xf32>
    %514 = math.exp %513 : vector<8x256xf32>
    %cst_179 = arith.constant 1.000000e+00 : f32
    %515 = vector.broadcast %cst_179 : f32 to vector<8x256xf32>
    %516 = arith.addf %515, %514 : vector<8x256xf32>
    %517 = arith.divf %515, %516 : vector<8x256xf32>
    %518 = vector.extract_strided_slice %496 {offsets = [0, 0], sizes = [8, 256], strides = [1, 1]} : vector<8x384xf32> to vector<8x256xf32>
    %519 = vector.extract_strided_slice %509 {offsets = [0, 0], sizes = [8, 256], strides = [1, 1]} : vector<8x384xf32> to vector<8x256xf32>
    %520 = arith.addf %518, %519 : vector<8x256xf32>
    %521 = arith.negf %520 : vector<8x256xf32>
    %522 = math.exp %521 : vector<8x256xf32>
    %cst_180 = arith.constant 1.000000e+00 : f32
    %523 = vector.broadcast %cst_180 : f32 to vector<8x256xf32>
    %524 = arith.addf %523, %522 : vector<8x256xf32>
    %525 = arith.divf %523, %524 : vector<8x256xf32>
    %526 = vector.extract_strided_slice %517 {offsets = [0, 0], sizes = [8, 128], strides = [1, 1]} : vector<8x256xf32> to vector<8x128xf32>
    %527 = vector.extract_strided_slice %517 {offsets = [0, 128], sizes = [8, 128], strides = [1, 1]} : vector<8x256xf32> to vector<8x128xf32>
    %528 = vector.extract_strided_slice %525 {offsets = [0, 0], sizes = [8, 128], strides = [1, 1]} : vector<8x256xf32> to vector<8x128xf32>
    %529 = vector.extract_strided_slice %525 {offsets = [0, 128], sizes = [8, 128], strides = [1, 1]} : vector<8x256xf32> to vector<8x128xf32>
    %530 = vector.extract_strided_slice %494 {offsets = [0, 256], sizes = [8, 128], strides = [1, 1]} : vector<8x384xf32> to vector<8x128xf32>
    %531 = vector.extract_strided_slice %506 {offsets = [0, 256], sizes = [8, 128], strides = [1, 1]} : vector<8x384xf32> to vector<8x128xf32>
    %532 = arith.addf %531, %4 : vector<8x128xf32>
    %533 = arith.mulf %526, %532 : vector<8x128xf32>
    %534 = arith.addf %530, %533 : vector<8x128xf32>
    %535 = math.tanh %534 : vector<8x128xf32>
    %536 = vector.extract_strided_slice %496 {offsets = [0, 256], sizes = [8, 128], strides = [1, 1]} : vector<8x384xf32> to vector<8x128xf32>
    %537 = vector.extract_strided_slice %509 {offsets = [0, 256], sizes = [8, 128], strides = [1, 1]} : vector<8x384xf32> to vector<8x128xf32>
    %538 = arith.addf %537, %7 : vector<8x128xf32>
    %539 = arith.mulf %528, %538 : vector<8x128xf32>
    %540 = arith.addf %536, %539 : vector<8x128xf32>
    %541 = math.tanh %540 : vector<8x128xf32>
    %cst_181 = arith.constant 1.000000e+00 : f32
    %542 = vector.broadcast %cst_181 : f32 to vector<8x128xf32>
    %543 = arith.subf %542, %527 : vector<8x128xf32>
    %544 = arith.mulf %543, %535 : vector<8x128xf32>
    %545 = arith.mulf %527, %502 : vector<8x128xf32>
    %546 = arith.addf %544, %545 : vector<8x128xf32>
    %cst_182 = arith.constant 1.000000e+00 : f32
    %547 = vector.broadcast %cst_182 : f32 to vector<8x128xf32>
    %548 = arith.subf %547, %529 : vector<8x128xf32>
    %549 = arith.mulf %548, %541 : vector<8x128xf32>
    %550 = arith.mulf %529, %503 : vector<8x128xf32>
    %551 = arith.addf %549, %550 : vector<8x128xf32>
    %cst_183 = arith.constant 0.000000e+00 : f32
    %552 = vector.broadcast %cst_183 : f32 to vector<8x128xf32>
    %553 = arith.cmpf ogt, %498, %552 : vector<8x128xf32>
    %cst_184 = arith.constant 0.000000e+00 : f32
    %554 = vector.broadcast %cst_184 : f32 to vector<8x128xf32>
    %555 = arith.cmpf ogt, %500, %554 : vector<8x128xf32>
    %556 = arith.select %553, %546, %502 : vector<8x128xi1>, vector<8x128xf32>
    %557 = arith.select %555, %551, %503 : vector<8x128xi1>, vector<8x128xf32>
    %558 = tpu.concatenate %556, %557 in 1 : vector<8x128xf32>, vector<8x128xf32> -> vector<8x256xf32>
    %c0_185 = arith.constant 0 : index
    %c0_186 = arith.constant 0 : index
    %559 = vector.load %arg9[%c0_185, %c0_186] : memref<8x256xf32, #tpu.memory_space<vmem>>, vector<8x256xf32>
    tpu.vector_store %arg9[%c0_185, %c0_186], %558 {strides = array<i32>} : memref<8x256xf32, #tpu.memory_space<vmem>>, vector<8x256xf32>,
    %cst_187 = arith.constant 0.000000e+00 : f32
    %560 = vector.broadcast %cst_187 : f32 to vector<8x128xf32>
    %561 = arith.select %553, %546, %560 : vector<8x128xi1>, vector<8x128xf32>
    %562 = arith.index_cast %489 : i32 to index
    %c0_188 = arith.constant 0 : index
    %563 = vector.load %arg10[%562, %c0_188] : memref<64x256xf32, #tpu.memory_space<vmem>>, vector<8x128xf32>
    tpu.vector_store %arg10[%562, %c0_188], %561 {strides = array<i32>} : memref<64x256xf32, #tpu.memory_space<vmem>>, vector<8x128xf32>,
    %cst_189 = arith.constant 0.000000e+00 : f32
    %564 = vector.broadcast %cst_189 : f32 to vector<8x128xf32>
    %565 = arith.select %555, %551, %564 : vector<8x128xi1>, vector<8x128xf32>
    %566 = arith.index_cast %492 : i32 to index
    %c128_190 = arith.constant 128 : index
    %567 = vector.load %arg10[%566, %c128_190] : memref<64x256xf32, #tpu.memory_space<vmem>>, vector<8x128xf32>
    tpu.vector_store %arg10[%566, %c128_190], %565 {strides = array<i32>} : memref<64x256xf32, #tpu.memory_space<vmem>>, vector<8x128xf32>,
    %c7_i32_191 = arith.constant 7 : i32
    %c8_i32_192 = arith.constant 8 : i32
    %568 = arith.muli %c7_i32_191, %c8_i32_192 : i32
    %569 = tpu.assume_multiple %568, 8 : i32
    %c7_i32_193 = arith.constant 7 : i32
    %570 = arith.subi %c7_i32_193, %c7_i32_191 : i32
    %c8_i32_194 = arith.constant 8 : i32
    %571 = arith.muli %570, %c8_i32_194 : i32
    %572 = tpu.assume_multiple %571, 8 : i32
    %573 = arith.index_cast %569 : i32 to index
    %c0_195 = arith.constant 0 : index
    %574 = vector.load %arg1[%573, %c0_195] : memref<64x768xf32, #tpu.memory_space<vmem>>, vector<8x384xf32>
    %575 = arith.index_cast %572 : i32 to index
    %c384_196 = arith.constant 384 : index
    %576 = vector.load %arg1[%575, %c384_196] : memref<64x768xf32, #tpu.memory_space<vmem>>, vector<8x384xf32>
    %577 = arith.index_cast %569 : i32 to index
    %c0_197 = arith.constant 0 : index
    %578 = vector.load %arg2[%577, %c0_197] : memref<64x128xf32, #tpu.memory_space<vmem>>, vector<8x128xf32>
    %579 = arith.index_cast %572 : i32 to index
    %c0_198 = arith.constant 0 : index
    %580 = vector.load %arg2[%579, %c0_198] : memref<64x128xf32, #tpu.memory_space<vmem>>, vector<8x128xf32>
    %c0_199 = arith.constant 0 : index
    %c0_200 = arith.constant 0 : index
    %581 = vector.load %arg9[%c0_199, %c0_200] : memref<8x256xf32, #tpu.memory_space<vmem>>, vector<8x256xf32>
    %582 = vector.extract_strided_slice %581 {offsets = [0, 0], sizes = [8, 128], strides = [1, 1]} : vector<8x256xf32> to vector<8x128xf32>
    %583 = vector.extract_strided_slice %581 {offsets = [0, 128], sizes = [8, 128], strides = [1, 1]} : vector<8x256xf32> to vector<8x128xf32>
    %584 = arith.truncf %582 : vector<8x128xf32> to vector<8x128xbf16>
    %c0_201 = arith.constant 0 : index
    %c0_202 = arith.constant 0 : index
    %585 = vector.load %arg4[%c0_201, %c0_202] : memref<128x384xbf16, #tpu.memory_space<vmem>>, vector<128x384xbf16>
    %cst_203 = arith.constant dense<0.000000e+00> : vector<8x384xf32>
    %586 = tpu.matmul %584, %585, %cst_203 {dimension_numbers = #tpu.dot_dimension_numbers<[1], [0], [0], [1], [0, 0, 1, 1], [], []>} : vector<8x128xbf16>, vector<128x384xbf16>, vector<8x384xf32> -> vector<8x384xf32>
    %587 = arith.truncf %583 : vector<8x128xf32> to vector<8x128xbf16>
    %c0_204 = arith.constant 0 : index
    %c0_205 = arith.constant 0 : index
    %588 = vector.load %arg5[%c0_204, %c0_205] : memref<128x384xbf16, #tpu.memory_space<vmem>>, vector<128x384xbf16>
    %cst_206 = arith.constant dense<0.000000e+00> : vector<8x384xf32>
    %589 = tpu.matmul %587, %588, %cst_206 {dimension_numbers = #tpu.dot_dimension_numbers<[1], [0], [0], [1], [0, 0, 1, 1], [], []>} : vector<8x128xbf16>, vector<128x384xbf16>, vector<8x384xf32> -> vector<8x384xf32>
    %590 = vector.extract_strided_slice %574 {offsets = [0, 0], sizes = [8, 256], strides = [1, 1]} : vector<8x384xf32> to vector<8x256xf32>
    %591 = vector.extract_strided_slice %586 {offsets = [0, 0], sizes = [8, 256], strides = [1, 1]} : vector<8x384xf32> to vector<8x256xf32>
    %592 = arith.addf %590, %591 : vector<8x256xf32>
    %593 = arith.negf %592 : vector<8x256xf32>
    %594 = math.exp %593 : vector<8x256xf32>
    %cst_207 = arith.constant 1.000000e+00 : f32
    %595 = vector.broadcast %cst_207 : f32 to vector<8x256xf32>
    %596 = arith.addf %595, %594 : vector<8x256xf32>
    %597 = arith.divf %595, %596 : vector<8x256xf32>
    %598 = vector.extract_strided_slice %576 {offsets = [0, 0], sizes = [8, 256], strides = [1, 1]} : vector<8x384xf32> to vector<8x256xf32>
    %599 = vector.extract_strided_slice %589 {offsets = [0, 0], sizes = [8, 256], strides = [1, 1]} : vector<8x384xf32> to vector<8x256xf32>
    %600 = arith.addf %598, %599 : vector<8x256xf32>
    %601 = arith.negf %600 : vector<8x256xf32>
    %602 = math.exp %601 : vector<8x256xf32>
    %cst_208 = arith.constant 1.000000e+00 : f32
    %603 = vector.broadcast %cst_208 : f32 to vector<8x256xf32>
    %604 = arith.addf %603, %602 : vector<8x256xf32>
    %605 = arith.divf %603, %604 : vector<8x256xf32>
    %606 = vector.extract_strided_slice %597 {offsets = [0, 0], sizes = [8, 128], strides = [1, 1]} : vector<8x256xf32> to vector<8x128xf32>
    %607 = vector.extract_strided_slice %597 {offsets = [0, 128], sizes = [8, 128], strides = [1, 1]} : vector<8x256xf32> to vector<8x128xf32>
    %608 = vector.extract_strided_slice %605 {offsets = [0, 0], sizes = [8, 128], strides = [1, 1]} : vector<8x256xf32> to vector<8x128xf32>
    %609 = vector.extract_strided_slice %605 {offsets = [0, 128], sizes = [8, 128], strides = [1, 1]} : vector<8x256xf32> to vector<8x128xf32>
    %610 = vector.extract_strided_slice %574 {offsets = [0, 256], sizes = [8, 128], strides = [1, 1]} : vector<8x384xf32> to vector<8x128xf32>
    %611 = vector.extract_strided_slice %586 {offsets = [0, 256], sizes = [8, 128], strides = [1, 1]} : vector<8x384xf32> to vector<8x128xf32>
    %612 = arith.addf %611, %4 : vector<8x128xf32>
    %613 = arith.mulf %606, %612 : vector<8x128xf32>
    %614 = arith.addf %610, %613 : vector<8x128xf32>
    %615 = math.tanh %614 : vector<8x128xf32>
    %616 = vector.extract_strided_slice %576 {offsets = [0, 256], sizes = [8, 128], strides = [1, 1]} : vector<8x384xf32> to vector<8x128xf32>
    %617 = vector.extract_strided_slice %589 {offsets = [0, 256], sizes = [8, 128], strides = [1, 1]} : vector<8x384xf32> to vector<8x128xf32>
    %618 = arith.addf %617, %7 : vector<8x128xf32>
    %619 = arith.mulf %608, %618 : vector<8x128xf32>
    %620 = arith.addf %616, %619 : vector<8x128xf32>
    %621 = math.tanh %620 : vector<8x128xf32>
    %cst_209 = arith.constant 1.000000e+00 : f32
    %622 = vector.broadcast %cst_209 : f32 to vector<8x128xf32>
    %623 = arith.subf %622, %607 : vector<8x128xf32>
    %624 = arith.mulf %623, %615 : vector<8x128xf32>
    %625 = arith.mulf %607, %582 : vector<8x128xf32>
    %626 = arith.addf %624, %625 : vector<8x128xf32>
    %cst_210 = arith.constant 1.000000e+00 : f32
    %627 = vector.broadcast %cst_210 : f32 to vector<8x128xf32>
    %628 = arith.subf %627, %609 : vector<8x128xf32>
    %629 = arith.mulf %628, %621 : vector<8x128xf32>
    %630 = arith.mulf %609, %583 : vector<8x128xf32>
    %631 = arith.addf %629, %630 : vector<8x128xf32>
    %cst_211 = arith.constant 0.000000e+00 : f32
    %632 = vector.broadcast %cst_211 : f32 to vector<8x128xf32>
    %633 = arith.cmpf ogt, %578, %632 : vector<8x128xf32>
    %cst_212 = arith.constant 0.000000e+00 : f32
    %634 = vector.broadcast %cst_212 : f32 to vector<8x128xf32>
    %635 = arith.cmpf ogt, %580, %634 : vector<8x128xf32>
    %636 = arith.select %633, %626, %582 : vector<8x128xi1>, vector<8x128xf32>
    %637 = arith.select %635, %631, %583 : vector<8x128xi1>, vector<8x128xf32>
    %638 = tpu.concatenate %636, %637 in 1 : vector<8x128xf32>, vector<8x128xf32> -> vector<8x256xf32>
    %c0_213 = arith.constant 0 : index
    %c0_214 = arith.constant 0 : index
    %639 = vector.load %arg9[%c0_213, %c0_214] : memref<8x256xf32, #tpu.memory_space<vmem>>, vector<8x256xf32>
    tpu.vector_store %arg9[%c0_213, %c0_214], %638 {strides = array<i32>} : memref<8x256xf32, #tpu.memory_space<vmem>>, vector<8x256xf32>,
    %cst_215 = arith.constant 0.000000e+00 : f32
    %640 = vector.broadcast %cst_215 : f32 to vector<8x128xf32>
    %641 = arith.select %633, %626, %640 : vector<8x128xi1>, vector<8x128xf32>
    %642 = arith.index_cast %569 : i32 to index
    %c0_216 = arith.constant 0 : index
    %643 = vector.load %arg10[%642, %c0_216] : memref<64x256xf32, #tpu.memory_space<vmem>>, vector<8x128xf32>
    tpu.vector_store %arg10[%642, %c0_216], %641 {strides = array<i32>} : memref<64x256xf32, #tpu.memory_space<vmem>>, vector<8x128xf32>,
    %cst_217 = arith.constant 0.000000e+00 : f32
    %644 = vector.broadcast %cst_217 : f32 to vector<8x128xf32>
    %645 = arith.select %635, %631, %644 : vector<8x128xi1>, vector<8x128xf32>
    %646 = arith.index_cast %572 : i32 to index
    %c128_218 = arith.constant 128 : index
    %647 = vector.load %arg10[%646, %c128_218] : memref<64x256xf32, #tpu.memory_space<vmem>>, vector<8x128xf32>
    tpu.vector_store %arg10[%646, %c128_218], %645 {strides = array<i32>} : memref<64x256xf32, #tpu.memory_space<vmem>>, vector<8x128xf32>,
    %c8_i32_219 = arith.constant 8 : i32
    %c0_220 = arith.constant 0 : index
    %c0_221 = arith.constant 0 : index
    %648 = vector.load %arg10[%c0_220, %c0_221] : memref<64x256xf32, #tpu.memory_space<vmem>>, vector<64x128xf32>
    %c0_222 = arith.constant 0 : index
    %c128_223 = arith.constant 128 : index
    %649 = vector.load %arg10[%c0_222, %c128_223] : memref<64x256xf32, #tpu.memory_space<vmem>>, vector<64x128xf32>
    %650 = arith.addf %648, %649 : vector<64x128xf32>
    %c0_224 = arith.constant 0 : index
    %c0_225 = arith.constant 0 : index
    %651 = vector.load %arg7[%c0_224, %c0_225] : memref<64x128xf32, #tpu.memory_space<vmem>>, vector<64x128xf32>
    tpu.vector_store %arg7[%c0_224, %c0_225], %650 {strides = array<i32>} : memref<64x128xf32, #tpu.memory_space<vmem>>, vector<64x128xf32>,
    %c0_226 = arith.constant 0 : index
    %c0_227 = arith.constant 0 : index
    %652 = vector.load %arg9[%c0_226, %c0_227] : memref<8x256xf32, #tpu.memory_space<vmem>>, vector<8x256xf32>
    %c0_228 = arith.constant 0 : index
    %c0_229 = arith.constant 0 : index
    %653 = vector.load %arg8[%c0_228, %c0_229] : memref<8x256xf32, #tpu.memory_space<vmem>>, vector<8x256xf32>
    tpu.vector_store %arg8[%c0_228, %c0_229], %652 {strides = array<i32>} : memref<8x256xf32, #tpu.memory_space<vmem>>, vector<8x256xf32>,
    return
  }
  func.func @transform_0(%arg0: i32) -> (i32, i32) {
    %c0_i32 = arith.constant 0 : i32
    %c0_i32_0 = arith.constant 0 : i32
    %c0_i32_1 = arith.constant 0 : i32
    return %c0_i32, %c0_i32_0 : i32, i32
  }
  func.func @transform_1(%arg0: i32) -> (i32, i32) {
    %c0_i32 = arith.constant 0 : i32
    %c0_i32_0 = arith.constant 0 : i32
    %c0_i32_1 = arith.constant 0 : i32
    return %c0_i32, %c0_i32_0 : i32, i32
  }
  func.func @transform_2(%arg0: i32) -> (i32, i32) {
    %c0_i32 = arith.constant 0 : i32
    %c0_i32_0 = arith.constant 0 : i32
    %c0_i32_1 = arith.constant 0 : i32
    return %c0_i32, %c0_i32_0 : i32, i32
  }
  func.func @transform_3(%arg0: i32) -> (i32, i32) {
    %c0_i32 = arith.constant 0 : i32
    %c0_i32_0 = arith.constant 0 : i32
    %c0_i32_1 = arith.constant 0 : i32
    return %c0_i32, %c0_i32_0 : i32, i32
  }
  func.func @transform_4(%arg0: i32) -> (i32, i32) {
    %c0_i32 = arith.constant 0 : i32
    %c0_i32_0 = arith.constant 0 : i32
    %c0_i32_1 = arith.constant 0 : i32
    return %c0_i32, %c0_i32_0 : i32, i32
  }
  func.func @transform_5(%arg0: i32) -> (i32, i32) {
    %c0_i32 = arith.constant 0 : i32
    %c0_i32_0 = arith.constant 0 : i32
    %c0_i32_1 = arith.constant 0 : i32
    return %c0_i32, %c0_i32_0 : i32, i32
  }
  func.func @transform_6(%arg0: i32) -> (i32, i32) {
    %c0_i32 = arith.constant 0 : i32
    %c0_i32_0 = arith.constant 0 : i32
    %c0_i32_1 = arith.constant 0 : i32
    return %c0_i32, %c0_i32_0 : i32, i32
  }
  func.func @transform_7(%arg0: i32) -> (i32, i32) {
    %c0_i32 = arith.constant 0 : i32
    %c0_i32_0 = arith.constant 0 : i32
    %c0_i32_1 = arith.constant 0 : i32
    return %c0_i32, %c0_i32_0 : i32, i32
  }
}

</mosaic_0001>

<bundles_post_ra>
// kernel: tpu_custom_call.1
= control target key start
LH: loop header
LB: loop body
LE: loop exit
PB: predicated region body
PF: predicated region fallthrough
CT: control target
= control target key end

     0   :  { %13 = vsyncpa [#allocation5], 0  ;;  %s7105_s0 = inlined_call_operand.hbm [shape: f32[64,768], index: 0, kind: input, shape index: {}]   ;;  %s7106_s1 = inlined_call_operand.hbm [shape: f32[64,128], index: 1, kind: input, shape index: {}]   ;;  %s7107_s2 = inlined_call_operand.hbm [shape: f32[8,256], index: 2, kind: input, shape index: {}]   ;;  %s7108_s3 = inlined_call_operand.hbm [shape: bf16[128,384], index: 3, kind: input, shape index: {}]   ;;  %s7109_s4 = inlined_call_operand.hbm [shape: bf16[128,384], index: 4, kind: input, shape index: {}]   ;;  %s7110_s5 = inlined_call_operand.vmem [shape: f32[1,256], index: 5, kind: input, shape index: {}]   ;;  %s7111_s6 = inlined_call_operand.hbm [shape: f32[64,128], index: 6, kind: output, shape index: {0}]   ;;  %s7112_s7 = inlined_call_operand.hbm [shape: f32[8,256], index: 7, kind: output, shape index: {1}]  }
   0x1   :  { %14 = vsyncpa [#allocation8], 0 }
   0x2   :  { %15 = vsyncpa [#allocation11], 0 }
   0x3   :  { %16 = vsyncpa [#allocation6], 0 }
   0x4   :  { %17 = vsyncpa [#allocation15], 0  ;;  %s6140_s24 = smov [#allocation7]   ;;  %s5976_s28 = scalar_lea.hbm %s7106_s1, 1024 }
   0x5   :  { %s35_s25 = sshll.u32 %s6140_s24, 4  ;;  %p5977_p0 = scmp.ne.s32.totalorder %s7106_s1, %s5976_s28  ;;  %s36_s25 = int_to_ptr.vmem [resolvable:$true] %s35_s25 }
   0x6   :  { %p5980_p1 = scmp.lt.u32.totalorder %s5976_s28, %s7106_s1 }
   0x8   :  { %p5982_p2 = pnand %p5980_p1, %p5977_p0 }
   0xa   :  { %5985 = shalt.err (!%p5982_p2)
}
   0xb   :  { %s5986_s10 = scalar_lea.vmem %s36_s25, 1024  ;;  %p5991_p4 = scmp.lt.s32.totalorder %s36_s25, %s36_s25 }
   0xc   :  { %p5987_p3 = scmp.ne.s32.totalorder %s36_s25, %s5986_s10  ;;  %p5992_p5 = scmp.lt.s32.totalorder %s5986_s10, %s5986_s10 }
   0xe   :  { %p5993_p6 = por %p5992_p5, %p5991_p4 }
  0x10   :  { %p5994_p7 = pnand %p5993_p6, %p5987_p3 }
  0x12   :  { %5997 = shalt.err (!%p5994_p7)
}
  0x13   :  { %s6141_s11 = smov 128   ;;  %s6142_s12 = smov 8  }
  0x14   :  { %41 = dma.hbm_to_vmem [thread:$0]  %s7106_s1, 1024, %s36_s25, [#allocation8], %s6141_s11, %s6141_s11, %s6142_s12  }
  0x15   :  { %s6143_s15 = smov [#allocation10]   ;;  %s5998_s19 = scalar_lea.hbm %s7108_s3, 3072 }
  0x16   :  { %s57_s16 = sshll.u32 %s6143_s15, 4  ;;  %p5999_p8 = scmp.ne.s32.totalorder %s7108_s3, %s5998_s19  ;;  %s58_s16 = int_to_ptr.vmem [resolvable:$true] %s57_s16 }
  0x17   :  { %p6002_p9 = scmp.lt.u32.totalorder %s5998_s19, %s7108_s3 }
  0x19   :  { %p6004_p10 = pnand %p6002_p9, %p5999_p8 }
  0x1b   :  { %6007 = shalt.err (!%p6004_p10)
}
  0x1c   :  { %s6008_s24 = scalar_lea.vmem %s58_s16, 3072  ;;  %p6013_p12 = scmp.lt.s32.totalorder %s58_s16, %s58_s16 }
  0x1d   :  { %p6009_p11 = scmp.ne.s32.totalorder %s58_s16, %s6008_s24  ;;  %p6014_p13 = scmp.lt.s32.totalorder %s6008_s24, %s6008_s24 }
  0x1f   :  { %p6015_p0 = por %p6014_p13, %p6013_p12 }
  0x21   :  { %p6016_p1 = pnand %p6015_p0, %p6009_p11 }
  0x23   :  { %6019 = shalt.err (!%p6016_p1)
}
  0x24   :  { %s6144_s1 = smov 192   ;;  %s6145_s25 = smov 12  }
  0x25   :  { %63 = dma.hbm_to_vmem [thread:$0]  %s7108_s3, 3072, %s58_s16, [#allocation11], %s6144_s1, %s6144_s1, %s6145_s25  }
  0x26   :  { %s6146_s28 = smov [#allocation4]   ;;  %s6020_s9 = scalar_lea.hbm %s7105_s0, 6144 }
  0x27   :  { %s23_s29 = sshll.u32 %s6146_s28, 4  ;;  %p6021_p2 = scmp.ne.s32.totalorder %s7105_s0, %s6020_s9  ;;  %s24_s29 = int_to_ptr.vmem [resolvable:$true] %s23_s29 }
  0x28   :  { %p6024_p3 = scmp.lt.u32.totalorder %s6020_s9, %s7105_s0 }
  0x2a   :  { %p6026_p4 = pnand %p6024_p3, %p6021_p2 }
  0x2c   :  { %6029 = shalt.err (!%p6026_p4)
}
  0x2d   :  { %s6030_s17 = scalar_lea.vmem %s24_s29, 6144  ;;  %p6035_p6 = scmp.lt.s32.totalorder %s24_s29, %s24_s29 }
  0x2e   :  { %p6031_p5 = scmp.ne.s32.totalorder %s24_s29, %s6030_s17  ;;  %p6036_p7 = scmp.lt.s32.totalorder %s6030_s17, %s6030_s17 }
  0x30   :  { %p6037_p8 = por %p6036_p7, %p6035_p6 }
  0x32   :  { %p6038_p9 = pnand %p6037_p8, %p6031_p5 }
  0x34   :  { %6041 = shalt.err (!%p6038_p9)
}
  0x35   :  { %s6147_s3 = smov 768   ;;  %s6148_s16 = smov 48  }
  0x36   :  { %29 = dma.hbm_to_vmem [thread:$0]  %s7105_s0, 6144, %s24_s29, [#allocation5], %s6147_s3, %s6147_s3, %s6148_s16  }
  0x37   :  { %s6149_s20 = smov [#allocation9]   ;;  %s6150_s22 = smov [#allocation12]  }
  0x38   :  { %s48_s21 = sshll.u32 %s6149_s20, 4  ;;  %s69_s23 = sshll.u32 %s6150_s22, 4  ;;  %s49_s21 = int_to_ptr.vmem [resolvable:$true] %s48_s21  ;;  %s70_s23 = int_to_ptr.vmem [resolvable:$true] %s69_s23 }
  0x39   :  { %s6042_s27 = scalar_lea.hbm %s7107_s2, 256 }
  0x3a   :  { %p6043_p10 = scmp.ne.s32.totalorder %s7107_s2, %s6042_s27  ;;  %p6046_p11 = scmp.lt.u32.totalorder %s6042_s27, %s7107_s2 }
  0x3c   :  { %p6048_p12 = pnand %p6046_p11, %p6043_p10 }
  0x3e   :  { %6051 = shalt.err (!%p6048_p12)
}
  0x3f   :  { %s6052_s0 = scalar_lea.vmem %s49_s21, 256  ;;  %p6057_p0 = scmp.lt.s32.totalorder %s49_s21, %s49_s21 }
  0x40   :  { %p6053_p13 = scmp.ne.s32.totalorder %s49_s21, %s6052_s0  ;;  %p6058_p1 = scmp.lt.s32.totalorder %s6052_s0, %s6052_s0 }
  0x42   :  { %p6059_p2 = por %p6058_p1, %p6057_p0 }
  0x44   :  { %p6060_p3 = pnand %p6059_p2, %p6053_p13 }
  0x46   :  { %6063 = shalt.err (!%p6060_p3)
}
  0x47   :  { %51 = dma.hbm_to_vmem [thread:$0]  %s7107_s2, 256, %s49_s21, [#allocation8]  }
  0x48   :  { %s6064_s15 = scalar_lea.hbm %s7109_s4, 3072 }
  0x49   :  { %p6065_p4 = scmp.ne.s32.totalorder %s7109_s4, %s6064_s15  ;;  %p6068_p5 = scmp.lt.u32.totalorder %s6064_s15, %s7109_s4 }
  0x4b   :  { %p6070_p6 = pnand %p6068_p5, %p6065_p4 }
  0x4d   :  { %6073 = shalt.err (!%p6070_p6)
}
  0x4e   :  { %s6074_s19 = scalar_lea.vmem %s70_s23, 3072  ;;  %p6079_p8 = scmp.lt.s32.totalorder %s70_s23, %s70_s23 }
  0x4f   :  { %p6075_p7 = scmp.ne.s32.totalorder %s70_s23, %s6074_s19  ;;  %p6080_p9 = scmp.lt.s32.totalorder %s6074_s19, %s6074_s19 }
  0x51   :  { %p6081_p10 = por %p6080_p9, %p6079_p8 }
  0x53   :  { %p6082_p11 = pnand %p6081_p10, %p6075_p7 }
  0x55   :  { %6085 = shalt.err (!%p6082_p11)
}
  0x56   :  { %75 = dma.hbm_to_vmem [thread:$0]  %s7109_s4, 3072, %s70_s23, [#allocation11], %s6144_s1, %s6144_s1, %s6145_s25  }
  0x57   :  { %6130 = dma.done.wait [#allocation5], 6144  }
  0x58   :  { %6131 = vsyncadd [#allocation5], 4294961152 }
  0x59   :  { %6132 = dma.done.wait [#allocation8], 1280  }
  0x5a   :  { %6133 = vsyncadd [#allocation8], 4294966016 }
  0x5b   :  { %6134 = dma.done.wait [#allocation11], 6144  }
  0x5c   :  { %6135 = vsyncadd [#allocation11], 4294961152  ;;  %v6151_v0 = vmov 0.0   ;;  %v6152_v1 = vmov 0   ;;  %vm6153_vm0 = vmmov 0   ;;  %v6318_v23 = vld [vmem:[#allocation9] sm:$0xff] }
  0x5d   :  { %5196 = vmatprep.subr.bf16.mxu1 %v6151_v0  ;;  %322 = vmatprep.mubr.bf16.mxu0 %v6152_v1  ;;  %v6269_v2 = vld [vmem:[#allocation10 + $0x4] ss:$12 sps:$4 sm:$0xff]   ;;  %v6271_v3 = vld [vmem:[#allocation10] ss:$12 sps:$4 sm:$0xff]   ;;  %v6274_v4 = vld [vmem:[#allocation10 + $0x1c] ss:$12 sps:$4 sm:$0xff]   ;;  %v129_v26 = vpack.c.bf16 %v6318_v23, %v6318_v23 }
  0x5e   :  { %5212 = vmatprep.mubr.msk.bf16.mxu1 %vm6153_vm0, %v6151_v0  ;;  %290 = vmatprep.subr.bf16.mxu0 %v6269_v2  ;;  %v6277_v5 = vld [vmem:[#allocation10 + $0x18] ss:$12 sps:$4 sm:$0xff]   ;;  %v6280_v6 = vld [vmem:[#allocation10 + $0x34] ss:$12 sps:$4 sm:$0xff]   ;;  %v6283_v7 = vld [vmem:[#allocation10 + $0x30] ss:$12 sps:$4 sm:$0xff]  }
  0x5f   :  { %291 = vmatpush1.bf16.msra.mxu0 %v6271_v3  ;;  %v6286_v8 = vld [vmem:[#allocation10 + $0x4c] ss:$12 sps:$4 sm:$0xff]   ;;  %v5552_v9 = vld [vmem:[#allocation10 + $0x8] ss:$12 sps:$4 sm:$0xff]   ;;  %v6292_v11 = vld [vmem:[#allocation10 + $0x64] ss:$12 sps:$4 sm:$0xff]  }
  0x60   :  { %292 = vmatprep.subr.bf16.mxu0 %v6274_v4  ;;  %v6289_v10 = vld [vmem:[#allocation10 + $0x48] ss:$12 sps:$4 sm:$0xff]   ;;  %5197 = vmatpush3.bf16.msra.mxu1 %v5552_v9  ;;  %v5556_v12 = vld [vmem:[#allocation10 + $0x20] ss:$12 sps:$4 sm:$0xff]   ;;  %v5558_v14 = vld [vmem:[#allocation10 + $0x38] ss:$12 sps:$4 sm:$0xff]  }
  0x61   :  { %5198 = vmatprep.subr.bf16.mxu1 %v6151_v0  ;;  %v6295_v13 = vld [vmem:[#allocation10 + $0x60] ss:$12 sps:$4 sm:$0xff]   ;;  %v6299_v15 = vld [vmem:[#allocation10 + $0x7c] ss:$12 sps:$4 sm:$0xff]   ;;  %v6303_v16 = vld [vmem:[#allocation10 + $0x78] ss:$12 sps:$4 sm:$0xff]  }
  0x62   :  { %v5562_v17 = vld [vmem:[#allocation10 + $0x50] ss:$12 sps:$4 sm:$0xff]   ;;  %v6306_v18 = vld [vmem:[#allocation10 + $0x94] ss:$12 sps:$4 sm:$0xff]   ;;  %v6313_v21 = vld [vmem:[#allocation10 + $0xac] ss:$12 sps:$4 sm:$0xff]  }
  0x63   :  { %293 = vmatpush1.bf16.msra.mxu0 %v6277_v5  ;;  %v6309_v19 = vld [vmem:[#allocation10 + $0x90] ss:$12 sps:$4 sm:$0xff]   ;;  %v5566_v20 = vld [vmem:[#allocation10 + $0x68] ss:$12 sps:$4 sm:$0xff]   ;;  %v5570_v24 = vld [vmem:[#allocation10 + $0x80] ss:$12 sps:$4 sm:$0xff]  }
  0x64   :  { %294 = vmatprep.subr.bf16.mxu0 %v6280_v6  ;;  %5199 = vmatpush3.bf16.msra.mxu1 %v5556_v12  ;;  %v6316_v22 = vld [vmem:[#allocation10 + $0xa8] ss:$12 sps:$4 sm:$0xff]   ;;  %v6322_v25 = vld [vmem:[#allocation12 + $0x4] ss:$12 sps:$4 sm:$0xff]   ;;  %v6328_v27 = vld [vmem:[#allocation12] ss:$12 sps:$4 sm:$0xff]  }
  0x65   :  { %5200 = vmatprep.subr.bf16.mxu1 %v6151_v0  ;;  %v5574_v28 = vld [vmem:[#allocation10 + $0x98] ss:$12 sps:$4 sm:$0xff]   ;;  %v6331_v29 = vld [vmem:[#allocation12 + $0x1c] ss:$12 sps:$4 sm:$0xff]   ;;  %v6338_v32 = vld [vmem:[#allocation12 + $0x34] ss:$12 sps:$4 sm:$0xff]  }
  0x66   :  { %v6334_v30 = vld [vmem:[#allocation12 + $0x18] ss:$12 sps:$4 sm:$0xff]   ;;  %v5578_v31 = vld [vmem:[#allocation10 + $0xb0] ss:$12 sps:$4 sm:$0xff]   ;;  %v5585_v35 = vld [vmem:[#allocation12 + $0x8] ss:$12 sps:$4 sm:$0xff]  }
  0x67   :  { %295 = vmatpush1.bf16.msra.mxu0 %v6283_v7  ;;  %v6341_v33 = vld [vmem:[#allocation12 + $0x30] ss:$12 sps:$4 sm:$0xff]   ;;  %v6344_v34 = vld [vmem:[#allocation12 + $0x4c] ss:$12 sps:$4 sm:$0xff]   ;;  %v6349_v36 = vld [vmem:[#allocation12 + $0x48] ss:$12 sps:$4 sm:$0xff]  }
  0x68   :  { %296 = vmatprep.subr.bf16.mxu0 %v6286_v8  ;;  %5201 = vmatpush3.bf16.msra.mxu1 %v5558_v14  ;;  %v5589_v37 = vld [vmem:[#allocation12 + $0x20] ss:$12 sps:$4 sm:$0xff]   ;;  %v6351_v38 = vld [vmem:[#allocation12 + $0x64] ss:$12 sps:$4 sm:$0xff]   ;;  %v6360_v41 = vld [vmem:[#allocation12 + $0x7c] ss:$12 sps:$4 sm:$0xff]  }
  0x69   :  { %5202 = vmatprep.subr.bf16.mxu1 %v6151_v0  ;;  %v6356_v39 = vld [vmem:[#allocation12 + $0x60] ss:$12 sps:$4 sm:$0xff]   ;;  %v5590_v40 = vld [vmem:[#allocation12 + $0x38] ss:$12 sps:$4 sm:$0xff]   ;;  %v5591_v43 = vld [vmem:[#allocation12 + $0x50] ss:$12 sps:$4 sm:$0xff]  }
  0x6a   :  { %v6365_v42 = vld [vmem:[#allocation12 + $0x78] ss:$12 sps:$4 sm:$0xff]   ;;  %v6367_v44 = vld [vmem:[#allocation12 + $0x94] ss:$12 sps:$4 sm:$0xff]   ;;  %v6372_v45 = vld [vmem:[#allocation12 + $0x90] ss:$12 sps:$4 sm:$0xff]  }
  0x6b   :  { %297 = vmatpush1.bf16.msra.mxu0 %v6289_v10  ;;  %v5592_v46 = vld [vmem:[#allocation12 + $0x68] ss:$12 sps:$4 sm:$0xff]   ;;  %v6374_v47 = vld [vmem:[#allocation12 + $0xac] ss:$12 sps:$4 sm:$0xff]   ;;  %v5595_v53 = vld [vmem:[#allocation12 + $0xb0] ss:$12 sps:$4 sm:$0xff]  }
  0x6c   :  { %298 = vmatprep.subr.bf16.mxu0 %v6292_v11  ;;  %5203 = vmatpush3.bf16.msra.mxu1 %v5562_v17  ;;  %v6379_v48 = vld [vmem:[#allocation12 + $0xa8] ss:$12 sps:$4 sm:$0xff]   ;;  %v6381_v49 = vld [vmem:[#allocation9 + $0x8] sm:$0xff]  ;;  %v5593_v50 = vld [vmem:[#allocation12 + $0x80] ss:$12 sps:$4 sm:$0xff]   ;;  %s6155_s0 = smov [#allocation13]  }
  0x6d   :  { %5204 = vmatprep.subr.bf16.mxu1 %v6151_v0  ;;  %v5594_v51 = vld [vmem:[#allocation12 + $0x98] ss:$12 sps:$4 sm:$0xff]   ;;  %v371_v52 = vpack.c.bf16 %v6381_v49, %v6381_v49  ;;  %v5596_v54 = vld [vmem:[#allocation10 + $0x8] ss:$12 sps:$4 sm:$0xff]   ;;  %v5597_v55 = vld [vmem:[#allocation10 + $0x20] ss:$12 sps:$4 sm:$0xff]  }
  0x6e   :  { %v5598_v56 = vld [vmem:[#allocation10 + $0x38] ss:$12 sps:$4 sm:$0xff]   ;;  %v5599_v57 = vld [vmem:[#allocation10 + $0x50] ss:$12 sps:$4 sm:$0xff]   ;;  %v5600_v58 = vld [vmem:[#allocation10 + $0x68] ss:$12 sps:$4 sm:$0xff]  }
  0x6f   :  { %299 = vmatpush1.bf16.msra.mxu0 %v6295_v13  ;;  %v5601_v59 = vld [vmem:[#allocation10 + $0x80] ss:$12 sps:$4 sm:$0xff]   ;;  %v5602_v60 = vld [vmem:[#allocation10 + $0x98] ss:$12 sps:$4 sm:$0xff]   ;;  %v5603_v61 = vld [vmem:[#allocation10 + $0xb0] ss:$12 sps:$4 sm:$0xff]  }
  0x70   :  { %300 = vmatprep.subr.bf16.mxu0 %v6299_v15  ;;  %5205 = vmatpush3.bf16.msra.mxu1 %v5566_v20  ;;  %v115_v62 = vld [vmem:[#allocation4] sm:$0xff]  ;;  %s4592_s29 = sshll.u32 %s6155_s0, 4  ;;  %s7071_s29 = int_to_ptr.vmem [resolvable:$true] %s4592_s29 }
  0x71   :  { %5206 = vmatprep.subr.bf16.mxu1 %v6151_v0  ;;  %v6423_v17 = vld [vmem:[%s7110_s5] ss:$0 sm:$0xff] }
  0x73   :  { %301 = vmatpush1.bf16.msra.mxu0 %v6303_v16 }
  0x74   :  { %302 = vmatprep.subr.bf16.mxu0 %v6306_v18  ;;  %5207 = vmatpush3.bf16.msra.mxu1 %v5570_v24  ;;  %v121_v24 = vld [vmem:[#allocation4 + $0x168] sm:$0xff] }
  0x75   :  { %5208 = vmatprep.subr.bf16.mxu1 %v6151_v0 }
  0x77   :  { %303 = vmatpush1.bf16.msra.mxu0 %v6309_v19 }
  0x78   :  { %304 = vmatprep.subr.bf16.mxu0 %v6313_v21  ;;  %5209 = vmatpush3.bf16.msra.mxu1 %v5574_v28 }
  0x79   :  { %5210 = vmatprep.subr.bf16.mxu1 %v6151_v0 }
  0x7b   :  { %305 = vmatpush1.bf16.msra.mxu0 %v6316_v22 }
  0x7c   :  { %532 = vmatprep.subr.bf16.mxu0 %v6322_v25  ;;  %5211 = vmatpush3.bf16.msra.mxu1 %v5578_v31  ;;  %v122_v31 = vld [vmem:[#allocation4 + $0x170] sm:$0xff] }
  0x7d   :  { %5216 = vmatprep.subr.bf16.mxu1 %v6151_v0 }
  0x7e   :  { %323 = vmatmul.mubr.bf16.vlgmr.msra.gmra.mrb[0].mxu0 %v129_v26 }
  0x7f   :  { %533 = vmatpush1.bf16.msra.mxu0 %v6328_v27  ;;  %564 = vmatprep.mubr.bf16.mxu0 %v6152_v1 }
  0x80   :  { %534 = vmatprep.subr.bf16.mxu0 %v6331_v29  ;;  %5213 = vmatmul.mubr.bf16.vlgmr.msra.gmra.mrb[0].mxu1 %v129_v26 }
  0x81   :  { %5217 = vmatpush3.bf16.msra.mxu1 %v5585_v35  ;;  %5232 = vmatprep.mubr.msk.bf16.mxu1 %vm6153_vm0, %v6151_v0 }
  0x82   :  { %5218 = vmatprep.subr.bf16.mxu1 %v6151_v0 }
  0x83   :  { %535 = vmatpush1.bf16.msra.mxu0 %v6334_v30 }
  0x84   :  { %536 = vmatprep.subr.bf16.mxu0 %v6338_v32 }
  0x85   :  { %5219 = vmatpush3.bf16.msra.mxu1 %v5589_v37 }
  0x86   :  { %5220 = vmatprep.subr.bf16.mxu1 %v6151_v0 }
  0x87   :  { %537 = vmatpush1.bf16.msra.mxu0 %v6341_v33 }
  0x88   :  { %538 = vmatprep.subr.bf16.mxu0 %v6344_v34 }
  0x89   :  { %5221 = vmatpush3.bf16.msra.mxu1 %v5590_v40 }
  0x8a   :  { %5222 = vmatprep.subr.bf16.mxu1 %v6151_v0 }
  0x8b   :  { %539 = vmatpush1.bf16.msra.mxu0 %v6349_v36 }
  0x8c   :  { %540 = vmatprep.subr.bf16.mxu0 %v6351_v38 }
  0x8d   :  { %5223 = vmatpush3.bf16.msra.mxu1 %v5591_v43 }
  0x8e   :  { %5224 = vmatprep.subr.bf16.mxu1 %v6151_v0 }
  0x8f   :  { %541 = vmatpush1.bf16.msra.mxu0 %v6356_v39 }
  0x90   :  { %542 = vmatprep.subr.bf16.mxu0 %v6360_v41 }
  0x91   :  { %5225 = vmatpush3.bf16.msra.mxu1 %v5592_v46 }
  0x92   :  { %5226 = vmatprep.subr.bf16.mxu1 %v6151_v0 }
  0x93   :  { %543 = vmatpush1.bf16.msra.mxu0 %v6365_v42 }
  0x94   :  { %544 = vmatprep.subr.bf16.mxu0 %v6367_v44 }
  0x95   :  { %5227 = vmatpush3.bf16.msra.mxu1 %v5593_v50 }
  0x96   :  { %5228 = vmatprep.subr.bf16.mxu1 %v6151_v0 }
  0x97   :  { %545 = vmatpush1.bf16.msra.mxu0 %v6372_v45 }
  0x98   :  { %546 = vmatprep.subr.bf16.mxu0 %v6374_v47 }
  0x99   :  { %5229 = vmatpush3.bf16.msra.mxu1 %v5594_v51 }
  0x9a   :  { %5230 = vmatprep.subr.bf16.mxu1 %v6151_v0 }
  0x9b   :  { %547 = vmatpush1.bf16.msra.mxu0 %v6379_v48 }
  0x9c   :  { %852 = vmatprep.subr.bf16.mxu0 %v6269_v2 }
  0x9d   :  { %5231 = vmatpush3.bf16.msra.mxu1 %v5595_v53 }
  0x9e   :  { %565 = vmatmul.mubr.bf16.vlgmr.msra.gmra.mrb[4].mxu0 %v371_v52  ;;  %5236 = vmatprep.subr.bf16.mxu1 %v6151_v0 }
  0x9f   :  { %853 = vmatpush1.bf16.msra.mxu0 %v6271_v3  ;;  %884 = vmatprep.mubr.bf16.mxu0 %v6152_v1  ;;  %v116_v3 = vld [vmem:[#allocation4 + $0x8] sm:$0xff] }
  0xa0   :  { %854 = vmatprep.subr.bf16.mxu0 %v6274_v4  ;;  %5233 = vmatmul.mubr.bf16.vlgmr.msra.gmra.mrb[4].mxu1 %v371_v52 }
  0xa1   :  { %5252 = vmatprep.mubr.msk.bf16.mxu1 %vm6153_vm0, %v6151_v0  ;;  %5237 = vmatpush3.bf16.msra.mxu1 %v5596_v54 }
  0xa2   :  { %5238 = vmatprep.subr.bf16.mxu1 %v6151_v0 }
  0xa3   :  { %855 = vmatpush1.bf16.msra.mxu0 %v6277_v5 }
  0xa4   :  { %856 = vmatprep.subr.bf16.mxu0 %v6280_v6 }
  0xa5   :  { %5239 = vmatpush3.bf16.msra.mxu1 %v5597_v55  ;;  %v124_v55 = vld [vmem:[#allocation7] sm:$0xff] }
  0xa6   :  { %5240 = vmatprep.subr.bf16.mxu1 %v6151_v0  ;;  %vm657_vm1 = vcmp.gt.f32.partialorder %v124_v55, 0.0  ;;  %v5631_v55 = vld [vmem:[#allocation10 + $0xb0] ss:$12 sps:$4 sm:$0xff]  }
  0xa7   :  { %857 = vmatpush1.bf16.msra.mxu0 %v6283_v7 }
  0xa8   :  { %858 = vmatprep.subr.bf16.mxu0 %v6286_v8 }
  0xa9   :  { %5241 = vmatpush3.bf16.msra.mxu1 %v5598_v56 }
  0xaa   :  { %5242 = vmatprep.subr.bf16.mxu1 %v6151_v0 }
  0xab   :  { %859 = vmatpush1.bf16.msra.mxu0 %v6289_v10 }
  0xac   :  { %860 = vmatprep.subr.bf16.mxu0 %v6292_v11 }
  0xad   :  { %5243 = vmatpush3.bf16.msra.mxu1 %v5599_v57 }
  0xae   :  { %5244 = vmatprep.subr.bf16.mxu1 %v6151_v0 }
  0xaf   :  { %861 = vmatpush1.bf16.msra.mxu0 %v6295_v13 }
  0xb0   :  { %862 = vmatprep.subr.bf16.mxu0 %v6299_v15 }
  0xb1   :  { %5245 = vmatpush3.bf16.msra.mxu1 %v5600_v58 }
  0xb2   :  { %5246 = vmatprep.subr.bf16.mxu1 %v6151_v0 }
  0xb3   :  { %863 = vmatpush1.bf16.msra.mxu0 %v6303_v16 }
  0xb4   :  { %864 = vmatprep.subr.bf16.mxu0 %v6306_v18 }
  0xb5   :  { %5247 = vmatpush3.bf16.msra.mxu1 %v5601_v59 }
  0xb6   :  { %5248 = vmatprep.subr.bf16.mxu1 %v6151_v0 }
  0xb7   :  { %865 = vmatpush1.bf16.msra.mxu0 %v6309_v19 }
  0xb8   :  { %866 = vmatprep.subr.bf16.mxu0 %v6313_v21  ;;  %v117_v21 = vld [vmem:[#allocation4 + $0x10] sm:$0xff] }
  0xb9   :  { %5249 = vmatpush3.bf16.msra.mxu1 %v5602_v60 }
  0xba   :  { %5250 = vmatprep.subr.bf16.mxu1 %v6151_v0 }
  0xbb   :  { %867 = vmatpush1.bf16.msra.mxu0 %v6316_v22 }
  0xbc   :  { %1094 = vmatprep.subr.bf16.mxu0 %v6322_v25 }
  0xbd   :  { %5251 = vmatpush3.bf16.msra.mxu1 %v5603_v61 }
  0xbe   :  { %5256 = vmatprep.subr.bf16.mxu1 %v6151_v0 }
 0x151   :  { %v324_v63 = vpop.f32.mrb[0].mxu0 }
 0x152   :  { %v613_v2 = vadd.f32 %v324_v63, %v115_v62  ;;  %v326_v4 = vpop.f32.mrb[1].mxu0 }
 0x153   :  { %v328_v5 = vpop.f32.mrb[2].mxu0  ;;  %v614_v8 = vadd.f32 %v326_v4, %v116_v3  ;;  %v365_v10 = vpop.f32.mrb[0].mxu1  ;;  %v5604_v4 = vld [vmem:[#allocation12 + $0x8] ss:$12 sps:$4 sm:$0xff]  }
 0x154   :  { %v4684_v6 = vmul.f32 -1.442695, %v613_v2  ;;  %v329_v7 = vpop.f32.mrb[3].mxu0  ;;  %v5214_v11 = vpop.f32.mrb[1].mxu1  ;;  %v641_v19 = vadd.f32 %v6423_v17, %v365_v10  ;;  %v123_v10 = vld [vmem:[#allocation4 + $0x178] sm:$0xff] }
 0x155   :  { %v4685_v9 = vmul.f32 -1.442695, %v614_v8  ;;  %v368_v12 = vpop.f32.mrb[2].mxu1  ;;  %v5607_v11 = vld [vmem:[#allocation12 + $0x50] ss:$12 sps:$4 sm:$0xff]  }
 0x156   :  { %5804 = vpow2.f32 %v4684_v6  ;;  %v5215_v13 = vpop.f32.mrb[3].mxu1  ;;  %v5605_v6 = vld [vmem:[#allocation12 + $0x20] ss:$12 sps:$4 sm:$0xff]  }
 0x157   :  { %5806 = vpow2.f32 %v4685_v9  ;;  %v5608_v13 = vld [vmem:[#allocation12 + $0x68] ss:$12 sps:$4 sm:$0xff]  }
 0x160   :  { %v5805_v14 = vpop.eup %5804 }
 0x161   :  { %v621_v15 = vadd.f32 1.0, %v5805_v14  ;;  %v5807_v16 = vpop.eup %5806 }
 0x162   :  { %v622_v18 = vadd.f32 1.0, %v5807_v16 }
 0x163   :  { %5808 = vrcp.f32 %v621_v15 }
 0x164   :  { %5810 = vrcp.f32 %v622_v18 }
 0x16d   :  { %v5809_v20 = vpop.eup %5808 }
 0x16e   :  { %v642_v22 = vmul.f32 %v5809_v20, %v641_v19  ;;  %v5811_v50 = vpop.eup %5810  ;;  %v5968_v19 = vld [vmem:[#allocation10 + $0x34] ss:$12 sps:$4 sm:$0xff]   ;;  %v5969_v20 = vld [vmem:[#allocation10 + $0x30] ss:$12 sps:$4 sm:$0xff]  }
 0x16f   :  { %v649_v54 = vsub.f32 1.0, %v5811_v50  ;;  %v651_v59 = vmul.f32 %v5811_v50, %v6318_v23  ;;  %v6494_v50 = vld [vmem:[#allocation10 + $0x94] ss:$12 sps:$4 sm:$0xff]  }
 0x170   :  { %v643_v25 = vadd.f32 %v642_v22, %v117_v21  ;;  %v5970_v21 = vld [vmem:[#allocation10 + $0x4c] ss:$12 sps:$4 sm:$0xff]   ;;  %v5971_v22 = vld [vmem:[#allocation10 + $0x48] ss:$12 sps:$4 sm:$0xff]  }
 0x171   :  { %v566_v26 = vpop.f32.mrb[4].mxu0 }
 0x172   :  { %5812 = vtanh.f32 %v643_v25  ;;  %v627_v28 = vadd.f32 %v566_v26, %v121_v24  ;;  %v568_v35 = vpop.f32.mrb[5].mxu0  ;;  %v5612_v24 = vld [vmem:[#allocation10 + $0x8] ss:$12 sps:$4 sm:$0xff]   ;;  %v5613_v25 = vld [vmem:[#allocation10 + $0x20] ss:$12 sps:$4 sm:$0xff]  }
 0x173   :  { %v570_v37 = vpop.f32.mrb[6].mxu0  ;;  %v628_v46 = vadd.f32 %v568_v35, %v122_v31  ;;  %v607_v52 = vpop.f32.mrb[4].mxu1  ;;  %v5614_v26 = vld [vmem:[#allocation10 + $0x38] ss:$12 sps:$4 sm:$0xff]   ;;  %v6483_v35 = vld [vmem:[#allocation10 + $0x60] ss:$12 sps:$4 sm:$0xff]  }
 0x174   :  { %v4686_v40 = vmul.f32 -1.442695, %v627_v28  ;;  %v571_v43 = vpop.f32.mrb[7].mxu0  ;;  %v5234_v53 = vpop.f32.mrb[5].mxu1  ;;  %v5615_v28 = vld [vmem:[#allocation10 + $0x50] ss:$12 sps:$4 sm:$0xff]  }
 0x175   :  { %v4687_v51 = vmul.f32 -1.442695, %v628_v46  ;;  %v610_v56 = vpop.f32.mrb[6].mxu1  ;;  %v6480_v31 = vld [vmem:[#allocation10 + $0x64] ss:$12 sps:$4 sm:$0xff]  }
 0x176   :  { %5814 = vpow2.f32 %v4686_v40  ;;  %v5235_v58 = vpop.f32.mrb[7].mxu1  ;;  %v5619_v37 = vld [vmem:[#allocation10 + $0x68] ss:$12 sps:$4 sm:$0xff]   ;;  %v6490_v43 = vld [vmem:[#allocation10 + $0x78] ss:$12 sps:$4 sm:$0xff]  }
 0x177   :  { %5816 = vpow2.f32 %v4687_v51  ;;  %v6487_v40 = vld [vmem:[#allocation10 + $0x7c] ss:$12 sps:$4 sm:$0xff]   ;;  %v5623_v46 = vld [vmem:[#allocation10 + $0x80] ss:$12 sps:$4 sm:$0xff]   ;;  %v6508_v56 = vld [vmem:[#allocation12 + $0x4] ss:$12 sps:$4 sm:$0xff]  }
 0x178   :  { %v6497_v51 = vld [vmem:[#allocation10 + $0x90] ss:$12 sps:$4 sm:$0xff]   ;;  %v6501_v53 = vld [vmem:[#allocation10 + $0xac] ss:$12 sps:$4 sm:$0xff]  }
 0x17c   :  { %v5813_v57 = vpop.eup %5812 }
 0x17d   :  { %v650_v60 = vmul.f32 %v5813_v57, %v649_v54  ;;  %v6504_v54 = vld [vmem:[#allocation10 + $0xa8] ss:$12 sps:$4 sm:$0xff]   ;;  %v676_v57 = vld [vmem:[#allocation4 + $0x30] sm:$0xff] }
 0x17f   :  { %v652_v61 = vadd.f32 %v651_v59, %v650_v60 }
 0x180   :  { %v5815_v62 = vpop.eup %5814 }
 0x181   :  { %v635_v63 = vadd.f32 1.0, %v5815_v62  ;;  %v6428_v2 = vsel %vm657_vm1, %v652_v61, %v6318_v23  ;;  %v6430_v3 = vsel %vm657_vm1, %v652_v61, 0.0  ;;  %v5817_v7 = vpop.eup %5816  ;;  %v6440_v23 = vld [vmem:[%s7110_s5 + $0x1] ss:$0 sm:$0xff]  ;;  %v677_v61 = vld [vmem:[#allocation4 + $0x38] sm:$0xff] }
 0x182   :  { %v691_v5 = vpack.c.bf16 %v6428_v2, %v6428_v2  ;;  %v636_v8 = vadd.f32 1.0, %v5817_v7 }
 0x183   :  { %5818 = vrcp.f32 %v635_v63 }
 0x184   :  { %885 = vmatmul.mubr.bf16.vlgmr.msra.gmra.mrb[8].mxu0 %v691_v5  ;;  %5253 = vmatmul.mubr.bf16.vlgmr.msra.gmra.mrb[8].mxu1 %v691_v5  ;;  %5820 = vrcp.f32 %v636_v8 }
 0x185   :  { %1095 = vmatpush1.bf16.msra.mxu0 %v6328_v27  ;;  %5257 = vmatpush3.bf16.msra.mxu1 %v5604_v4  ;;  %v5606_v27 = vld [vmem:[#allocation12 + $0x38] ss:$12 sps:$4 sm:$0xff]  }
 0x186   :  { %1096 = vmatprep.subr.bf16.mxu0 %v6331_v29  ;;  %5258 = vmatprep.subr.bf16.mxu1 %v6151_v0  ;;  %v645_v29 = vadd.f32 %v6440_v23, %v607_v52  ;;  %v5627_v52 = vld [vmem:[#allocation10 + $0x98] ss:$12 sps:$4 sm:$0xff]  }
 0x187   :  { %1126 = vmatprep.mubr.bf16.mxu0 %v6152_v1  ;;  %5272 = vmatprep.mubr.msk.bf16.mxu1 %vm6153_vm0, %v6151_v0 }
 0x189   :  { %1097 = vmatpush1.bf16.msra.mxu0 %v6334_v30  ;;  %5259 = vmatpush3.bf16.msra.mxu1 %v5605_v6 }
 0x18a   :  { %1098 = vmatprep.subr.bf16.mxu0 %v6338_v32  ;;  %5260 = vmatprep.subr.bf16.mxu1 %v6151_v0  ;;  %v5609_v32 = vld [vmem:[#allocation12 + $0x80] ss:$12 sps:$4 sm:$0xff]  }
 0x18d   :  { %v5819_v9 = vpop.eup %5818  ;;  %1099 = vmatpush1.bf16.msra.mxu0 %v6341_v33  ;;  %5261 = vmatpush3.bf16.msra.mxu1 %v5606_v27 }
 0x18e   :  { %v646_v12 = vmul.f32 %v5819_v9, %v645_v29  ;;  %1100 = vmatprep.subr.bf16.mxu0 %v6344_v34  ;;  %5262 = vmatprep.subr.bf16.mxu1 %v6151_v0  ;;  %v5821_v33 = vpop.eup %5820  ;;  %v5610_v34 = vld [vmem:[#allocation12 + $0x98] ss:$12 sps:$4 sm:$0xff]  }
 0x190   :  { %v647_v30 = vadd.f32 %v646_v12, %v123_v10 }
 0x191   :  { %1101 = vmatpush1.bf16.msra.mxu0 %v6349_v36  ;;  %5263 = vmatpush3.bf16.msra.mxu1 %v5607_v11  ;;  %v653_v36 = vsub.f32 1.0, %v5821_v33 }
 0x192   :  { %5822 = vtanh.f32 %v647_v30  ;;  %1102 = vmatprep.subr.bf16.mxu0 %v6351_v38  ;;  %5264 = vmatprep.subr.bf16.mxu1 %v6151_v0  ;;  %v126_v38 = vld [vmem:[#allocation7 + $0x38] sm:$0xff] }
 0x193   :  { %vm658_vm2 = vcmp.gt.f32.partialorder %v126_v38, 0.0 }
 0x195   :  { %1103 = vmatpush1.bf16.msra.mxu0 %v6356_v39  ;;  %5265 = vmatpush3.bf16.msra.mxu1 %v5608_v13  ;;  %v655_v39 = vmul.f32 %v5821_v33, %v6381_v49 }
 0x196   :  { %1104 = vmatprep.subr.bf16.mxu0 %v6360_v41  ;;  %5266 = vmatprep.subr.bf16.mxu1 %v6151_v0  ;;  %v5611_v41 = vld [vmem:[#allocation12 + $0xb0] ss:$12 sps:$4 sm:$0xff]  }
 0x199   :  { %1105 = vmatpush1.bf16.msra.mxu0 %v6365_v42  ;;  %5267 = vmatpush3.bf16.msra.mxu1 %v5609_v32  ;;  %v678_v32 = vld [vmem:[#allocation4 + $0x40] sm:$0xff] }
 0x19a   :  { %1106 = vmatprep.subr.bf16.mxu0 %v6367_v44  ;;  %5268 = vmatprep.subr.bf16.mxu1 %v6151_v0 }
 0x19c   :  { %v5823_v14 = vpop.eup %5822 }
 0x19d   :  { %v654_v15 = vmul.f32 %v5823_v14, %v653_v36  ;;  %1107 = vmatpush1.bf16.msra.mxu0 %v6372_v45  ;;  %5269 = vmatpush3.bf16.msra.mxu1 %v5610_v34  ;;  %v5964_v45 = vld [vmem:[#allocation10 + $0x4] ss:$12 sps:$4 sm:$0xff]   ;;  %v682_v34 = vld [vmem:[#allocation4 + $0x138] sm:$0xff] }
 0x19e   :  { %1108 = vmatprep.subr.bf16.mxu0 %v6374_v47  ;;  %5270 = vmatprep.subr.bf16.mxu1 %v6151_v0  ;;  %v5965_v47 = vld [vmem:[#allocation10] ss:$12 sps:$4 sm:$0xff]  }
 0x19f   :  { %v656_v42 = vadd.f32 %v655_v39, %v654_v15  ;;  %v683_v15 = vld [vmem:[#allocation4 + $0x140] sm:$0xff] }
 0x1a1   :  { %1109 = vmatpush1.bf16.msra.mxu0 %v6379_v48  ;;  %5271 = vmatpush3.bf16.msra.mxu1 %v5611_v41  ;;  %v6467_v44 = vsel %vm658_vm2, %v656_v42, %v6381_v49  ;;  %v6469_v16 = vsel %vm658_vm2, %v656_v42, 0.0  ;;  %v5966_v48 = vld [vmem:[#allocation10 + $0x1c] ss:$12 sps:$4 sm:$0xff]   ;;  %v5967_v49 = vld [vmem:[#allocation10 + $0x18] ss:$12 sps:$4 sm:$0xff]  }
 0x1a2   :  { %v933_v18 = vpack.c.bf16 %v6467_v44, %v6467_v44  ;;  %1414 = vmatprep.subr.bf16.mxu0 %v5964_v45  ;;  %5276 = vmatprep.subr.bf16.mxu1 %v6151_v0 }
 0x1a4   :  { %1127 = vmatmul.mubr.bf16.vlgmr.msra.gmra.mrb[12].mxu0 %v933_v18  ;;  %5273 = vmatmul.mubr.bf16.vlgmr.msra.gmra.mrb[12].mxu1 %v933_v18 }
 0x1a5   :  { %1415 = vmatpush1.bf16.msra.mxu0 %v5965_v47  ;;  %1446 = vmatprep.mubr.bf16.mxu0 %v6152_v1 }
 0x1a6   :  { %1416 = vmatprep.subr.bf16.mxu0 %v5966_v48  ;;  %5292 = vmatprep.mubr.msk.bf16.mxu1 %vm6153_vm0, %v6151_v0 }
 0x1a7   :  { %5277 = vmatpush3.bf16.msra.mxu1 %v5612_v24  ;;  %v686_v24 = vld [vmem:[#allocation7 + $0x8] sm:$0xff] }
 0x1a8   :  { %5278 = vmatprep.subr.bf16.mxu1 %v6151_v0  ;;  %vm1219_vm3 = vcmp.gt.f32.partialorder %v686_v24, 0.0 }
 0x1a9   :  { %1417 = vmatpush1.bf16.msra.mxu0 %v5967_v49 }
 0x1aa   :  { %1418 = vmatprep.subr.bf16.mxu0 %v5968_v19 }
 0x1ab   :  { %5279 = vmatpush3.bf16.msra.mxu1 %v5613_v25 }
 0x1ac   :  { %5280 = vmatprep.subr.bf16.mxu1 %v6151_v0 }
 0x1ad   :  { %1419 = vmatpush1.bf16.msra.mxu0 %v5969_v20 }
 0x1ae   :  { %1420 = vmatprep.subr.bf16.mxu0 %v5970_v21 }
 0x1af   :  { %5281 = vmatpush3.bf16.msra.mxu1 %v5614_v26 }
 0x1b0   :  { %5282 = vmatprep.subr.bf16.mxu1 %v6151_v0 }
 0x1b1   :  { %1421 = vmatpush1.bf16.msra.mxu0 %v5971_v22 }
 0x1b2   :  { %1422 = vmatprep.subr.bf16.mxu0 %v6480_v31 }
 0x1b3   :  { %5283 = vmatpush3.bf16.msra.mxu1 %v5615_v28 }
 0x1b4   :  { %5284 = vmatprep.subr.bf16.mxu1 %v6151_v0 }
 0x1b5   :  { %1423 = vmatpush1.bf16.msra.mxu0 %v6483_v35 }
 0x1b6   :  { %1424 = vmatprep.subr.bf16.mxu0 %v6487_v40 }
 0x1b7   :  { %5285 = vmatpush3.bf16.msra.mxu1 %v5619_v37 }
 0x1b8   :  { %5286 = vmatprep.subr.bf16.mxu1 %v6151_v0 }
 0x1b9   :  { %1425 = vmatpush1.bf16.msra.mxu0 %v6490_v43 }
 0x1ba   :  { %1426 = vmatprep.subr.bf16.mxu0 %v6494_v50 }
 0x1bb   :  { %5287 = vmatpush3.bf16.msra.mxu1 %v5623_v46 }
 0x1bc   :  { %5288 = vmatprep.subr.bf16.mxu1 %v6151_v0 }
 0x1bd   :  { %1427 = vmatpush1.bf16.msra.mxu0 %v6497_v51 }
 0x1be   :  { %1428 = vmatprep.subr.bf16.mxu0 %v6501_v53 }
 0x1bf   :  { %5289 = vmatpush3.bf16.msra.mxu1 %v5627_v52 }
 0x1c0   :  { %5290 = vmatprep.subr.bf16.mxu1 %v6151_v0 }
 0x1c1   :  { %1429 = vmatpush1.bf16.msra.mxu0 %v6504_v54 }
 0x1c2   :  { %1656 = vmatprep.subr.bf16.mxu0 %v6508_v56 }
 0x1c3   :  { %5291 = vmatpush3.bf16.msra.mxu1 %v5631_v55 }
 0x1c4   :  { %5296 = vmatprep.subr.bf16.mxu1 %v6151_v0 }
 0x257   :  { %v886_v58 = vpop.f32.mrb[8].mxu0  ;;  %v927_v59 = vpop.f32.mrb[8].mxu1 }
 0x258   :  { %v1175_v60 = vadd.f32 %v886_v58, %v676_v57  ;;  %v888_v62 = vpop.f32.mrb[9].mxu0  ;;  %v5254_v63 = vpop.f32.mrb[9].mxu1  ;;  %v1203_v30 = vadd.f32 %v6423_v17, %v927_v59  ;;  %v6519_v58 = vld [vmem:[#allocation12] ss:$12 sps:$4 sm:$0xff]   ;;  %v5635_v59 = vld [vmem:[#allocation12 + $0x8] ss:$12 sps:$4 sm:$0xff]  }
 0x259   :  { %v890_v4 = vpop.f32.mrb[10].mxu0  ;;  %v930_v5 = vpop.f32.mrb[10].mxu1  ;;  %v1176_v8 = vadd.f32 %v888_v62, %v677_v61  ;;  %v6523_v61 = vld [vmem:[#allocation12 + $0x1c] ss:$12 sps:$4 sm:$0xff]   ;;  %v6526_v62 = vld [vmem:[#allocation12 + $0x18] ss:$12 sps:$4 sm:$0xff]  }
 0x25a   :  { %v4736_v6 = vmul.f32 -1.442695, %v1175_v60  ;;  %v891_v7 = vpop.f32.mrb[11].mxu0  ;;  %v5255_v27 = vpop.f32.mrb[11].mxu1  ;;  %v6530_v63 = vld [vmem:[#allocation12 + $0x34] ss:$12 sps:$4 sm:$0xff]  }
 0x25b   :  { %v4737_v29 = vmul.f32 -1.442695, %v1176_v8  ;;  %v6536_v5 = vld [vmem:[#allocation12 + $0x30] ss:$12 sps:$4 sm:$0xff]   ;;  %v6540_v27 = vld [vmem:[#allocation12 + $0x4c] ss:$12 sps:$4 sm:$0xff]  }
 0x25c   :  { %5824 = vpow2.f32 %v4736_v6  ;;  %v5643_v6 = vld [vmem:[#allocation12 + $0x38] ss:$12 sps:$4 sm:$0xff]  }
 0x25d   :  { %5826 = vpow2.f32 %v4737_v29 }
 0x266   :  { %v5825_v9 = vpop.eup %5824 }
 0x267   :  { %v1183_v10 = vadd.f32 1.0, %v5825_v9  ;;  %v5827_v11 = vpop.eup %5826  ;;  %v684_v9 = vld [vmem:[#allocation4 + $0x148] sm:$0xff] }
 0x268   :  { %v1184_v12 = vadd.f32 1.0, %v5827_v11  ;;  %v5647_v11 = vld [vmem:[#allocation12 + $0x50] ss:$12 sps:$4 sm:$0xff]  }
 0x269   :  { %5828 = vrcp.f32 %v1183_v10  ;;  %v6544_v10 = vld [vmem:[#allocation12 + $0x48] ss:$12 sps:$4 sm:$0xff]  }
 0x26a   :  { %5830 = vrcp.f32 %v1184_v12 }
 0x273   :  { %v5829_v13 = vpop.eup %5828 }
 0x274   :  { %v1204_v33 = vmul.f32 %v5829_v13, %v1203_v30  ;;  %v5831_v20 = vpop.eup %5830  ;;  %v6548_v30 = vld [vmem:[#allocation12 + $0x64] ss:$12 sps:$4 sm:$0xff]  }
 0x275   :  { %v1211_v22 = vsub.f32 1.0, %v5831_v20  ;;  %v1213_v26 = vmul.f32 %v5831_v20, %v6428_v2 }
 0x276   :  { %v1205_v36 = vadd.f32 %v1204_v33, %v678_v32  ;;  %v6551_v32 = vld [vmem:[#allocation12 + $0x60] ss:$12 sps:$4 sm:$0xff]   ;;  %v5651_v33 = vld [vmem:[#allocation12 + $0x68] ss:$12 sps:$4 sm:$0xff]  }
 0x277   :  { %v1128_v38 = vpop.f32.mrb[12].mxu0  ;;  %v1169_v14 = vpop.f32.mrb[12].mxu1 }
 0x278   :  { %5832 = vtanh.f32 %v1205_v36  ;;  %v1189_v39 = vadd.f32 %v1128_v38, %v682_v34  ;;  %v1130_v41 = vpop.f32.mrb[13].mxu0  ;;  %v5274_v42 = vpop.f32.mrb[13].mxu1  ;;  %v1207_v8 = vadd.f32 %v6440_v23, %v1169_v14  ;;  %v6555_v34 = vld [vmem:[#allocation12 + $0x7c] ss:$12 sps:$4 sm:$0xff]   ;;  %v6558_v36 = vld [vmem:[#allocation12 + $0x78] ss:$12 sps:$4 sm:$0xff]  }
 0x279   :  { %v1132_v18 = vpop.f32.mrb[14].mxu0  ;;  %v1172_v45 = vpop.f32.mrb[14].mxu1  ;;  %v1190_v19 = vadd.f32 %v1130_v41, %v683_v15  ;;  %v5655_v38 = vld [vmem:[#allocation12 + $0x80] ss:$12 sps:$4 sm:$0xff]   ;;  %v6565_v15 = vld [vmem:[#allocation12 + $0x90] ss:$12 sps:$4 sm:$0xff]  }
 0x27a   :  { %v4738_v47 = vmul.f32 -1.442695, %v1189_v39  ;;  %v1133_v48 = vpop.f32.mrb[15].mxu0  ;;  %v5275_v49 = vpop.f32.mrb[15].mxu1  ;;  %v6562_v14 = vld [vmem:[#allocation12 + $0x94] ss:$12 sps:$4 sm:$0xff]  }
 0x27b   :  { %v4739_v21 = vmul.f32 -1.442695, %v1190_v19  ;;  %v5659_v41 = vld [vmem:[#allocation12 + $0x98] ss:$12 sps:$4 sm:$0xff]   ;;  %v6573_v49 = vld [vmem:[#allocation12 + $0xa8] ss:$12 sps:$4 sm:$0xff]  }
 0x27c   :  { %5834 = vpow2.f32 %v4738_v47  ;;  %v6569_v42 = vld [vmem:[#allocation12 + $0xac] ss:$12 sps:$4 sm:$0xff]   ;;  %v688_v45 = vld [vmem:[#allocation7 + $0x30] sm:$0xff]  ;;  %v5663_v19 = vld [vmem:[#allocation12 + $0xb0] ss:$12 sps:$4 sm:$0xff]  }
 0x27d   :  { %5836 = vpow2.f32 %v4739_v21  ;;  %vm1220_vm4 = vcmp.gt.f32.partialorder %v688_v45, 0.0 }
 0x282   :  { %v5833_v25 = vpop.eup %5832 }
 0x283   :  { %v1212_v28 = vmul.f32 %v5833_v25, %v1211_v22 }
 0x285   :  { %v1214_v37 = vadd.f32 %v1213_v26, %v1212_v28  ;;  %v6589_v26 = vld [vmem:[#allocation10 + $0x4] ss:$12 sps:$4 sm:$0xff]   ;;  %v6591_v28 = vld [vmem:[#allocation10] ss:$12 sps:$4 sm:$0xff]  }
 0x286   :  { %v5835_v46 = vpop.eup %5834 }
 0x287   :  { %v1197_v52 = vadd.f32 1.0, %v5835_v46  ;;  %v6515_v55 = vsel %vm1219_vm3, %v1214_v37, %v6428_v2  ;;  %v6517_v57 = vsel %vm1219_vm3, %v1214_v37, 0.0  ;;  %v5639_v2 = vld [vmem:[#allocation12 + $0x20] ss:$12 sps:$4 sm:$0xff]   ;;  %v5837_v4 = vpop.eup %5836  ;;  %v6595_v37 = vld [vmem:[#allocation10 + $0x1c] ss:$12 sps:$4 sm:$0xff]  }
 0x288   :  { %v1253_v60 = vpack.c.bf16 %v6515_v55, %v6515_v55  ;;  %v1198_v7 = vadd.f32 1.0, %v5837_v4  ;;  %v6598_v46 = vld [vmem:[#allocation10 + $0x18] ss:$12 sps:$4 sm:$0xff]  }
 0x289   :  { %5838 = vrcp.f32 %v1197_v52  ;;  %v5671_v52 = vld [vmem:[#allocation10 + $0x20] ss:$12 sps:$4 sm:$0xff]  }
 0x28a   :  { %1447 = vmatmul.mubr.bf16.vlgmr.msra.gmra.mrb[16].mxu0 %v1253_v60  ;;  %5293 = vmatmul.mubr.bf16.vlgmr.msra.gmra.mrb[16].mxu1 %v1253_v60  ;;  %5840 = vrcp.f32 %v1198_v7  ;;  %v6605_v60 = vld [vmem:[#allocation10 + $0x30] ss:$12 sps:$4 sm:$0xff]   ;;  %v6609_v4 = vld [vmem:[#allocation10 + $0x4c] ss:$12 sps:$4 sm:$0xff]  }
 0x28b   :  { %1657 = vmatpush1.bf16.msra.mxu0 %v6519_v58  ;;  %5297 = vmatpush3.bf16.msra.mxu1 %v5635_v59  ;;  %v6602_v59 = vld [vmem:[#allocation10 + $0x34] ss:$12 sps:$4 sm:$0xff]   ;;  %v5679_v7 = vld [vmem:[#allocation10 + $0x50] ss:$12 sps:$4 sm:$0xff]  }
 0x28c   :  { %1658 = vmatprep.subr.bf16.mxu0 %v6523_v61  ;;  %5298 = vmatprep.subr.bf16.mxu1 %v6151_v0 }
 0x28d   :  { %1688 = vmatprep.mubr.bf16.mxu0 %v6152_v1  ;;  %5312 = vmatprep.mubr.msk.bf16.mxu1 %vm6153_vm0, %v6151_v0 }
 0x28f   :  { %1659 = vmatpush1.bf16.msra.mxu0 %v6526_v62  ;;  %5299 = vmatpush3.bf16.msra.mxu1 %v5639_v2  ;;  %v5675_v2 = vld [vmem:[#allocation10 + $0x38] ss:$12 sps:$4 sm:$0xff]  }
 0x290   :  { %1660 = vmatprep.subr.bf16.mxu0 %v6530_v63  ;;  %5300 = vmatprep.subr.bf16.mxu1 %v6151_v0 }
 0x293   :  { %v5839_v29 = vpop.eup %5838  ;;  %1661 = vmatpush1.bf16.msra.mxu0 %v6536_v5  ;;  %5301 = vmatpush3.bf16.msra.mxu1 %v5643_v6  ;;  %v6612_v6 = vld [vmem:[#allocation10 + $0x48] ss:$12 sps:$4 sm:$0xff]  }
 0x294   :  { %v1208_v12 = vmul.f32 %v5839_v29, %v1207_v8  ;;  %1662 = vmatprep.subr.bf16.mxu0 %v6540_v27  ;;  %5302 = vmatprep.subr.bf16.mxu1 %v6151_v0  ;;  %v5841_v39 = vpop.eup %5840  ;;  %v5680_v8 = vld [vmem:[#allocation10 + $0x68] ss:$12 sps:$4 sm:$0xff]   ;;  %v5681_v29 = vld [vmem:[#allocation10 + $0x80] ss:$12 sps:$4 sm:$0xff]  }
 0x295   :  { %v1215_v18 = vsub.f32 1.0, %v5841_v39  ;;  %v1217_v48 = vmul.f32 %v5841_v39, %v6467_v44  ;;  %v1239_v39 = vld [vmem:[#allocation4 + $0x68] sm:$0xff] }
 0x296   :  { %v1209_v13 = vadd.f32 %v1208_v12, %v684_v9  ;;  %v5682_v9 = vld [vmem:[#allocation10 + $0x98] ss:$12 sps:$4 sm:$0xff]   ;;  %v1238_v12 = vld [vmem:[#allocation4 + $0x60] sm:$0xff] }
 0x297   :  { %1663 = vmatpush1.bf16.msra.mxu0 %v6544_v10  ;;  %5303 = vmatpush3.bf16.msra.mxu1 %v5647_v11  ;;  %v5683_v11 = vld [vmem:[#allocation10 + $0xb0] ss:$12 sps:$4 sm:$0xff]  }
 0x298   :  { %5842 = vtanh.f32 %v1209_v13  ;;  %1664 = vmatprep.subr.bf16.mxu0 %v6548_v30  ;;  %5304 = vmatprep.subr.bf16.mxu1 %v6151_v0 }
 0x29b   :  { %1665 = vmatpush1.bf16.msra.mxu0 %v6551_v32  ;;  %5305 = vmatpush3.bf16.msra.mxu1 %v5651_v33 }
 0x29c   :  { %1666 = vmatprep.subr.bf16.mxu0 %v6555_v34  ;;  %5306 = vmatprep.subr.bf16.mxu1 %v6151_v0 }
 0x29f   :  { %1667 = vmatpush1.bf16.msra.mxu0 %v6558_v36  ;;  %5307 = vmatpush3.bf16.msra.mxu1 %v5655_v38 }
 0x2a0   :  { %1668 = vmatprep.subr.bf16.mxu0 %v6562_v14  ;;  %5308 = vmatprep.subr.bf16.mxu1 %v6151_v0 }
 0x2a2   :  { %v5843_v47 = vpop.eup %5842 }
 0x2a3   :  { %1669 = vmatpush1.bf16.msra.mxu0 %v6565_v15  ;;  %5309 = vmatpush3.bf16.msra.mxu1 %v5659_v41  ;;  %v1216_v20 = vmul.f32 %v5843_v47, %v1215_v18 }
 0x2a4   :  { %1670 = vmatprep.subr.bf16.mxu0 %v6569_v42  ;;  %5310 = vmatprep.subr.bf16.mxu1 %v6151_v0 }
 0x2a5   :  { %v1218_v21 = vadd.f32 %v1217_v48, %v1216_v20 }
 0x2a7   :  { %1671 = vmatpush1.bf16.msra.mxu0 %v6573_v49  ;;  %5311 = vmatpush3.bf16.msra.mxu1 %v5663_v19  ;;  %v6579_v22 = vsel %vm1220_vm4, %v1218_v21, %v6467_v44  ;;  %v6581_v24 = vsel %vm1220_vm4, %v1218_v21, 0.0  ;;  %v5667_v44 = vld [vmem:[#allocation10 + $0x8] ss:$12 sps:$4 sm:$0xff]  }
 0x2a8   :  { %v1495_v25 = vpack.c.bf16 %v6579_v22, %v6579_v22  ;;  %5316 = vmatprep.subr.bf16.mxu1 %v6151_v0  ;;  %1976 = vmatprep.subr.bf16.mxu0 %v6589_v26 }
 0x2aa   :  { %1689 = vmatmul.mubr.bf16.vlgmr.msra.gmra.mrb[20].mxu0 %v1495_v25  ;;  %5313 = vmatmul.mubr.bf16.vlgmr.msra.gmra.mrb[20].mxu1 %v1495_v25 }
 0x2ab   :  { %2008 = vmatprep.mubr.bf16.mxu0 %v6152_v1  ;;  %5332 = vmatprep.mubr.msk.bf16.mxu1 %vm6153_vm0, %v6151_v0 }
 0x2ac   :  { %1977 = vmatpush1.bf16.msra.mxu0 %v6591_v28  ;;  %5317 = vmatpush3.bf16.msra.mxu1 %v5667_v44 }
 0x2ad   :  { %5318 = vmatprep.subr.bf16.mxu1 %v6151_v0  ;;  %1978 = vmatprep.subr.bf16.mxu0 %v6595_v37 }
 0x2b0   :  { %1979 = vmatpush1.bf16.msra.mxu0 %v6598_v46  ;;  %5319 = vmatpush3.bf16.msra.mxu1 %v5671_v52 }
 0x2b1   :  { %5320 = vmatprep.subr.bf16.mxu1 %v6151_v0  ;;  %1980 = vmatprep.subr.bf16.mxu0 %v6602_v59 }
 0x2b4   :  { %1981 = vmatpush1.bf16.msra.mxu0 %v6605_v60  ;;  %5321 = vmatpush3.bf16.msra.mxu1 %v5675_v2 }
 0x2b5   :  { %5322 = vmatprep.subr.bf16.mxu1 %v6151_v0  ;;  %1982 = vmatprep.subr.bf16.mxu0 %v6609_v4 }
 0x2b8   :  { %1983 = vmatpush1.bf16.msra.mxu0 %v6612_v6  ;;  %5323 = vmatpush3.bf16.msra.mxu1 %v5679_v7 }
 0x2b9   :  { %1984 = vmatprep.subr.bf16.mxu0 %v6480_v31  ;;  %5324 = vmatprep.subr.bf16.mxu1 %v6151_v0 }
 0x2bc   :  { %1985 = vmatpush1.bf16.msra.mxu0 %v6483_v35  ;;  %5325 = vmatpush3.bf16.msra.mxu1 %v5680_v8 }
 0x2bd   :  { %1986 = vmatprep.subr.bf16.mxu0 %v6487_v40  ;;  %5326 = vmatprep.subr.bf16.mxu1 %v6151_v0 }
 0x2c0   :  { %1987 = vmatpush1.bf16.msra.mxu0 %v6490_v43  ;;  %5327 = vmatpush3.bf16.msra.mxu1 %v5681_v29 }
 0x2c1   :  { %1988 = vmatprep.subr.bf16.mxu0 %v6494_v50  ;;  %5328 = vmatprep.subr.bf16.mxu1 %v6151_v0 }
 0x2c4   :  { %1989 = vmatpush1.bf16.msra.mxu0 %v6497_v51  ;;  %5329 = vmatpush3.bf16.msra.mxu1 %v5682_v9  ;;  %v1240_v9 = vld [vmem:[#allocation4 + $0x70] sm:$0xff] }
 0x2c5   :  { %1990 = vmatprep.subr.bf16.mxu0 %v6501_v53  ;;  %5330 = vmatprep.subr.bf16.mxu1 %v6151_v0 }
 0x2c8   :  { %1991 = vmatpush1.bf16.msra.mxu0 %v6504_v54  ;;  %5331 = vmatpush3.bf16.msra.mxu1 %v5683_v11 }
 0x2c9   :  { %2218 = vmatprep.subr.bf16.mxu0 %v6508_v56  ;;  %5336 = vmatprep.subr.bf16.mxu1 %v6151_v0 }
 0x35d   :  { %v1448_v13 = vpop.f32.mrb[16].mxu0  ;;  %v1489_v33 = vpop.f32.mrb[16].mxu1 }
 0x35e   :  { %v1737_v38 = vadd.f32 %v1448_v13, %v1238_v12  ;;  %v1450_v41 = vpop.f32.mrb[17].mxu0  ;;  %v5294_v18 = vpop.f32.mrb[17].mxu1  ;;  %v1765_v8 = vadd.f32 %v6423_v17, %v1489_v33  ;;  %v1244_v12 = vld [vmem:[#allocation4 + $0x108] sm:$0xff] }
 0x35f   :  { %v1452_v45 = vpop.f32.mrb[18].mxu0  ;;  %v1492_v47 = vpop.f32.mrb[18].mxu1  ;;  %v1738_v21 = vadd.f32 %v1450_v41, %v1239_v39  ;;  %v1245_v41 = vld [vmem:[#allocation4 + $0x110] sm:$0xff] }
 0x360   :  { %v4788_v48 = vmul.f32 -1.442695, %v1737_v38  ;;  %v1453_v19 = vpop.f32.mrb[19].mxu0  ;;  %v5295_v20 = vpop.f32.mrb[19].mxu1 }
 0x361   :  { %v4789_v25 = vmul.f32 -1.442695, %v1738_v21 }
 0x362   :  { %5844 = vpow2.f32 %v4788_v48 }
 0x363   :  { %5846 = vpow2.f32 %v4789_v25 }
 0x36c   :  { %v5845_v44 = vpop.eup %5844 }
 0x36d   :  { %v1745_v52 = vadd.f32 1.0, %v5845_v44  ;;  %v5847_v2 = vpop.eup %5846 }
 0x36e   :  { %v1746_v7 = vadd.f32 1.0, %v5847_v2  ;;  %v1248_v2 = vld [vmem:[#allocation7 + $0x10] sm:$0xff] }
 0x36f   :  { %5848 = vrcp.f32 %v1745_v52  ;;  %vm1781_vm5 = vcmp.gt.f32.partialorder %v1248_v2, 0.0 }
 0x370   :  { %5850 = vrcp.f32 %v1746_v7 }
 0x379   :  { %v5849_v29 = vpop.eup %5848 }
 0x37a   :  { %v1766_v11 = vmul.f32 %v5849_v29, %v1765_v8  ;;  %v5851_v17 = vpop.eup %5850 }
 0x37b   :  { %v1773_v52 = vsub.f32 1.0, %v5851_v17  ;;  %v1775_v8 = vmul.f32 %v5851_v17, %v6515_v55 }
 0x37c   :  { %v1767_v13 = vadd.f32 %v1766_v11, %v1240_v9 }
 0x37d   :  { %v1690_v38 = vpop.f32.mrb[20].mxu0  ;;  %v1731_v18 = vpop.f32.mrb[20].mxu1 }
 0x37e   :  { %5852 = vtanh.f32 %v1767_v13  ;;  %v1751_v39 = vadd.f32 %v1690_v38, %v1244_v12  ;;  %v1692_v45 = vpop.f32.mrb[21].mxu0  ;;  %v5314_v47 = vpop.f32.mrb[21].mxu1 }
 0x37f   :  { %v1694_v48 = vpop.f32.mrb[22].mxu0  ;;  %v1734_v19 = vpop.f32.mrb[22].mxu1  ;;  %v1752_v44 = vadd.f32 %v1692_v45, %v1245_v41  ;;  %v5685_v45 = vld [vmem:[#allocation12 + $0x20] ss:$12 sps:$4 sm:$0xff]  }
 0x380   :  { %v4790_v20 = vmul.f32 -1.442695, %v1751_v39  ;;  %v1695_v21 = vpop.f32.mrb[23].mxu0  ;;  %v5315_v25 = vpop.f32.mrb[23].mxu1  ;;  %v5684_v39 = vld [vmem:[#allocation12 + $0x8] ss:$12 sps:$4 sm:$0xff]   ;;  %v1769_v19 = vadd.f32 %v6440_v23, %v1731_v18 }
 0x381   :  { %v4791_v33 = vmul.f32 -1.442695, %v1752_v44  ;;  %v1246_v21 = vld [vmem:[#allocation4 + $0x118] sm:$0xff]  ;;  %v5687_v25 = vld [vmem:[#allocation12 + $0x50] ss:$12 sps:$4 sm:$0xff]  }
 0x382   :  { %5854 = vpow2.f32 %v4790_v20  ;;  %v5689_v23 = vld [vmem:[#allocation12 + $0x80] ss:$12 sps:$4 sm:$0xff]  }
 0x383   :  { %5856 = vpow2.f32 %v4791_v33  ;;  %v5688_v33 = vld [vmem:[#allocation12 + $0x68] ss:$12 sps:$4 sm:$0xff]  }
 0x388   :  { %v5853_v7 = vpop.eup %5852 }
 0x389   :  { %v1774_v29 = vmul.f32 %v5853_v7, %v1773_v52  ;;  %v5690_v52 = vld [vmem:[#allocation12 + $0x98] ss:$12 sps:$4 sm:$0xff]  }
 0x38a   :  { %v1250_v7 = vld [vmem:[#allocation7 + $0x28] sm:$0xff] }
 0x38b   :  { %v1776_v9 = vadd.f32 %v1775_v8, %v1774_v29  ;;  %vm1782_vm6 = vcmp.gt.f32.partialorder %v1250_v7, 0.0 }
 0x38c   :  { %v5855_v11 = vpop.eup %5854 }
 0x38d   :  { %v1759_v12 = vadd.f32 1.0, %v5855_v11  ;;  %v6633_v13 = vsel %vm1781_vm5, %v1776_v9, %v6515_v55  ;;  %v6635_v38 = vsel %vm1781_vm5, %v1776_v9, 0.0  ;;  %v5857_v47 = vpop.eup %5856  ;;  %v5686_v55 = vld [vmem:[#allocation12 + $0x38] ss:$12 sps:$4 sm:$0xff]   ;;  %v5691_v9 = vld [vmem:[#allocation12 + $0xb0] ss:$12 sps:$4 sm:$0xff]  }
 0x38e   :  { %v1815_v41 = vpack.c.bf16 %v6633_v13, %v6633_v13  ;;  %v1760_v48 = vadd.f32 1.0, %v5857_v47 }
 0x38f   :  { %5858 = vrcp.f32 %v1759_v12 }
 0x390   :  { %2009 = vmatmul.mubr.bf16.vlgmr.msra.gmra.mrb[24].mxu0 %v1815_v41  ;;  %5333 = vmatmul.mubr.bf16.vlgmr.msra.gmra.mrb[24].mxu1 %v1815_v41  ;;  %5860 = vrcp.f32 %v1760_v48  ;;  %v1801_v48 = vld [vmem:[#allocation4 + $0x98] sm:$0xff] }
 0x391   :  { %2219 = vmatpush1.bf16.msra.mxu0 %v6519_v58  ;;  %5337 = vmatpush3.bf16.msra.mxu1 %v5684_v39 }
 0x392   :  { %2220 = vmatprep.subr.bf16.mxu0 %v6523_v61  ;;  %5338 = vmatprep.subr.bf16.mxu1 %v6151_v0 }
 0x393   :  { %2250 = vmatprep.mubr.bf16.mxu0 %v6152_v1  ;;  %5352 = vmatprep.mubr.msk.bf16.mxu1 %vm6153_vm0, %v6151_v0 }
 0x395   :  { %2221 = vmatpush1.bf16.msra.mxu0 %v6526_v62  ;;  %5339 = vmatpush3.bf16.msra.mxu1 %v5685_v45 }
 0x396   :  { %2222 = vmatprep.subr.bf16.mxu0 %v6530_v63  ;;  %5340 = vmatprep.subr.bf16.mxu1 %v6151_v0 }
 0x399   :  { %v5859_v20 = vpop.eup %5858  ;;  %2223 = vmatpush1.bf16.msra.mxu0 %v6536_v5  ;;  %5341 = vmatpush3.bf16.msra.mxu1 %v5686_v55 }
 0x39a   :  { %v1770_v44 = vmul.f32 %v5859_v20, %v1769_v19  ;;  %2224 = vmatprep.subr.bf16.mxu0 %v6540_v27  ;;  %5342 = vmatprep.subr.bf16.mxu1 %v6151_v0  ;;  %v5861_v18 = vpop.eup %5860 }
 0x39b   :  { %v1777_v2 = vsub.f32 1.0, %v5861_v18  ;;  %v1779_v29 = vmul.f32 %v5861_v18, %v6579_v22 }
 0x39c   :  { %v1771_v17 = vadd.f32 %v1770_v44, %v1246_v21 }
 0x39d   :  { %2225 = vmatpush1.bf16.msra.mxu0 %v6544_v10  ;;  %5343 = vmatpush3.bf16.msra.mxu1 %v5687_v25 }
 0x39e   :  { %5862 = vtanh.f32 %v1771_v17  ;;  %2226 = vmatprep.subr.bf16.mxu0 %v6548_v30  ;;  %5344 = vmatprep.subr.bf16.mxu1 %v6151_v0 }
 0x3a1   :  { %2227 = vmatpush1.bf16.msra.mxu0 %v6551_v32  ;;  %5345 = vmatpush3.bf16.msra.mxu1 %v5688_v33 }
 0x3a2   :  { %2228 = vmatprep.subr.bf16.mxu0 %v6555_v34  ;;  %5346 = vmatprep.subr.bf16.mxu1 %v6151_v0 }
 0x3a5   :  { %2229 = vmatpush1.bf16.msra.mxu0 %v6558_v36  ;;  %5347 = vmatpush3.bf16.msra.mxu1 %v5689_v23 }
 0x3a6   :  { %2230 = vmatprep.subr.bf16.mxu0 %v6562_v14  ;;  %5348 = vmatprep.subr.bf16.mxu1 %v6151_v0 }
 0x3a8   :  { %v5863_v8 = vpop.eup %5862 }
 0x3a9   :  { %2231 = vmatpush1.bf16.msra.mxu0 %v6565_v15  ;;  %5349 = vmatpush3.bf16.msra.mxu1 %v5690_v52  ;;  %v1778_v11 = vmul.f32 %v5863_v8, %v1777_v2 }
 0x3aa   :  { %2232 = vmatprep.subr.bf16.mxu0 %v6569_v42  ;;  %5350 = vmatprep.subr.bf16.mxu1 %v6151_v0 }
 0x3ab   :  { %v1780_v12 = vadd.f32 %v1779_v29, %v1778_v11  ;;  %v6705_v29 = vld [vmem:[%s7110_s5] ss:$0 sm:$0xff] }
 0x3ad   :  { %2233 = vmatpush1.bf16.msra.mxu0 %v6573_v49  ;;  %5351 = vmatpush3.bf16.msra.mxu1 %v5691_v9  ;;  %v6667_v39 = vsel %vm1782_vm6, %v1780_v12, %v6579_v22  ;;  %v6669_v41 = vsel %vm1782_vm6, %v1780_v12, 0.0  ;;  %v5692_v22 = vld [vmem:[#allocation10 + $0x8] ss:$12 sps:$4 sm:$0xff]  }
 0x3ae   :  { %v2057_v45 = vpack.c.bf16 %v6667_v39, %v6667_v39  ;;  %2530 = vmatprep.subr.bf16.mxu0 %v6589_v26  ;;  %5356 = vmatprep.subr.bf16.mxu1 %v6151_v0  ;;  %v1802_v12 = vld [vmem:[#allocation4 + $0xa0] sm:$0xff] }
 0x3b0   :  { %2251 = vmatmul.mubr.bf16.vlgmr.msra.gmra.mrb[28].mxu0 %v2057_v45  ;;  %5353 = vmatmul.mubr.bf16.vlgmr.msra.gmra.mrb[28].mxu1 %v2057_v45 }
 0x3b1   :  { %2531 = vmatpush1.bf16.msra.mxu0 %v6591_v28  ;;  %2562 = vmatprep.mubr.bf16.mxu0 %v6152_v1 }
 0x3b2   :  { %2532 = vmatprep.subr.bf16.mxu0 %v6595_v37  ;;  %5372 = vmatprep.mubr.msk.bf16.mxu1 %vm6153_vm0, %v6151_v0 }
 0x3b3   :  { %5357 = vmatpush3.bf16.msra.mxu1 %v5692_v22  ;;  %v1806_v22 = vld [vmem:[#allocation4 + $0xd8] sm:$0xff] }
 0x3b4   :  { %5358 = vmatprep.subr.bf16.mxu1 %v6151_v0 }
 0x3b5   :  { %2533 = vmatpush1.bf16.msra.mxu0 %v6598_v46 }
 0x3b6   :  { %2534 = vmatprep.subr.bf16.mxu0 %v6602_v59 }
 0x3b9   :  { %2535 = vmatpush1.bf16.msra.mxu0 %v6605_v60 }
 0x3ba   :  { %2536 = vmatprep.subr.bf16.mxu0 %v6609_v4 }
 0x3bd   :  { %2537 = vmatpush1.bf16.msra.mxu0 %v6612_v6 }
 0x3be   :  { %2538 = vmatprep.subr.bf16.mxu0 %v6480_v31  ;;  %v5693_v31 = vld [vmem:[#allocation10 + $0x20] ss:$12 sps:$4 sm:$0xff]  }
 0x3bf   :  { %5359 = vmatpush3.bf16.msra.mxu1 %v5693_v31 }
 0x3c0   :  { %5360 = vmatprep.subr.bf16.mxu1 %v6151_v0 }
 0x3c1   :  { %2539 = vmatpush1.bf16.msra.mxu0 %v6483_v35  ;;  %v5694_v35 = vld [vmem:[#allocation10 + $0x38] ss:$12 sps:$4 sm:$0xff]  }
 0x3c2   :  { %2540 = vmatprep.subr.bf16.mxu0 %v6487_v40  ;;  %v5695_v40 = vld [vmem:[#allocation10 + $0x50] ss:$12 sps:$4 sm:$0xff]  }
 0x3c3   :  { %5361 = vmatpush3.bf16.msra.mxu1 %v5694_v35 }
 0x3c4   :  { %5362 = vmatprep.subr.bf16.mxu1 %v6151_v0 }
 0x3c5   :  { %2541 = vmatpush1.bf16.msra.mxu0 %v6490_v43  ;;  %v5696_v43 = vld [vmem:[#allocation10 + $0x68] ss:$12 sps:$4 sm:$0xff]  }
 0x3c6   :  { %2542 = vmatprep.subr.bf16.mxu0 %v6494_v50  ;;  %v5697_v50 = vld [vmem:[#allocation10 + $0x80] ss:$12 sps:$4 sm:$0xff]  }
 0x3c7   :  { %5363 = vmatpush3.bf16.msra.mxu1 %v5695_v40 }
 0x3c8   :  { %5364 = vmatprep.subr.bf16.mxu1 %v6151_v0 }
 0x3c9   :  { %2543 = vmatpush1.bf16.msra.mxu0 %v6497_v51  ;;  %v5698_v51 = vld [vmem:[#allocation10 + $0x98] ss:$12 sps:$4 sm:$0xff]  }
 0x3ca   :  { %2544 = vmatprep.subr.bf16.mxu0 %v6501_v53  ;;  %v5699_v53 = vld [vmem:[#allocation10 + $0xb0] ss:$12 sps:$4 sm:$0xff]  }
 0x3cb   :  { %5365 = vmatpush3.bf16.msra.mxu1 %v5696_v43 }
 0x3cc   :  { %5366 = vmatprep.subr.bf16.mxu1 %v6151_v0 }
 0x3cd   :  { %2545 = vmatpush1.bf16.msra.mxu0 %v6504_v54  ;;  %v1800_v54 = vld [vmem:[#allocation4 + $0x90] sm:$0xff] }
 0x3ce   :  { %2772 = vmatprep.subr.bf16.mxu0 %v6508_v56 }
 0x3cf   :  { %5367 = vmatpush3.bf16.msra.mxu1 %v5697_v50  ;;  %v1807_v50 = vld [vmem:[#allocation4 + $0xe0] sm:$0xff] }
 0x3d0   :  { %5368 = vmatprep.subr.bf16.mxu1 %v6151_v0 }
 0x3d3   :  { %5369 = vmatpush3.bf16.msra.mxu1 %v5698_v51 }
 0x3d4   :  { %5370 = vmatprep.subr.bf16.mxu1 %v6151_v0 }
 0x3d7   :  { %5371 = vmatpush3.bf16.msra.mxu1 %v5699_v53 }
 0x3d8   :  { %5376 = vmatprep.subr.bf16.mxu1 %v6151_v0 }
 0x463   :  { %v2010_v56 = vpop.f32.mrb[24].mxu0  ;;  %v2051_v47 = vpop.f32.mrb[24].mxu1 }
 0x464   :  { %v2299_v55 = vadd.f32 %v2010_v56, %v1800_v54  ;;  %v2012_v19 = vpop.f32.mrb[25].mxu0  ;;  %v5334_v20 = vpop.f32.mrb[25].mxu1  ;;  %v2327_v9 = vadd.f32 %v6705_v29, %v2051_v47 }
 0x465   :  { %v2014_v21 = vpop.f32.mrb[26].mxu0  ;;  %v2054_v25 = vpop.f32.mrb[26].mxu1  ;;  %v2300_v23 = vadd.f32 %v2012_v19, %v1801_v48 }
 0x466   :  { %v4840_v44 = vmul.f32 -1.442695, %v2299_v55  ;;  %v2015_v17 = vpop.f32.mrb[27].mxu0  ;;  %v5335_v33 = vpop.f32.mrb[27].mxu1 }
 0x467   :  { %v4841_v18 = vmul.f32 -1.442695, %v2300_v23 }
 0x468   :  { %5864 = vpow2.f32 %v4840_v44  ;;  %v6708_v44 = vld [vmem:[#allocation7 + $0x18] sm:$0xff] }
 0x469   :  { %5866 = vpow2.f32 %v4841_v18  ;;  %vm2343_vm7 = vcmp.gt.f32.partialorder %v6708_v44, 0.0  ;;  %v5763_v44 = vld [vmem:[#allocation10 + $0x8] ss:$12 sps:$4 sm:$0xff]  }
 0x472   :  { %v5865_v52 = vpop.eup %5864 }
 0x473   :  { %v2307_v2 = vadd.f32 1.0, %v5865_v52  ;;  %v5867_v7 = vpop.eup %5866 }
 0x474   :  { %v2308_v8 = vadd.f32 1.0, %v5867_v7 }
 0x475   :  { %5868 = vrcp.f32 %v2307_v2 }
 0x476   :  { %5870 = vrcp.f32 %v2308_v8  ;;  %v5700_v8 = vld [vmem:[#allocation12 + $0x8] ss:$12 sps:$4 sm:$0xff]  }
 0x47f   :  { %v5869_v11 = vpop.eup %5868 }
 0x480   :  { %v2328_v45 = vmul.f32 %v5869_v11, %v2327_v9  ;;  %v5871_v47 = vpop.eup %5870  ;;  %v5701_v11 = vld [vmem:[#allocation12 + $0x20] ss:$12 sps:$4 sm:$0xff]  }
 0x481   :  { %v2335_v25 = vsub.f32 1.0, %v5871_v47  ;;  %v2337_v33 = vmul.f32 %v5871_v47, %v6633_v13 }
 0x482   :  { %v2329_v31 = vadd.f32 %v2328_v45, %v1802_v12 }
 0x483   :  { %v2252_v35 = vpop.f32.mrb[28].mxu0  ;;  %v2293_v40 = vpop.f32.mrb[28].mxu1 }
 0x484   :  { %5872 = vtanh.f32 %v2329_v31  ;;  %v2313_v43 = vadd.f32 %v2252_v35, %v1806_v22  ;;  %v2254_v51 = vpop.f32.mrb[29].mxu0  ;;  %v5354_v53 = vpop.f32.mrb[29].mxu1  ;;  %v1808_v31 = vld [vmem:[#allocation4 + $0xe8] sm:$0xff] }
 0x485   :  { %v2256_v54 = vpop.f32.mrb[30].mxu0  ;;  %v2296_v56 = vpop.f32.mrb[30].mxu1  ;;  %v2314_v20 = vadd.f32 %v2254_v51, %v1807_v50  ;;  %v6799_v53 = vld [vmem:[#allocation10 + $0x90] ss:$12 sps:$4 sm:$0xff]  }
 0x486   :  { %v4842_v55 = vmul.f32 -1.442695, %v2313_v43  ;;  %v2257_v48 = vpop.f32.mrb[31].mxu0  ;;  %v5355_v19 = vpop.f32.mrb[31].mxu1  ;;  %v5704_v43 = vld [vmem:[#allocation12 + $0x68] ss:$12 sps:$4 sm:$0xff]  }
 0x487   :  { %v4843_v21 = vmul.f32 -1.442695, %v2314_v20  ;;  %v5723_v54 = vld [vmem:[#allocation10 + $0x98] ss:$12 sps:$4 sm:$0xff]   ;;  %v5727_v48 = vld [vmem:[#allocation10 + $0xb0] ss:$12 sps:$4 sm:$0xff]  }
 0x488   :  { %5874 = vpow2.f32 %v4842_v55  ;;  %v6803_v56 = vld [vmem:[#allocation10 + $0xac] ss:$12 sps:$4 sm:$0xff]   ;;  %v6806_v55 = vld [vmem:[#allocation10 + $0xa8] ss:$12 sps:$4 sm:$0xff]   ;;  %v6810_v19 = vld [vmem:[#allocation12 + $0x4] ss:$12 sps:$4 sm:$0xff]  }
 0x489   :  { %5876 = vpow2.f32 %v4843_v21  ;;  %v2359_v20 = vld [vmem:[#allocation4 + $0xc0] sm:$0xff] }
 0x48e   :  { %v5873_v17 = vpop.eup %5872 }
 0x48f   :  { %v2336_v23 = vmul.f32 %v5873_v17, %v2335_v25  ;;  %v2360_v17 = vld [vmem:[#allocation4 + $0xc8] sm:$0xff] }
 0x491   :  { %v6712_v18 = vadd.f32 %v2337_v33, %v2336_v23 }
 0x492   :  { %v5875_v52 = vpop.eup %5874 }
 0x493   :  { %v2321_v2 = vadd.f32 1.0, %v5875_v52  ;;  %v6718_v7 = vsel %vm2343_vm7, %v6712_v18, %v6633_v13  ;;  %v5877_v12 = vpop.eup %5876  ;;  %v5702_v13 = vld [vmem:[#allocation12 + $0x38] ss:$12 sps:$4 sm:$0xff]  }
 0x494   :  { %v2369_v9 = vpack.c.bf16 %v6718_v7, %v6718_v7  ;;  %v2322_v45 = vadd.f32 1.0, %v5877_v12 }
 0x495   :  { %5878 = vrcp.f32 %v2321_v2 }
 0x496   :  { %2563 = vmatmul.mubr.bf16.vlgmr.msra.gmra.mrb[32].mxu0 %v2369_v9  ;;  %5373 = vmatmul.mubr.bf16.vlgmr.msra.gmra.mrb[32].mxu1 %v2369_v9  ;;  %5880 = vrcp.f32 %v2322_v45 }
 0x497   :  { %2773 = vmatpush1.bf16.msra.mxu0 %v6519_v58  ;;  %5377 = vmatpush3.bf16.msra.mxu1 %v5700_v8  ;;  %v6734_v58 = vld [vmem:[%s7110_s5 + $0x1] ss:$0 sm:$0xff] }
 0x498   :  { %2774 = vmatprep.subr.bf16.mxu0 %v6523_v61  ;;  %5378 = vmatprep.subr.bf16.mxu1 %v6151_v0  ;;  %v2331_v61 = vadd.f32 %v6734_v58, %v2293_v40  ;;  %v6749_v40 = vld [vmem:[#allocation7 + $0x20] sm:$0xff] }
 0x499   :  { %2804 = vmatprep.mubr.bf16.mxu0 %v6152_v1  ;;  %5392 = vmatprep.mubr.msk.bf16.mxu1 %vm6153_vm0, %v6151_v0  ;;  %vm2344_vm8 = vcmp.gt.f32.partialorder %v6749_v40, 0.0  ;;  %v5735_v40 = vld [vmem:[#allocation12 + $0x20] ss:$12 sps:$4 sm:$0xff]  }
 0x49b   :  { %2775 = vmatpush1.bf16.msra.mxu0 %v6526_v62  ;;  %5379 = vmatpush3.bf16.msra.mxu1 %v5701_v11  ;;  %v5703_v62 = vld [vmem:[#allocation12 + $0x50] ss:$12 sps:$4 sm:$0xff]  }
 0x49c   :  { %2776 = vmatprep.subr.bf16.mxu0 %v6530_v63  ;;  %5380 = vmatprep.subr.bf16.mxu1 %v6151_v0 }
 0x49f   :  { %v5879_v22 = vpop.eup %5878  ;;  %2777 = vmatpush1.bf16.msra.mxu0 %v6536_v5  ;;  %5381 = vmatpush3.bf16.msra.mxu1 %v5702_v13  ;;  %v5705_v5 = vld [vmem:[#allocation12 + $0x80] ss:$12 sps:$4 sm:$0xff]  }
 0x4a0   :  { %v2332_v35 = vmul.f32 %v5879_v22, %v2331_v61  ;;  %2778 = vmatprep.subr.bf16.mxu0 %v6540_v27  ;;  %5382 = vmatprep.subr.bf16.mxu1 %v6151_v0  ;;  %v5881_v27 = vpop.eup %5880 }
 0x4a2   :  { %v2333_v63 = vadd.f32 %v2332_v35, %v1808_v31 }
 0x4a3   :  { %2779 = vmatpush1.bf16.msra.mxu0 %v6544_v10  ;;  %5383 = vmatpush3.bf16.msra.mxu1 %v5703_v62  ;;  %v5706_v10 = vld [vmem:[#allocation12 + $0x98] ss:$12 sps:$4 sm:$0xff]  }
 0x4a4   :  { %5882 = vtanh.f32 %v2333_v63  ;;  %2780 = vmatprep.subr.bf16.mxu0 %v6548_v30  ;;  %5384 = vmatprep.subr.bf16.mxu1 %v6151_v0  ;;  %v2339_v30 = vsub.f32 1.0, %v5881_v27  ;;  %v2361_v63 = vld [vmem:[#allocation4 + $0xd0] sm:$0xff] }
 0x4a7   :  { %2781 = vmatpush1.bf16.msra.mxu0 %v6551_v32  ;;  %5385 = vmatpush3.bf16.msra.mxu1 %v5704_v43  ;;  %v2341_v32 = vmul.f32 %v5881_v27, %v6667_v39 }
 0x4a8   :  { %2782 = vmatprep.subr.bf16.mxu0 %v6555_v34  ;;  %5386 = vmatprep.subr.bf16.mxu1 %v6151_v0  ;;  %v5707_v34 = vld [vmem:[#allocation12 + $0xb0] ss:$12 sps:$4 sm:$0xff]  }
 0x4ab   :  { %2783 = vmatpush1.bf16.msra.mxu0 %v6558_v36  ;;  %5387 = vmatpush3.bf16.msra.mxu1 %v5705_v5  ;;  %v2362_v5 = vld [vmem:[#allocation4 + $0xa8] sm:$0xff] }
 0x4ac   :  { %2784 = vmatprep.subr.bf16.mxu0 %v6562_v14  ;;  %5388 = vmatprep.subr.bf16.mxu1 %v6151_v0 }
 0x4ae   :  { %v5883_v50 = vpop.eup %5882 }
 0x4af   :  { %2785 = vmatpush1.bf16.msra.mxu0 %v6565_v15  ;;  %5389 = vmatpush3.bf16.msra.mxu1 %v5706_v10  ;;  %v2340_v51 = vmul.f32 %v5883_v50, %v2339_v30 }
 0x4b0   :  { %2786 = vmatprep.subr.bf16.mxu0 %v6569_v42  ;;  %5390 = vmatprep.subr.bf16.mxu1 %v6151_v0  ;;  %v5708_v42 = vld [vmem:[#allocation10 + $0x8] ss:$12 sps:$4 sm:$0xff]  }
 0x4b1   :  { %v6756_v36 = vadd.f32 %v2341_v32, %v2340_v51  ;;  %v2363_v32 = vld [vmem:[#allocation4 + $0xb0] sm:$0xff] }
 0x4b3   :  { %2787 = vmatpush1.bf16.msra.mxu0 %v6573_v49  ;;  %5391 = vmatpush3.bf16.msra.mxu1 %v5707_v34  ;;  %v6763_v14 = vsel %vm2344_vm8, %v6756_v36, %v6667_v39  ;;  %v5709_v49 = vld [vmem:[#allocation10 + $0x20] ss:$12 sps:$4 sm:$0xff]  }
 0x4b4   :  { %v2611_v15 = vpack.c.bf16 %v6763_v14, %v6763_v14  ;;  %3078 = vmatprep.subr.bf16.mxu0 %v6589_v26  ;;  %5396 = vmatprep.subr.bf16.mxu1 %v6151_v0  ;;  %v5710_v26 = vld [vmem:[#allocation10 + $0x38] ss:$12 sps:$4 sm:$0xff]   ;;  %v6796_v39 = vld [vmem:[#allocation10 + $0x94] ss:$12 sps:$4 sm:$0xff]  }
 0x4b6   :  { %2805 = vmatmul.mubr.bf16.vlgmr.msra.gmra.mrb[36].mxu0 %v2611_v15  ;;  %5393 = vmatmul.mubr.bf16.vlgmr.msra.gmra.mrb[36].mxu1 %v2611_v15 }
 0x4b7   :  { %3079 = vmatpush1.bf16.msra.mxu0 %v6591_v28  ;;  %3110 = vmatprep.mubr.bf16.mxu0 %v6152_v1  ;;  %v5711_v28 = vld [vmem:[#allocation10 + $0x50] ss:$12 sps:$4 sm:$0xff]  }
 0x4b8   :  { %3080 = vmatprep.subr.bf16.mxu0 %v6595_v37  ;;  %5412 = vmatprep.mubr.msk.bf16.mxu1 %vm6153_vm0, %v6151_v0  ;;  %v6782_v37 = vld [vmem:[#allocation10 + $0x64] ss:$12 sps:$4 sm:$0xff]  }
 0x4b9   :  { %5397 = vmatpush3.bf16.msra.mxu1 %v5708_v42 }
 0x4ba   :  { %5398 = vmatprep.subr.bf16.mxu1 %v6151_v0 }
 0x4bb   :  { %3081 = vmatpush1.bf16.msra.mxu0 %v6598_v46  ;;  %v6785_v46 = vld [vmem:[#allocation10 + $0x60] ss:$12 sps:$4 sm:$0xff]  }
 0x4bc   :  { %3082 = vmatprep.subr.bf16.mxu0 %v6602_v59  ;;  %v5715_v59 = vld [vmem:[#allocation10 + $0x68] ss:$12 sps:$4 sm:$0xff]  }
 0x4bd   :  { %5399 = vmatpush3.bf16.msra.mxu1 %v5709_v49 }
 0x4be   :  { %5400 = vmatprep.subr.bf16.mxu1 %v6151_v0 }
 0x4bf   :  { %3083 = vmatpush1.bf16.msra.mxu0 %v6605_v60  ;;  %v6789_v60 = vld [vmem:[#allocation10 + $0x7c] ss:$12 sps:$4 sm:$0xff]  }
 0x4c0   :  { %3084 = vmatprep.subr.bf16.mxu0 %v6609_v4  ;;  %v6792_v4 = vld [vmem:[#allocation10 + $0x78] ss:$12 sps:$4 sm:$0xff]  }
 0x4c1   :  { %5401 = vmatpush3.bf16.msra.mxu1 %v5710_v26 }
 0x4c2   :  { %5402 = vmatprep.subr.bf16.mxu1 %v6151_v0 }
 0x4c3   :  { %3085 = vmatpush1.bf16.msra.mxu0 %v6612_v6  ;;  %v5719_v6 = vld [vmem:[#allocation10 + $0x80] ss:$12 sps:$4 sm:$0xff]  }
 0x4c4   :  { %3086 = vmatprep.subr.bf16.mxu0 %v6782_v37 }
 0x4c5   :  { %5403 = vmatpush3.bf16.msra.mxu1 %v5711_v28 }
 0x4c6   :  { %5404 = vmatprep.subr.bf16.mxu1 %v6151_v0 }
 0x4c7   :  { %3087 = vmatpush1.bf16.msra.mxu0 %v6785_v46 }
 0x4c8   :  { %3088 = vmatprep.subr.bf16.mxu0 %v6789_v60 }
 0x4c9   :  { %5405 = vmatpush3.bf16.msra.mxu1 %v5715_v59 }
 0x4ca   :  { %5406 = vmatprep.subr.bf16.mxu1 %v6151_v0 }
 0x4cb   :  { %3089 = vmatpush1.bf16.msra.mxu0 %v6792_v4 }
 0x4cc   :  { %3090 = vmatprep.subr.bf16.mxu0 %v6796_v39 }
 0x4cd   :  { %5407 = vmatpush3.bf16.msra.mxu1 %v5719_v6 }
 0x4ce   :  { %5408 = vmatprep.subr.bf16.mxu1 %v6151_v0 }
 0x4cf   :  { %3091 = vmatpush1.bf16.msra.mxu0 %v6799_v53 }
 0x4d0   :  { %3092 = vmatprep.subr.bf16.mxu0 %v6803_v56 }
 0x4d1   :  { %5409 = vmatpush3.bf16.msra.mxu1 %v5723_v54 }
 0x4d2   :  { %5410 = vmatprep.subr.bf16.mxu1 %v6151_v0 }
 0x4d3   :  { %3093 = vmatpush1.bf16.msra.mxu0 %v6806_v55 }
 0x4d4   :  { %3320 = vmatprep.subr.bf16.mxu0 %v6810_v19 }
 0x4d5   :  { %5411 = vmatpush3.bf16.msra.mxu1 %v5727_v48 }
 0x4d6   :  { %5416 = vmatprep.subr.bf16.mxu1 %v6151_v0 }
 0x569   :  { %v2564_v47 = vpop.f32.mrb[32].mxu0  ;;  %v2605_v21 = vpop.f32.mrb[32].mxu1 }
 0x56a   :  { %v2853_v25 = vadd.f32 %v2564_v47, %v2359_v20  ;;  %v2566_v33 = vpop.f32.mrb[33].mxu0  ;;  %v5374_v23 = vpop.f32.mrb[33].mxu1  ;;  %v2881_v62 = vadd.f32 %v6705_v29, %v2605_v21 }
 0x56b   :  { %v2568_v52 = vpop.f32.mrb[34].mxu0  ;;  %v2608_v2 = vpop.f32.mrb[34].mxu1  ;;  %v2854_v12 = vadd.f32 %v2566_v33, %v2360_v17  ;;  %v2354_v33 = vsel %vm2344_vm8, %v6756_v36, 0.0  ;;  %v6837_v36 = vld [vmem:[#allocation12 + $0x34] ss:$12 sps:$4 sm:$0xff]  }
 0x56c   :  { %v4892_v8 = vmul.f32 -1.442695, %v2853_v25  ;;  %v2569_v9 = vpop.f32.mrb[35].mxu0  ;;  %v5375_v11 = vpop.f32.mrb[35].mxu1 }
 0x56d   :  { %v4893_v13 = vmul.f32 -1.442695, %v2854_v12  ;;  %v5731_v9 = vld [vmem:[#allocation12 + $0x8] ss:$12 sps:$4 sm:$0xff]  }
 0x56e   :  { %5884 = vpow2.f32 %v4892_v8  ;;  %v6826_v8 = vld [vmem:[#allocation12] ss:$12 sps:$4 sm:$0xff]  }
 0x56f   :  { %5886 = vpow2.f32 %v4893_v13  ;;  %v6830_v13 = vld [vmem:[#allocation12 + $0x1c] ss:$12 sps:$4 sm:$0xff]  }
 0x578   :  { %v5885_v45 = vpop.eup %5884 }
 0x579   :  { %v2861_v61 = vadd.f32 1.0, %v5885_v45  ;;  %v5887_v22 = vpop.eup %5886 }
 0x57a   :  { %v2862_v31 = vadd.f32 1.0, %v5887_v22  ;;  %v5739_v22 = vld [vmem:[#allocation12 + $0x38] ss:$12 sps:$4 sm:$0xff]  }
 0x57b   :  { %5888 = vrcp.f32 %v2861_v61  ;;  %v6843_v61 = vld [vmem:[#allocation12 + $0x30] ss:$12 sps:$4 sm:$0xff]  }
 0x57c   :  { %5890 = vrcp.f32 %v2862_v31 }
 0x585   :  { %v5889_v35 = vpop.eup %5888 }
 0x586   :  { %v2882_v43 = vmul.f32 %v5889_v35, %v2881_v62  ;;  %v5891_v6 = vpop.eup %5890  ;;  %v6847_v62 = vld [vmem:[#allocation12 + $0x4c] ss:$12 sps:$4 sm:$0xff]  }
 0x587   :  { %v2889_v48 = vsub.f32 1.0, %v5891_v6  ;;  %v2891_v47 = vmul.f32 %v5891_v6, %v6718_v7  ;;  %v6876_v6 = vld [vmem:[#allocation12 + $0xac] ss:$12 sps:$4 sm:$0xff]  }
 0x588   :  { %v2883_v27 = vadd.f32 %v2882_v43, %v2361_v63  ;;  %v2364_v43 = vld [vmem:[#allocation4 + $0xb8] sm:$0xff] }
 0x589   :  { %v2806_v10 = vpop.f32.mrb[36].mxu0  ;;  %v2847_v30 = vpop.f32.mrb[36].mxu1 }
 0x58a   :  { %5892 = vtanh.f32 %v2883_v27  ;;  %v2867_v50 = vadd.f32 %v2806_v10, %v2362_v5  ;;  %v2808_v34 = vpop.f32.mrb[37].mxu0  ;;  %v5394_v51 = vpop.f32.mrb[37].mxu1  ;;  %v2885_v35 = vadd.f32 %v6734_v58, %v2847_v30  ;;  %v6851_v5 = vld [vmem:[#allocation12 + $0x48] ss:$12 sps:$4 sm:$0xff]   ;;  %v5743_v27 = vld [vmem:[#allocation12 + $0x50] ss:$12 sps:$4 sm:$0xff]  }
 0x58b   :  { %v2810_v15 = vpop.f32.mrb[38].mxu0  ;;  %v2850_v42 = vpop.f32.mrb[38].mxu1  ;;  %v2868_v59 = vadd.f32 %v2808_v34, %v2363_v32  ;;  %v6858_v30 = vld [vmem:[#allocation12 + $0x60] ss:$12 sps:$4 sm:$0xff]   ;;  %v5747_v34 = vld [vmem:[#allocation12 + $0x68] ss:$12 sps:$4 sm:$0xff]  }
 0x58c   :  { %v4894_v49 = vmul.f32 -1.442695, %v2867_v50  ;;  %v2811_v26 = vpop.f32.mrb[39].mxu0  ;;  %v5395_v28 = vpop.f32.mrb[39].mxu1  ;;  %v6855_v50 = vld [vmem:[#allocation12 + $0x64] ss:$12 sps:$4 sm:$0xff]  }
 0x58d   :  { %v4895_v54 = vmul.f32 -1.442695, %v2868_v59  ;;  %v6862_v51 = vld [vmem:[#allocation12 + $0x7c] ss:$12 sps:$4 sm:$0xff]   ;;  %v6865_v15 = vld [vmem:[#allocation12 + $0x78] ss:$12 sps:$4 sm:$0xff]  }
 0x58e   :  { %5894 = vpow2.f32 %v4894_v49  ;;  %v5751_v42 = vld [vmem:[#allocation12 + $0x80] ss:$12 sps:$4 sm:$0xff]   ;;  %v6872_v28 = vld [vmem:[#allocation12 + $0x90] ss:$12 sps:$4 sm:$0xff]   ;;  %v5755_v59 = vld [vmem:[#allocation12 + $0x98] ss:$12 sps:$4 sm:$0xff]  }
 0x58f   :  { %5896 = vpow2.f32 %v4895_v54  ;;  %v6869_v49 = vld [vmem:[#allocation12 + $0x94] ss:$12 sps:$4 sm:$0xff]  }
 0x594   :  { %v5893_v20 = vpop.eup %5892 }
 0x595   :  { %v2890_v21 = vmul.f32 %v5893_v20, %v2889_v48 }
 0x597   :  { %v2892_v25 = vadd.f32 %v2891_v47, %v2890_v21  ;;  %v6880_v47 = vld [vmem:[#allocation12 + $0xa8] ss:$12 sps:$4 sm:$0xff]   ;;  %v5759_v21 = vld [vmem:[#allocation12 + $0xb0] ss:$12 sps:$4 sm:$0xff]  }
 0x598   :  { %v5895_v17 = vpop.eup %5894 }
 0x599   :  { %v2875_v23 = vadd.f32 1.0, %v5895_v17  ;;  %v6822_v52 = vsel %vm2344_vm8, %v2892_v25, %v6718_v7  ;;  %v2903_v2 = vsel %vm2344_vm8, %v2892_v25, 0.0  ;;  %v6833_v7 = vld [vmem:[#allocation12 + $0x18] ss:$12 sps:$4 sm:$0xff]   ;;  %v5897_v45 = vpop.eup %5896 }
 0x59a   :  { %v2917_v11 = vpack.c.bf16 %v6822_v52, %v6822_v52  ;;  %v4571_v12 = vadd.f32 %v2903_v2, %v2354_v33  ;;  %v2876_v31 = vadd.f32 1.0, %v5897_v45  ;;  %v2349_v33 = vsel %vm2343_vm7, %v6712_v18, 0.0  ;;  %v6901_v18 = vld [vmem:[#allocation10 + $0x4] ss:$12 sps:$4 sm:$0xff]   ;;  %v5767_v45 = vld [vmem:[#allocation10 + $0x20] ss:$12 sps:$4 sm:$0xff]  }
 0x59b   :  { %5898 = vrcp.f32 %v2875_v23 }
 0x59c   :  { %3111 = vmatmul.mubr.bf16.vlgmr.msra.gmra.mrb[40].mxu0 %v2917_v11  ;;  %4579 = vst [vmem:[#allocation13 + $0x20] sm:$0xff] %v4571_v12  ;;  %5413 = vmatmul.mubr.bf16.vlgmr.msra.gmra.mrb[40].mxu1 %v2917_v11  ;;  %5900 = vrcp.f32 %v2876_v31  ;;  %v6907_v12 = vld [vmem:[#allocation10 + $0x1c] ss:$12 sps:$4 sm:$0xff]  }
 0x59d   :  { %3321 = vmatpush1.bf16.msra.mxu0 %v6826_v8  ;;  %5417 = vmatpush3.bf16.msra.mxu1 %v5731_v9  ;;  %v6917_v31 = vld [vmem:[#allocation10 + $0x30] ss:$12 sps:$4 sm:$0xff]  }
 0x59e   :  { %3322 = vmatprep.subr.bf16.mxu0 %v6830_v13  ;;  %5418 = vmatprep.subr.bf16.mxu1 %v6151_v0 }
 0x59f   :  { %3352 = vmatprep.mubr.bf16.mxu0 %v6152_v1  ;;  %5432 = vmatprep.mubr.msk.bf16.mxu1 %vm6153_vm0, %v6151_v0 }
 0x5a1   :  { %3323 = vmatpush1.bf16.msra.mxu0 %v6833_v7  ;;  %5419 = vmatpush3.bf16.msra.mxu1 %v5735_v40  ;;  %v6910_v40 = vld [vmem:[#allocation10 + $0x18] ss:$12 sps:$4 sm:$0xff]  }
 0x5a2   :  { %3324 = vmatprep.subr.bf16.mxu0 %v6837_v36  ;;  %5420 = vmatprep.subr.bf16.mxu1 %v6151_v0 }
 0x5a5   :  { %v5899_v63 = vpop.eup %5898  ;;  %3325 = vmatpush1.bf16.msra.mxu0 %v6843_v61  ;;  %5421 = vmatpush3.bf16.msra.mxu1 %v5739_v22  ;;  %v6914_v22 = vld [vmem:[#allocation10 + $0x34] ss:$12 sps:$4 sm:$0xff]  }
 0x5a6   :  { %v2886_v10 = vmul.f32 %v5899_v63, %v2885_v35  ;;  %3326 = vmatprep.subr.bf16.mxu0 %v6847_v62  ;;  %5422 = vmatprep.subr.bf16.mxu1 %v6151_v0  ;;  %v5901_v26 = vpop.eup %5900  ;;  %v5771_v35 = vld [vmem:[#allocation10 + $0x38] ss:$12 sps:$4 sm:$0xff]  }
 0x5a7   :  { %v2893_v54 = vsub.f32 1.0, %v5901_v26  ;;  %v2895_v20 = vmul.f32 %v5901_v26, %v6763_v14  ;;  %v6921_v63 = vld [vmem:[#allocation10 + $0x4c] ss:$12 sps:$4 sm:$0xff]   ;;  %v2907_v26 = vld [vmem:[#allocation4 + $0xf0] sm:$0xff] }
 0x5a8   :  { %v2887_v32 = vadd.f32 %v2886_v10, %v2364_v43  ;;  %v6924_v43 = vld [vmem:[#allocation10 + $0x48] ss:$12 sps:$4 sm:$0xff]  }
 0x5a9   :  { %3327 = vmatpush1.bf16.msra.mxu0 %v6851_v5  ;;  %5423 = vmatpush3.bf16.msra.mxu1 %v5743_v27  ;;  %v5775_v27 = vld [vmem:[#allocation10 + $0x50] ss:$12 sps:$4 sm:$0xff]   ;;  %v5776_v10 = vld [vmem:[#allocation10 + $0x68] ss:$12 sps:$4 sm:$0xff]  }
 0x5aa   :  { %5902 = vtanh.f32 %v2887_v32  ;;  %3328 = vmatprep.subr.bf16.mxu0 %v6855_v50  ;;  %5424 = vmatprep.subr.bf16.mxu1 %v6151_v0  ;;  %v5777_v32 = vld [vmem:[#allocation10 + $0x80] ss:$12 sps:$4 sm:$0xff]  }
 0x5ad   :  { %3329 = vmatpush1.bf16.msra.mxu0 %v6858_v30  ;;  %5425 = vmatpush3.bf16.msra.mxu1 %v5747_v34  ;;  %v5778_v34 = vld [vmem:[#allocation10 + $0x98] ss:$12 sps:$4 sm:$0xff]  }
 0x5ae   :  { %3330 = vmatprep.subr.bf16.mxu0 %v6862_v51  ;;  %5426 = vmatprep.subr.bf16.mxu1 %v6151_v0 }
 0x5b1   :  { %3331 = vmatpush1.bf16.msra.mxu0 %v6865_v15  ;;  %5427 = vmatpush3.bf16.msra.mxu1 %v5751_v42  ;;  %v5779_v42 = vld [vmem:[#allocation10 + $0xb0] ss:$12 sps:$4 sm:$0xff]  }
 0x5b2   :  { %3332 = vmatprep.subr.bf16.mxu0 %v6869_v49  ;;  %5428 = vmatprep.subr.bf16.mxu1 %v6151_v0 }
 0x5b4   :  { %v5903_v48 = vpop.eup %5902 }
 0x5b5   :  { %3333 = vmatpush1.bf16.msra.mxu0 %v6872_v28  ;;  %5429 = vmatpush3.bf16.msra.mxu1 %v5755_v59  ;;  %v2894_v25 = vmul.f32 %v5903_v48, %v2893_v54 }
 0x5b6   :  { %3334 = vmatprep.subr.bf16.mxu0 %v6876_v6  ;;  %5430 = vmatprep.subr.bf16.mxu1 %v6151_v0 }
 0x5b7   :  { %v2896_v17 = vadd.f32 %v2895_v20, %v2894_v25  ;;  %v2908_v20 = vld [vmem:[#allocation4 + $0xf8] sm:$0xff] }
 0x5b9   :  { %3335 = vmatpush1.bf16.msra.mxu0 %v6880_v47  ;;  %5431 = vmatpush3.bf16.msra.mxu1 %v5759_v21  ;;  %v6891_v23 = vsel %vm2343_vm7, %v2896_v17, %v6763_v14  ;;  %v2905_v2 = vsel %vm2343_vm7, %v2896_v17, 0.0  ;;  %v6903_v14 = vld [vmem:[#allocation10] ss:$12 sps:$4 sm:$0xff]  }
 0x5ba   :  { %v3159_v9 = vpack.c.bf16 %v6891_v23, %v6891_v23  ;;  %v4570_v11 = vadd.f32 %v2905_v2, %v2349_v33  ;;  %5436 = vmatprep.subr.bf16.mxu1 %v6151_v0  ;;  %3626 = vmatprep.subr.bf16.mxu0 %v6901_v18 }
 0x5bc   :  { %3353 = vmatmul.mubr.bf16.vlgmr.msra.gmra.mrb[44].mxu0 %v3159_v9  ;;  %4578 = vst [vmem:[#allocation13 + $0x18] sm:$0xff] %v4570_v11  ;;  %5433 = vmatmul.mubr.bf16.vlgmr.msra.gmra.mrb[44].mxu1 %v3159_v9 }
 0x5bd   :  { %3658 = vmatprep.mubr.bf16.mxu0 %v6152_v1  ;;  %5452 = vmatprep.mubr.msk.bf16.mxu1 %vm6153_vm0, %v6151_v0 }
 0x5be   :  { %3627 = vmatpush1.bf16.msra.mxu0 %v6903_v14  ;;  %5437 = vmatpush3.bf16.msra.mxu1 %v5763_v44 }
 0x5bf   :  { %5438 = vmatprep.subr.bf16.mxu1 %v6151_v0  ;;  %3628 = vmatprep.subr.bf16.mxu0 %v6907_v12 }
 0x5c2   :  { %3629 = vmatpush1.bf16.msra.mxu0 %v6910_v40  ;;  %5439 = vmatpush3.bf16.msra.mxu1 %v5767_v45 }
 0x5c3   :  { %5440 = vmatprep.subr.bf16.mxu1 %v6151_v0  ;;  %3630 = vmatprep.subr.bf16.mxu0 %v6914_v22 }
 0x5c6   :  { %3631 = vmatpush1.bf16.msra.mxu0 %v6917_v31  ;;  %5441 = vmatpush3.bf16.msra.mxu1 %v5771_v35 }
 0x5c7   :  { %5442 = vmatprep.subr.bf16.mxu1 %v6151_v0  ;;  %3632 = vmatprep.subr.bf16.mxu0 %v6921_v63 }
 0x5ca   :  { %3633 = vmatpush1.bf16.msra.mxu0 %v6924_v43  ;;  %5443 = vmatpush3.bf16.msra.mxu1 %v5775_v27 }
 0x5cb   :  { %3634 = vmatprep.subr.bf16.mxu0 %v6782_v37  ;;  %5444 = vmatprep.subr.bf16.mxu1 %v6151_v0 }
 0x5ce   :  { %3635 = vmatpush1.bf16.msra.mxu0 %v6785_v46  ;;  %5445 = vmatpush3.bf16.msra.mxu1 %v5776_v10 }
 0x5cf   :  { %3636 = vmatprep.subr.bf16.mxu0 %v6789_v60  ;;  %5446 = vmatprep.subr.bf16.mxu1 %v6151_v0 }
 0x5d2   :  { %3637 = vmatpush1.bf16.msra.mxu0 %v6792_v4  ;;  %5447 = vmatpush3.bf16.msra.mxu1 %v5777_v32 }
 0x5d3   :  { %3638 = vmatprep.subr.bf16.mxu0 %v6796_v39  ;;  %5448 = vmatprep.subr.bf16.mxu1 %v6151_v0 }
 0x5d6   :  { %3639 = vmatpush1.bf16.msra.mxu0 %v6799_v53  ;;  %5449 = vmatpush3.bf16.msra.mxu1 %v5778_v34 }
 0x5d7   :  { %3640 = vmatprep.subr.bf16.mxu0 %v6803_v56  ;;  %5450 = vmatprep.subr.bf16.mxu1 %v6151_v0 }
 0x5da   :  { %3641 = vmatpush1.bf16.msra.mxu0 %v6806_v55  ;;  %5451 = vmatpush3.bf16.msra.mxu1 %v5779_v42 }
 0x5db   :  { %3868 = vmatprep.subr.bf16.mxu0 %v6810_v19  ;;  %5456 = vmatprep.subr.bf16.mxu1 %v6151_v0 }
 0x66f   :  { %v3112_v59 = vpop.f32.mrb[40].mxu0  ;;  %v3153_v54 = vpop.f32.mrb[40].mxu1 }
 0x670   :  { %v3401_v48 = vadd.f32 %v3112_v59, %v2907_v26  ;;  %v3114_v21 = vpop.f32.mrb[41].mxu0  ;;  %v5414_v25 = vpop.f32.mrb[41].mxu1  ;;  %v3429_v34 = vadd.f32 %v6705_v29, %v3153_v54  ;;  %v2909_v26 = vld [vmem:[#allocation4 + $0x100] sm:$0xff] }
 0x671   :  { %v3116_v17 = vpop.f32.mrb[42].mxu0  ;;  %v3156_v33 = vpop.f32.mrb[42].mxu1  ;;  %v3402_v44 = vadd.f32 %v3114_v21, %v2908_v20  ;;  %v2910_v25 = vld [vmem:[#allocation4 + $0x78] sm:$0xff]  ;;  %v2911_v21 = vld [vmem:[#allocation4 + $0x80] sm:$0xff] }
 0x672   :  { %v4944_v2 = vmul.f32 -1.442695, %v3401_v48  ;;  %v3117_v9 = vpop.f32.mrb[43].mxu0  ;;  %v5415_v11 = vpop.f32.mrb[43].mxu1 }
 0x673   :  { %v4945_v45 = vmul.f32 -1.442695, %v3402_v44 }
 0x674   :  { %5904 = vpow2.f32 %v4944_v2 }
 0x675   :  { %5906 = vpow2.f32 %v4945_v45 }
 0x67e   :  { %v5905_v35 = vpop.eup %5904 }
 0x67f   :  { %v3409_v27 = vadd.f32 1.0, %v5905_v35  ;;  %v5907_v10 = vpop.eup %5906 }
 0x680   :  { %v3410_v32 = vadd.f32 1.0, %v5907_v10 }
 0x681   :  { %5908 = vrcp.f32 %v3409_v27 }
 0x682   :  { %5910 = vrcp.f32 %v3410_v32  ;;  %v2913_v32 = vld [vmem:[#allocation7 + $0x28] sm:$0xff] }
 0x683   :  { %vm3445_vm9 = vcmp.gt.f32.partialorder %v2913_v32, 0.0  ;;  %v5784_v32 = vld [vmem:[#allocation12 + $0x68] ss:$12 sps:$4 sm:$0xff]  }
 0x68b   :  { %v5909_v42 = vpop.eup %5908 }
 0x68c   :  { %v3430_v59 = vmul.f32 %v5909_v42, %v3429_v34  ;;  %v5911_v29 = vpop.eup %5910 }
 0x68d   :  { %v3437_v34 = vsub.f32 1.0, %v5911_v29 }
 0x68e   :  { %v3431_v17 = vadd.f32 %v3430_v59, %v2909_v26  ;;  %v3439_v26 = vmul.f32 %v5911_v29, %v6822_v52  ;;  %v5783_v29 = vld [vmem:[#allocation12 + $0x50] ss:$12 sps:$4 sm:$0xff]  }
 0x68f   :  { %v3354_v48 = vpop.f32.mrb[44].mxu0  ;;  %v3395_v33 = vpop.f32.mrb[44].mxu1 }
 0x690   :  { %5912 = vtanh.f32 %v3431_v17  ;;  %v3415_v20 = vadd.f32 %v3354_v48, %v2910_v25  ;;  %v3356_v2 = vpop.f32.mrb[45].mxu0  ;;  %v5434_v9 = vpop.f32.mrb[45].mxu1 }
 0x691   :  { %v3358_v11 = vpop.f32.mrb[46].mxu0  ;;  %v3398_v44 = vpop.f32.mrb[46].mxu1  ;;  %v3416_v10 = vadd.f32 %v3356_v2, %v2911_v21 }
 0x692   :  { %v4946_v45 = vmul.f32 -1.442695, %v3415_v20  ;;  %v3359_v35 = vpop.f32.mrb[47].mxu0  ;;  %v5435_v27 = vpop.f32.mrb[47].mxu1  ;;  %v5780_v11 = vld [vmem:[#allocation12 + $0x8] ss:$12 sps:$4 sm:$0xff]  }
 0x693   :  { %v4947_v54 = vmul.f32 -1.442695, %v3416_v10  ;;  %v5781_v44 = vld [vmem:[#allocation12 + $0x20] ss:$12 sps:$4 sm:$0xff]   ;;  %v3433_v35 = vadd.f32 %v6734_v58, %v3395_v33  ;;  %v2912_v10 = vld [vmem:[#allocation4 + $0x88] sm:$0xff] }
 0x694   :  { %5914 = vpow2.f32 %v4946_v45  ;;  %v5785_v58 = vld [vmem:[#allocation12 + $0x80] ss:$12 sps:$4 sm:$0xff]  }
 0x695   :  { %5916 = vpow2.f32 %v4947_v54 }
 0x69a   :  { %v5913_v42 = vpop.eup %5912 }
 0x69b   :  { %v3438_v59 = vmul.f32 %v5913_v42, %v3437_v34  ;;  %v5786_v42 = vld [vmem:[#allocation12 + $0x98] ss:$12 sps:$4 sm:$0xff]  }
 0x69d   :  { %v3440_v25 = vadd.f32 %v3439_v26, %v3438_v59  ;;  %v2914_v59 = vld [vmem:[#allocation7 + $0x10] sm:$0xff] }
 0x69e   :  { %v5915_v17 = vpop.eup %5914  ;;  %vm3446_vm10 = vcmp.gt.f32.partialorder %v2914_v59, 0.0 }
 0x69f   :  { %v3423_v48 = vadd.f32 1.0, %v5915_v17  ;;  %v6945_v9 = vsel %vm3445_vm9, %v3440_v25, %v6822_v52  ;;  %v3451_v20 = vsel %vm3445_vm9, %v3440_v25, 0.0  ;;  %v5917_v52 = vpop.eup %5916 }
 0x6a0   :  { %v3465_v21 = vpack.c.bf16 %v6945_v9, %v6945_v9  ;;  %v4572_v2 = vadd.f32 %v3451_v20, %v6669_v41  ;;  %v5782_v41 = vld [vmem:[#allocation12 + $0x38] ss:$12 sps:$4 sm:$0xff]   ;;  %v3424_v45 = vadd.f32 1.0, %v5917_v52 }
 0x6a1   :  { %5918 = vrcp.f32 %v3423_v48  ;;  %v5787_v48 = vld [vmem:[#allocation12 + $0xb0] ss:$12 sps:$4 sm:$0xff]  }
 0x6a2   :  { %3659 = vmatmul.mubr.bf16.vlgmr.msra.gmra.mrb[48].mxu0 %v3465_v21  ;;  %4580 = vst [vmem:[#allocation13 + $0x28] sm:$0xff] %v4572_v2  ;;  %5453 = vmatmul.mubr.bf16.vlgmr.msra.gmra.mrb[48].mxu1 %v3465_v21  ;;  %5920 = vrcp.f32 %v3424_v45 }
 0x6a3   :  { %3869 = vmatpush1.bf16.msra.mxu0 %v6826_v8  ;;  %5457 = vmatpush3.bf16.msra.mxu1 %v5780_v11 }
 0x6a4   :  { %3870 = vmatprep.subr.bf16.mxu0 %v6830_v13  ;;  %5458 = vmatprep.subr.bf16.mxu1 %v6151_v0 }
 0x6a5   :  { %3900 = vmatprep.mubr.bf16.mxu0 %v6152_v1  ;;  %5472 = vmatprep.mubr.msk.bf16.mxu1 %vm6153_vm0, %v6151_v0 }
 0x6a7   :  { %3871 = vmatpush1.bf16.msra.mxu0 %v6833_v7  ;;  %5459 = vmatpush3.bf16.msra.mxu1 %v5781_v44 }
 0x6a8   :  { %3872 = vmatprep.subr.bf16.mxu0 %v6837_v36  ;;  %5460 = vmatprep.subr.bf16.mxu1 %v6151_v0 }
 0x6ab   :  { %v5919_v27 = vpop.eup %5918  ;;  %3873 = vmatpush1.bf16.msra.mxu0 %v6843_v61  ;;  %5461 = vmatpush3.bf16.msra.mxu1 %v5782_v41 }
 0x6ac   :  { %v3434_v54 = vmul.f32 %v5919_v27, %v3433_v35  ;;  %3874 = vmatprep.subr.bf16.mxu0 %v6847_v62  ;;  %5462 = vmatprep.subr.bf16.mxu1 %v6151_v0  ;;  %v5921_v33 = vpop.eup %5920 }
 0x6ad   :  { %v3441_v26 = vsub.f32 1.0, %v5921_v33  ;;  %v3443_v17 = vmul.f32 %v5921_v33, %v6891_v23  ;;  %v3457_v33 = vld [vmem:[#allocation4 + $0x130] sm:$0xff] }
 0x6ae   :  { %v3435_v34 = vadd.f32 %v3434_v54, %v2912_v10 }
 0x6af   :  { %3875 = vmatpush1.bf16.msra.mxu0 %v6851_v5  ;;  %5463 = vmatpush3.bf16.msra.mxu1 %v5783_v29 }
 0x6b0   :  { %5922 = vtanh.f32 %v3435_v34  ;;  %3876 = vmatprep.subr.bf16.mxu0 %v6855_v50  ;;  %5464 = vmatprep.subr.bf16.mxu1 %v6151_v0  ;;  %v7015_v34 = vld [vmem:[%s7110_s5] ss:$0 sm:$0xff] }
 0x6b3   :  { %3877 = vmatpush1.bf16.msra.mxu0 %v6858_v30  ;;  %5465 = vmatpush3.bf16.msra.mxu1 %v5784_v32 }
 0x6b4   :  { %3878 = vmatprep.subr.bf16.mxu0 %v6862_v51  ;;  %5466 = vmatprep.subr.bf16.mxu1 %v6151_v0 }
 0x6b7   :  { %3879 = vmatpush1.bf16.msra.mxu0 %v6865_v15  ;;  %5467 = vmatpush3.bf16.msra.mxu1 %v5785_v58 }
 0x6b8   :  { %3880 = vmatprep.subr.bf16.mxu0 %v6869_v49  ;;  %5468 = vmatprep.subr.bf16.mxu1 %v6151_v0 }
 0x6ba   :  { %v5923_v25 = vpop.eup %5922 }
 0x6bb   :  { %3881 = vmatpush1.bf16.msra.mxu0 %v6872_v28  ;;  %5469 = vmatpush3.bf16.msra.mxu1 %v5786_v42  ;;  %v3442_v20 = vmul.f32 %v5923_v25, %v3441_v26  ;;  %v3458_v26 = vld [vmem:[#allocation4 + $0x48] sm:$0xff] }
 0x6bc   :  { %3882 = vmatprep.subr.bf16.mxu0 %v6876_v6  ;;  %5470 = vmatprep.subr.bf16.mxu1 %v6151_v0 }
 0x6bd   :  { %v3444_v11 = vadd.f32 %v3443_v17, %v3442_v20  ;;  %v3459_v20 = vld [vmem:[#allocation4 + $0x50] sm:$0xff] }
 0x6bf   :  { %3883 = vmatpush1.bf16.msra.mxu0 %v6880_v47  ;;  %5471 = vmatpush3.bf16.msra.mxu1 %v5787_v48  ;;  %v6978_v21 = vsel %vm3446_vm10, %v3444_v11, %v6891_v23  ;;  %v3453_v2 = vsel %vm3446_vm10, %v3444_v11, 0.0 }
 0x6c0   :  { %v3707_v44 = vpack.c.bf16 %v6978_v21, %v6978_v21  ;;  %v4569_v52 = vadd.f32 %v3453_v2, %v6635_v38  ;;  %4174 = vmatprep.subr.bf16.mxu0 %v6901_v18  ;;  %5476 = vmatprep.subr.bf16.mxu1 %v6151_v0  ;;  %v5788_v38 = vld [vmem:[#allocation10 + $0x8] ss:$12 sps:$4 sm:$0xff]  }
 0x6c2   :  { %3901 = vmatmul.mubr.bf16.vlgmr.msra.gmra.mrb[52].mxu0 %v3707_v44  ;;  %4577 = vst [vmem:[#allocation13 + $0x10] sm:$0xff] %v4569_v52  ;;  %5473 = vmatmul.mubr.bf16.vlgmr.msra.gmra.mrb[52].mxu1 %v3707_v44 }
 0x6c3   :  { %4175 = vmatpush1.bf16.msra.mxu0 %v6903_v14  ;;  %4206 = vmatprep.mubr.bf16.mxu0 %v6152_v1  ;;  %v3456_v14 = vld [vmem:[#allocation4 + $0x128] sm:$0xff] }
 0x6c4   :  { %4176 = vmatprep.subr.bf16.mxu0 %v6907_v12  ;;  %5492 = vmatprep.mubr.msk.bf16.mxu1 %vm6153_vm0, %v6151_v0 }
 0x6c5   :  { %5477 = vmatpush3.bf16.msra.mxu1 %v5788_v38 }
 0x6c6   :  { %5478 = vmatprep.subr.bf16.mxu1 %v6151_v0 }
 0x6c7   :  { %4177 = vmatpush1.bf16.msra.mxu0 %v6910_v40 }
 0x6c8   :  { %4178 = vmatprep.subr.bf16.mxu0 %v6914_v22 }
 0x6cb   :  { %4179 = vmatpush1.bf16.msra.mxu0 %v6917_v31 }
 0x6cc   :  { %4180 = vmatprep.subr.bf16.mxu0 %v6921_v63 }
 0x6cf   :  { %4181 = vmatpush1.bf16.msra.mxu0 %v6924_v43 }
 0x6d0   :  { %4182 = vmatprep.subr.bf16.mxu0 %v6782_v37  ;;  %v5789_v37 = vld [vmem:[#allocation10 + $0x20] ss:$12 sps:$4 sm:$0xff]  }
 0x6d1   :  { %5479 = vmatpush3.bf16.msra.mxu1 %v5789_v37 }
 0x6d2   :  { %5480 = vmatprep.subr.bf16.mxu1 %v6151_v0 }
 0x6d3   :  { %4183 = vmatpush1.bf16.msra.mxu0 %v6785_v46  ;;  %v5790_v46 = vld [vmem:[#allocation10 + $0x38] ss:$12 sps:$4 sm:$0xff]  }
 0x6d4   :  { %4184 = vmatprep.subr.bf16.mxu0 %v6789_v60  ;;  %v5791_v60 = vld [vmem:[#allocation10 + $0x50] ss:$12 sps:$4 sm:$0xff]  }
 0x6d5   :  { %5481 = vmatpush3.bf16.msra.mxu1 %v5790_v46 }
 0x6d6   :  { %5482 = vmatprep.subr.bf16.mxu1 %v6151_v0 }
 0x6d7   :  { %4185 = vmatpush1.bf16.msra.mxu0 %v6792_v4  ;;  %v5792_v4 = vld [vmem:[#allocation10 + $0x68] ss:$12 sps:$4 sm:$0xff]  }
 0x6d8   :  { %4186 = vmatprep.subr.bf16.mxu0 %v6796_v39  ;;  %v5793_v39 = vld [vmem:[#allocation10 + $0x80] ss:$12 sps:$4 sm:$0xff]  }
 0x6d9   :  { %5483 = vmatpush3.bf16.msra.mxu1 %v5791_v60 }
 0x6da   :  { %5484 = vmatprep.subr.bf16.mxu1 %v6151_v0 }
 0x6db   :  { %4187 = vmatpush1.bf16.msra.mxu0 %v6799_v53  ;;  %v5794_v53 = vld [vmem:[#allocation10 + $0x98] ss:$12 sps:$4 sm:$0xff]  }
 0x6dc   :  { %4188 = vmatprep.subr.bf16.mxu0 %v6803_v56  ;;  %v5795_v56 = vld [vmem:[#allocation10 + $0xb0] ss:$12 sps:$4 sm:$0xff]  }
 0x6dd   :  { %5485 = vmatpush3.bf16.msra.mxu1 %v5792_v4 }
 0x6de   :  { %5486 = vmatprep.subr.bf16.mxu1 %v6151_v0 }
 0x6df   :  { %4189 = vmatpush1.bf16.msra.mxu0 %v6806_v55  ;;  %v3455_v55 = vld [vmem:[#allocation4 + $0x120] sm:$0xff] }
 0x6e0   :  { %4416 = vmatprep.subr.bf16.mxu0 %v6810_v19 }
 0x6e1   :  { %5487 = vmatpush3.bf16.msra.mxu1 %v5793_v39 }
 0x6e2   :  { %5488 = vmatprep.subr.bf16.mxu1 %v6151_v0 }
 0x6e5   :  { %5489 = vmatpush3.bf16.msra.mxu1 %v5794_v53 }
 0x6e6   :  { %5490 = vmatprep.subr.bf16.mxu1 %v6151_v0 }
 0x6e9   :  { %5491 = vmatpush3.bf16.msra.mxu1 %v5795_v56  ;;  %v3461_v56 = vld [vmem:[#allocation7 + $0x30] sm:$0xff] }
 0x6ea   :  { %5496 = vmatprep.subr.bf16.mxu1 %v6151_v0  ;;  %vm3993_vm11 = vcmp.gt.f32.partialorder %v3461_v56, 0.0 }
 0x775   :  { %v3660_v19 = vpop.f32.mrb[48].mxu0  ;;  %v3701_v23 = vpop.f32.mrb[48].mxu1 }
 0x776   :  { %v3949_v18 = vadd.f32 %v3660_v19, %v3455_v55  ;;  %v3662_v12 = vpop.f32.mrb[49].mxu0  ;;  %v5454_v40 = vpop.f32.mrb[49].mxu1  ;;  %v3977_v32 = vadd.f32 %v7015_v34, %v3701_v23 }
 0x777   :  { %v3664_v22 = vpop.f32.mrb[50].mxu0  ;;  %v3704_v31 = vpop.f32.mrb[50].mxu1  ;;  %v3950_v45 = vadd.f32 %v3662_v12, %v3456_v14 }
 0x778   :  { %v4996_v63 = vmul.f32 -1.442695, %v3949_v18  ;;  %v3665_v43 = vpop.f32.mrb[51].mxu0  ;;  %v5455_v41 = vpop.f32.mrb[51].mxu1  ;;  %v5796_v31 = vld [vmem:[#allocation12 + $0x8] ss:$12 sps:$4 sm:$0xff]  }
 0x779   :  { %v4997_v35 = vmul.f32 -1.442695, %v3950_v45  ;;  %v5797_v41 = vld [vmem:[#allocation12 + $0x20] ss:$12 sps:$4 sm:$0xff]  }
 0x77a   :  { %5924 = vpow2.f32 %v4996_v63 }
 0x77b   :  { %5926 = vpow2.f32 %v4997_v35  ;;  %v3460_v35 = vld [vmem:[#allocation4 + $0x58] sm:$0xff] }
 0x784   :  { %v5925_v27 = vpop.eup %5924 }
 0x785   :  { %v3957_v10 = vadd.f32 1.0, %v5925_v27  ;;  %v5927_v29 = vpop.eup %5926 }
 0x786   :  { %v3958_v54 = vadd.f32 1.0, %v5927_v29  ;;  %v3462_v29 = vld [vmem:[#allocation7 + $0x8] sm:$0xff] }
 0x787   :  { %5928 = vrcp.f32 %v3957_v10  ;;  %v5800_v10 = vld [vmem:[#allocation12 + $0x68] ss:$12 sps:$4 sm:$0xff]   ;;  %vm3994_vm12 = vcmp.gt.f32.partialorder %v3462_v29, 0.0 }
 0x788   :  { %5930 = vrcp.f32 %v3958_v54 }
 0x791   :  { %v5929_v58 = vpop.eup %5928 }
 0x792   :  { %v3978_v42 = vmul.f32 %v5929_v58, %v3977_v32  ;;  %v5931_v4 = vpop.eup %5930 }
 0x793   :  { %v3985_v53 = vsub.f32 1.0, %v5931_v4  ;;  %v3987_v19 = vmul.f32 %v5931_v4, %v6945_v9  ;;  %v4005_v4 = vld [vmem:[#allocation4 + $0x160] sm:$0xff] }
 0x794   :  { %v3979_v59 = vadd.f32 %v3978_v42, %v3457_v33 }
 0x795   :  { %v3902_v25 = vpop.f32.mrb[52].mxu0  ;;  %v3943_v17 = vpop.f32.mrb[52].mxu1 }
 0x796   :  { %5932 = vtanh.f32 %v3979_v59  ;;  %v3963_v48 = vadd.f32 %v3902_v25, %v3458_v26  ;;  %v3904_v11 = vpop.f32.mrb[53].mxu0  ;;  %v5474_v2 = vpop.f32.mrb[53].mxu1  ;;  %v4004_v59 = vld [vmem:[#allocation4 + $0x158] sm:$0xff] }
 0x797   :  { %v3906_v44 = vpop.f32.mrb[54].mxu0  ;;  %v3946_v52 = vpop.f32.mrb[54].mxu1  ;;  %v3964_v60 = vadd.f32 %v3904_v11, %v3459_v20 }
 0x798   :  { %v4998_v38 = vmul.f32 -1.442695, %v3963_v48  ;;  %v3907_v37 = vpop.f32.mrb[55].mxu0  ;;  %v5475_v46 = vpop.f32.mrb[55].mxu1 }
 0x799   :  { %v4999_v39 = vmul.f32 -1.442695, %v3964_v60 }
 0x79a   :  { %5934 = vpow2.f32 %v4998_v38 }
 0x79b   :  { %5936 = vpow2.f32 %v4999_v39 }
 0x7a0   :  { %v5933_v55 = vpop.eup %5932 }
 0x7a1   :  { %v3986_v23 = vmul.f32 %v5933_v55, %v3985_v53  ;;  %v4006_v53 = vld [vmem:[#allocation4 + $0x18] sm:$0xff] }
 0x7a3   :  { %v3988_v18 = vadd.f32 %v3987_v19, %v3986_v23 }
 0x7a4   :  { %v5935_v14 = vpop.eup %5934 }
 0x7a5   :  { %v3971_v12 = vadd.f32 1.0, %v5935_v14  ;;  %v7020_v40 = vsel %vm3993_vm11, %v3988_v18, %v6945_v9  ;;  %v3999_v22 = vsel %vm3993_vm11, %v3988_v18, 0.0  ;;  %v5937_v9 = vpop.eup %5936  ;;  %v4007_v18 = vld [vmem:[#allocation4 + $0x20] sm:$0xff] }
 0x7a6   :  { %v4013_v63 = vpack.c.bf16 %v7020_v40, %v7020_v40  ;;  %v4573_v43 = vadd.f32 %v3999_v22, %v6581_v24  ;;  %v5798_v24 = vld [vmem:[#allocation12 + $0x38] ss:$12 sps:$4 sm:$0xff]   ;;  %v3972_v45 = vadd.f32 1.0, %v5937_v9 }
 0x7a7   :  { %5938 = vrcp.f32 %v3971_v12 }
 0x7a8   :  { %4207 = vmatmul.mubr.bf16.vlgmr.msra.gmra.mrb[56].mxu0 %v4013_v63  ;;  %4581 = vst [vmem:[#allocation13 + $0x30] sm:$0xff] %v4573_v43  ;;  %5493 = vmatmul.mubr.bf16.vlgmr.msra.gmra.mrb[56].mxu1 %v4013_v63  ;;  %5940 = vrcp.f32 %v3972_v45  ;;  %v4009_v45 = vld [vmem:[#allocation7 + $0x38] sm:$0xff] }
 0x7a9   :  { %4417 = vmatpush1.bf16.msra.mxu0 %v6826_v8  ;;  %5497 = vmatpush3.bf16.msra.mxu1 %v5796_v31  ;;  %v7037_v8 = vld [vmem:[%s7110_s5 + $0x1] ss:$0 sm:$0xff]  ;;  %vm4541_vm13 = vcmp.gt.f32.partialorder %v4009_v45, 0.0  ;;  %s6154_s5 = smov [#allocation14]  }
 0x7aa   :  { %4418 = vmatprep.subr.bf16.mxu0 %v6830_v13  ;;  %5498 = vmatprep.subr.bf16.mxu1 %v6151_v0  ;;  %v3981_v13 = vadd.f32 %v7037_v8, %v3943_v17  ;;  %s4605_s9 = sshll.u32 %s6154_s5, 4  ;;  %s4606_s9 = int_to_ptr.vmem [resolvable:$true] %s4605_s9 }
 0x7ab   :  { %4448 = vmatprep.mubr.bf16.mxu0 %v6152_v1  ;;  %5512 = vmatprep.mubr.msk.bf16.mxu1 %vm6153_vm0, %v6151_v0  ;;  %s6086_s10 = scalar_lea.vmem %s4606_s9, 256  ;;  %p6091_p13 = scmp.lt.s32.totalorder %s4606_s9, %s4606_s9 }
 0x7ac   :  { %p6087_p12 = scmp.ne.s32.totalorder %s4606_s9, %s6086_s10  ;;  %p6092_p0 = scmp.lt.s32.totalorder %s6086_s10, %s6086_s10 }
 0x7ad   :  { %4419 = vmatpush1.bf16.msra.mxu0 %v6833_v7  ;;  %5499 = vmatpush3.bf16.msra.mxu1 %v5797_v41  ;;  %v5799_v7 = vld [vmem:[#allocation12 + $0x50] ss:$12 sps:$4 sm:$0xff]  }
 0x7ae   :  { %4420 = vmatprep.subr.bf16.mxu0 %v6837_v36  ;;  %5500 = vmatprep.subr.bf16.mxu1 %v6151_v0  ;;  %p6093_p1 = por %p6092_p0, %p6091_p13 }
 0x7b0   :  { %p6094_p2 = pnand %p6093_p1, %p6087_p12 }
 0x7b1   :  { %v5939_v1 = vpop.eup %5938  ;;  %4421 = vmatpush1.bf16.msra.mxu0 %v6843_v61  ;;  %5501 = vmatpush3.bf16.msra.mxu1 %v5798_v24  ;;  %v5801_v61 = vld [vmem:[#allocation12 + $0x80] ss:$12 sps:$4 sm:$0xff]  }
 0x7b2   :  { %v3982_v27 = vmul.f32 %v5939_v1, %v3981_v13  ;;  %4422 = vmatprep.subr.bf16.mxu0 %v6847_v62  ;;  %5502 = vmatprep.subr.bf16.mxu1 %v6151_v0  ;;  %v5941_v62 = vpop.eup %5940 }
 0x7b4   :  { %v3983_v36 = vadd.f32 %v3982_v27, %v3460_v35 }
 0x7b5   :  { %4423 = vmatpush1.bf16.msra.mxu0 %v6851_v5  ;;  %5503 = vmatpush3.bf16.msra.mxu1 %v5799_v7  ;;  %v5802_v5 = vld [vmem:[#allocation12 + $0x98] ss:$12 sps:$4 sm:$0xff]  }
 0x7b6   :  { %5942 = vtanh.f32 %v3983_v36  ;;  %4424 = vmatprep.subr.bf16.mxu0 %v6855_v50  ;;  %5504 = vmatprep.subr.bf16.mxu1 %v6151_v0  ;;  %v3989_v50 = vsub.f32 1.0, %v5941_v62 }
 0x7b9   :  { %4425 = vmatpush1.bf16.msra.mxu0 %v6858_v30  ;;  %5505 = vmatpush3.bf16.msra.mxu1 %v5800_v10  ;;  %v3991_v30 = vmul.f32 %v5941_v62, %v6978_v21 }
 0x7ba   :  { %4426 = vmatprep.subr.bf16.mxu0 %v6862_v51  ;;  %5506 = vmatprep.subr.bf16.mxu1 %v6151_v0  ;;  %v5803_v51 = vld [vmem:[#allocation12 + $0xb0] ss:$12 sps:$4 sm:$0xff]  }
 0x7bd   :  { %4427 = vmatpush1.bf16.msra.mxu0 %v6865_v15  ;;  %5507 = vmatpush3.bf16.msra.mxu1 %v5801_v61 }
 0x7be   :  { %4428 = vmatprep.subr.bf16.mxu0 %v6869_v49  ;;  %5508 = vmatprep.subr.bf16.mxu1 %v6151_v0 }
 0x7c0   :  { %v5943_v54 = vpop.eup %5942 }
 0x7c1   :  { %4429 = vmatpush1.bf16.msra.mxu0 %v6872_v28  ;;  %5509 = vmatpush3.bf16.msra.mxu1 %v5802_v5  ;;  %v3990_v32 = vmul.f32 %v5943_v54, %v3989_v50 }
 0x7c2   :  { %4430 = vmatprep.subr.bf16.mxu0 %v6876_v6  ;;  %5510 = vmatprep.subr.bf16.mxu1 %v6151_v0  ;;  %v4003_v6 = vld [vmem:[#allocation4 + $0x150] sm:$0xff] }
 0x7c3   :  { %v3992_v15 = vadd.f32 %v3991_v30, %v3990_v32 }
 0x7c5   :  { %4431 = vmatpush1.bf16.msra.mxu0 %v6880_v47  ;;  %5511 = vmatpush3.bf16.msra.mxu1 %v5803_v51  ;;  %v7058_v49 = vsel %vm3994_vm12, %v3992_v15, %v6978_v21  ;;  %v4001_v58 = vsel %vm3994_vm12, %v3992_v15, 0.0  ;;  %v4008_v51 = vld [vmem:[#allocation4 + $0x28] sm:$0xff] }
 0x7c6   :  { %v4255_v33 = vpack.c.bf16 %v7058_v49, %v7058_v49  ;;  %v4568_v28 = vadd.f32 %v4001_v58, %v6517_v57 }
 0x7c8   :  { %4449 = vmatmul.mubr.bf16.vlgmr.msra.gmra.mrb[60].mxu0 %v4255_v33  ;;  %4576 = vst [vmem:[#allocation13 + $0x8] sm:$0xff] %v4568_v28  ;;  %5513 = vmatmul.mubr.bf16.vlgmr.msra.gmra.mrb[60].mxu1 %v4255_v33  ;;  %v4010_v33 = vld [vmem:[#allocation7] sm:$0xff] }
 0x7c9   :  { %vm4542_vm14 = vcmp.gt.f32.partialorder %v4010_v33, 0.0 }
 0x87b   :  { %v4208_v42 = vpop.f32.mrb[56].mxu0  ;;  %v4249_v0 = vpop.f32.mrb[56].mxu1 }
 0x87c   :  { %v4497_v26 = vadd.f32 %v4208_v42, %v4003_v6  ;;  %v4210_v25 = vpop.f32.mrb[57].mxu0  ;;  %v5494_v47 = vpop.f32.mrb[57].mxu1  ;;  %v4525_v46 = vadd.f32 %v7015_v34, %v4249_v0 }
 0x87d   :  { %v4212_v17 = vpop.f32.mrb[58].mxu0  ;;  %v4252_v48 = vpop.f32.mrb[58].mxu1  ;;  %v4498_v2 = vadd.f32 %v4210_v25, %v4004_v59 }
 0x87e   :  { %v5048_v21 = vmul.f32 -1.442695, %v4497_v26  ;;  %v4213_v20 = vpop.f32.mrb[59].mxu0  ;;  %v5495_v11 = vpop.f32.mrb[59].mxu1 }
 0x87f   :  { %v5049_v44 = vmul.f32 -1.442695, %v4498_v2 }
 0x880   :  { %5944 = vpow2.f32 %v5048_v21 }
 0x881   :  { %5946 = vpow2.f32 %v5049_v44 }
 0x88a   :  { %v5945_v57 = vpop.eup %5944 }
 0x88b   :  { %v4505_v52 = vadd.f32 1.0, %v5945_v57  ;;  %v5947_v38 = vpop.eup %5946 }
 0x88c   :  { %v4506_v37 = vadd.f32 1.0, %v5947_v38 }
 0x88d   :  { %5948 = vrcp.f32 %v4505_v52 }
 0x88e   :  { %5950 = vrcp.f32 %v4506_v37 }
 0x897   :  { %v5949_v60 = vpop.eup %5948 }
 0x898   :  { %v4526_v39 = vmul.f32 %v5949_v60, %v4525_v46  ;;  %v5951_v34 = vpop.eup %5950 }
 0x899   :  { %v4533_v13 = vsub.f32 1.0, %v5951_v34  ;;  %v4535_v7 = vmul.f32 %v5951_v34, %v7020_v40 }
 0x89a   :  { %v4527_v56 = vadd.f32 %v4526_v39, %v4005_v4 }
 0x89b   :  { %v4450_v55 = vpop.f32.mrb[60].mxu0  ;;  %v4491_v19 = vpop.f32.mrb[60].mxu1 }
 0x89c   :  { %5952 = vtanh.f32 %v4527_v56  ;;  %v4511_v23 = vadd.f32 %v4450_v55, %v4006_v53  ;;  %v4452_v14 = vpop.f32.mrb[61].mxu0  ;;  %v5514_v12 = vpop.f32.mrb[61].mxu1  ;;  %v4529_v54 = vadd.f32 %v7037_v8, %v4491_v19 }
 0x89d   :  { %v4454_v22 = vpop.f32.mrb[62].mxu0  ;;  %v4494_v31 = vpop.f32.mrb[62].mxu1  ;;  %v4512_v9 = vadd.f32 %v4452_v14, %v4007_v18 }
 0x89e   :  { %v5050_v63 = vmul.f32 -1.442695, %v4511_v23  ;;  %v4455_v43 = vpop.f32.mrb[63].mxu0  ;;  %v5515_v41 = vpop.f32.mrb[63].mxu1 }
 0x89f   :  { %v5051_v24 = vmul.f32 -1.442695, %v4512_v9 }
 0x8a0   :  { %5954 = vpow2.f32 %v5050_v63 }
 0x8a1   :  { %5956 = vpow2.f32 %v5051_v24 }
 0x8a6   :  { %v5953_v1 = vpop.eup %5952 }
 0x8a7   :  { %v4534_v35 = vmul.f32 %v5953_v1, %v4533_v13 }
 0x8a9   :  { %v4536_v27 = vadd.f32 %v4535_v7, %v4534_v35 }
 0x8aa   :  { %v5955_v36 = vpop.eup %5954 }
 0x8ab   :  { %v4547_v10 = vsel %vm4541_vm13, %v4536_v27, 0.0  ;;  %v4519_v61 = vadd.f32 1.0, %v5955_v36  ;;  %v4543_v62 = vsel %vm4541_vm13, %v4536_v27, %v7020_v40  ;;  %v5957_v50 = vpop.eup %5956 }
 0x8ac   :  { %v4574_v5 = vadd.f32 %v4547_v10, %v6469_v16  ;;  %4585 = vst [vmem:[#allocation14] sm:$0xff] %v4543_v62  ;;  %v4520_v29 = vadd.f32 1.0, %v5957_v50 }
 0x8ad   :  { %5958 = vrcp.f32 %v4519_v61 }
 0x8ae   :  { %4582 = vst [vmem:[#allocation13 + $0x38] sm:$0xff] %v4574_v5  ;;  %5960 = vrcp.f32 %v4520_v29 }
 0x8b7   :  { %v5959_v30 = vpop.eup %5958 }
 0x8b8   :  { %v4530_v32 = vmul.f32 %v5959_v30, %v4529_v54  ;;  %v5961_v58 = vpop.eup %5960 }
 0x8b9   :  { %v4537_v28 = vsub.f32 1.0, %v5961_v58  ;;  %v4539_v16 = vmul.f32 %v5961_v58, %v7058_v49 }
 0x8ba   :  { %v4531_v15 = vadd.f32 %v4530_v32, %v4008_v51 }
 0x8bc   :  { %5962 = vtanh.f32 %v4531_v15 }
 0x8c6   :  { %v5963_v6 = vpop.eup %5962 }
 0x8c7   :  { %v4538_v40 = vmul.f32 %v5963_v6, %v4537_v28 }
 0x8c9   :  { %v4540_v42 = vadd.f32 %v4539_v16, %v4538_v40 }
 0x8cb   :  { %v4549_v8 = vsel %vm4542_vm14, %v4540_v42, 0.0  ;;  %v4544_v0 = vsel %vm4542_vm14, %v4540_v42, %v7058_v49 }
 0x8cc   :  { %v4567_v26 = vadd.f32 %v4549_v8, %v6430_v3  ;;  %4586 = vst [vmem:[#allocation14 + $0x8] sm:$0xff] %v4544_v0 }
 0x8cd   :  { %6097 = shalt.err (!%p6094_p2)
}
 0x8ce   :  { %s6098_s15 = scalar_lea.hbm %s7112_s7, 256 }
 0x8cf   :  { %p6099_p3 = scmp.ne.s32.totalorder %s7112_s7, %s6098_s15  ;;  %p6102_p4 = scmp.lt.u32.totalorder %s6098_s15, %s7112_s7 }
 0x8d1   :  { %p6104_p5 = pnand %p6102_p4, %p6099_p3 }
 0x8d3   :  { %6107 = shalt.err (!%p6104_p5)
}
 0x8d4   :  { %4608 = dma.vmem_to_hbm [thread:$0]  %s4606_s9, 256, %s7112_s7, [#allocation15]   ;;  %4575 = vst [vmem:[#allocation13] sm:$0xff] %v4567_v26 }
 0x8d5   :  { %s6108_s20 = scalar_lea.vmem %s7071_s29, 1024  ;;  %p6113_p7 = scmp.lt.s32.totalorder %s7071_s29, %s7071_s29 }
 0x8d6   :  { %p6109_p6 = scmp.ne.s32.totalorder %s7071_s29, %s6108_s20  ;;  %p6114_p8 = scmp.lt.s32.totalorder %s6108_s20, %s6108_s20 }
 0x8d8   :  { %p6115_p9 = por %p6114_p8, %p6113_p7 }
 0x8da   :  { %p6116_p10 = pnand %p6115_p9, %p6109_p6 }
 0x8dc   :  { %6119 = shalt.err (!%p6116_p10)
}
 0x8dd   :  { %s6120_s25 = scalar_lea.hbm %s7111_s6, 1024 }
 0x8de   :  { %p6121_p11 = scmp.ne.s32.totalorder %s7111_s6, %s6120_s25  ;;  %p6124_p12 = scmp.lt.u32.totalorder %s6120_s25, %s7111_s6 }
 0x8e0   :  { %p6126_p13 = pnand %p6124_p12, %p6121_p11 }
 0x8e2   :  { %6129 = shalt.err (!%p6126_p13)
}
 0x8e3   :  { %4598 = dma.vmem_to_hbm [thread:$0]  %s7071_s29, 1024, %s7111_s6, [#allocation6], %s6141_s11, %s6141_s11, %s6142_s12  }
 0x8e4   :  { %6136 = dma.done.wait [#allocation6], 1024  }
 0x8e5   :  { %6137 = vsyncadd [#allocation6], 4294966272 }
 0x8e6   :  { %6138 = dma.done.wait [#allocation15], 256  }
 0x8e7   :  { %6139 = vsyncadd [#allocation15], 4294967040 }
 0x8e8   :  { %4615 = vsyncpa [#allocation5], 1 }
 0x8e9   :  { %4616 = vsyncpa [#allocation8], 1 }
 0x8ea   :  { %4617 = vsyncpa [#allocation11], 1 }
 0x8eb   :  { %4618 = vsyncpa [#allocation6], 1 }
 0x8ec   :  { %4619 = vsyncpa [#allocation15], 1 }

</bundles_post_ra>
